<compile_context>
chip_gen: v5e
topology: v5e:2x2
jax: 0.10.0
libtpu: 0.0.40
codegen_flags: <defaults>
</compile_context>

<pallas_src>
import functools

import jax
import jax.numpy as jnp
from jax import lax
from jax.experimental import pallas as pl
from jax.experimental.pallas import tpu as pltpu

# ----------------------- small config (mirrors Generator.__init__ at toy size) -----------------------
B          = 2        # batch
NOISE_LEN  = 8        # LSTM layer-0 input feature size          (orig 100)
HIDDEN     = 32       # LSTM hidden size                          (orig 256)
NUM_LAYERS = 2
S_PRE      = 16       # prelstm out-channels == LSTM seq length   (orig 256)
C_POST1    = 8        # postlstm conv1 out-channels               (orig 128)
C_POST2    = 4        # postlstm conv2 out-channels               (orig 64)
OUT_SIZE   = (4, 8)   # generator output_size                     (orig (27, 100))
FLAT_OUT   = OUT_SIZE[0] * OUT_SIZE[1]
ELEMENT    = HIDDEN               # k=3, s=1, p=1, d=1 convs preserve length
FC_IN      = C_POST2 * ELEMENT    # == 64 * element in the original

_VMEM = pl.BlockSpec(memory_space=pltpu.MemorySpace.VMEM)


# ------------------------------------- fused forward kernel -----------------------------------------
def generator_kernel(x_ref, wpre_ref, bpre_ref,
                     wih0_ref, whh0_ref, b0_ref,
                     wih1_ref, whh1_ref, b1_ref,
                     wc1_ref, bc1_ref, wc2_ref, bc2_ref,
                     alpha_ref, wfc_ref, bfc_ref,
                     out_ref):
    Bv = x_ref.shape[0]
    H = HIDDEN
    S = S_PRE
    BL = Bv * H

    # ---------------- prelstm (Conv1d k=1 + ReLU), all timesteps at once ----------------
    # x_t(s)[b, f] = relu(w_pre[s] * x[b, f] + b_pre[s]); rows laid out as r = s*B + b.
    x = x_ref[...]                                            # (B, F)
    x_rep = jnp.concatenate([x] * S, axis=0)                  # (S*B, F)  sublane concat
    xin = jnp.maximum(wpre_ref[...] * x_rep + bpre_ref[...], 0.0)
    # hoist the layer-0 input projection (+ bias) out of the recurrence: one lane-dense matmul
    xg0 = jnp.dot(xin, wih0_ref[...],
                  preferred_element_type=jnp.float32) + b0_ref[...]   # (S*B, 4H)

    whh0 = whh0_ref[...]
    wih1 = wih1_ref[...]
    whh1 = whh1_ref[...]
    b1 = b1_ref[...]

    def cell(gates, c):
        # PyTorch gate order along 4H: [ i | f | g | o ].
        # One wide sigmoid over the full (B, 4H) row (single EUP op; the g-slice of it is unused).
        sig = jax.nn.sigmoid(gates)
        i_g, f_g, o_g = sig[:, :H], sig[:, H:2 * H], sig[:, 3 * H:]
        g_g = jnp.tanh(gates[:, 2 * H:3 * H])
        c_new = f_g * c + i_g * g_g
        return o_g * jnp.tanh(c_new), c_new

    h0 = jnp.zeros((Bv, H), jnp.float32)
    c0 = jnp.zeros((Bv, H), jnp.float32)
    h1 = jnp.zeros((Bv, H), jnp.float32)
    c1 = jnp.zeros((Bv, H), jnp.float32)

    # Layer-1 output rows collected directly in the channel-major conv layout:
    # cm[t, b*H + l] = h1_t[b, l]   (channel t == LSTM timestep t).
    rows = []
    for t in range(S):                        # fully unrolled recurrence (S static & small)
        g0 = xg0[t * Bv:(t + 1) * Bv, :] + jnp.dot(h0, whh0, preferred_element_type=jnp.float32)
        h0, c0 = cell(g0, c0)
        g1 = (jnp.dot(h0, wih1, preferred_element_type=jnp.float32)
              + jnp.dot(h1, whh1, preferred_element_type=jnp.float32) + b1)
        h1, c1 = cell(g1, c1)
        rows.append(jnp.concatenate([h1[b:b + 1, :] for b in range(Bv)], axis=1))  # (1, B*H)
    cm = jnp.concatenate(rows, axis=0)                                             # (S, B*H)

    # ---------------- postlstm: two Conv1d(k=3, pad=1) + ReLU, channel-major ----------------
    # taps[k*Ci + ci, b*H + l] = in[b, ci, l + k - 1] (zero padded) -> ONE matmul per conv layer.
    def conv_k3_relu(cm_in, w_r, b_c):
        Ci, bl = cm_in.shape
        nb = bl // H
        col = lax.broadcasted_iota(jnp.int32, (1, bl), 1)
        pad_lo = functools.reduce(jnp.logical_or, [col == b * H for b in range(nb)])
        pad_hi = functools.reduce(jnp.logical_or, [col == (b + 1) * H - 1 for b in range(nb)])
        zcol = jnp.zeros((Ci, 1), jnp.float32)
        sh_r = jnp.concatenate([zcol, cm_in[:, :bl - 1]], axis=1)     # in[ci, l-1] (global shift)
        sh_l = jnp.concatenate([cm_in[:, 1:], zcol], axis=1)          # in[ci, l+1]
        left = jnp.where(pad_lo, 0.0, sh_r)                           # zero pad at l = 0
        right = jnp.where(pad_hi, 0.0, sh_l)                          # zero pad at l = L-1
        taps = jnp.concatenate([left, cm_in, right], axis=0)          # (3*Ci, B*L)
        y = jnp.dot(w_r, taps, preferred_element_type=jnp.float32) + b_c
        return jnp.maximum(y, 0.0)

    cm1 = conv_k3_relu(cm, wc1_ref[...], bc1_ref[...])                # (C_POST1, B*H)
    cm2 = conv_k3_relu(cm1, wc2_ref[...], bc2_ref[...])               # (C_POST2, B*H)

    # ---------------- fcn: PReLU -> Dropout(eval: identity) -> Conv1d(k=1) ----------------
    alpha = alpha_ref[...]                                            # (1, 1), broadcasts
    yp = jnp.maximum(cm2, 0.0) + alpha * jnp.minimum(cm2, 0.0)        # PReLU (single alpha)
    # TODO(synk): nn.Dropout(0.5) is identity in eval mode; training-mode dropout not implemented.
    # Re-pack channel-major (C2, B*H) -> batch-major lane-dense (B, C2*H) via static slices.
    fc_rows = [jnp.concatenate([yp[c:c + 1, b * H:(b + 1) * H] for c in range(C_POST2)], axis=1)
               for b in range(Bv)]
    fc_in = jnp.concatenate(fc_rows, axis=0)                          # (B, FC_IN) = (2, 128)
    out_ref[...] = (jnp.dot(fc_in, wfc_ref[...], preferred_element_type=jnp.float32)
                    + bfc_ref[...])


# ---------------------------------------- parameter init --------------------------------------------
def init_params(key):
    ks = jax.random.split(key, 16)

    def n(k, shape, scale=0.1):
        return jax.random.normal(k, shape, jnp.float32) * scale

    p = {}
    # prelstm: Conv1d(1 -> S_PRE, kernel=1) + ReLU
    p["w_pre"] = n(ks[0], (S_PRE, 1))
    p["b_pre"] = n(ks[1], (S_PRE, 1))
    # replicated per-(timestep, batch) copies so the kernel's hoisted input projection is flat 2-D
    p["wpre_rep"] = jnp.repeat(p["w_pre"], B, axis=0)                 # (S_PRE*B, 1)
    p["bpre_rep"] = jnp.repeat(p["b_pre"], B, axis=0)

    # LSTM (PyTorch layout: W_ih (4H, in), W_hh (4H, H); gate order i,f,g,o; separate b_ih/b_hh)
    def lstm_params(kw, kr, kb1, kb2, in_size):
        W_ih = n(kw, (4 * HIDDEN, in_size))
        W_hh = n(kr, (4 * HIDDEN, HIDDEN))
        b_ih = n(kb1, (4 * HIDDEN,))
        b_hh = n(kb2, (4 * HIDDEN,))
        return W_ih.T, W_hh.T, (b_ih + b_hh).reshape(1, 4 * HIDDEN)

    p["wih0_t"], p["whh0_t"], p["b0"] = lstm_params(ks[2], ks[3], ks[4], ks[5], NOISE_LEN)
    p["wih1_t"], p["whh1_t"], p["b1"] = lstm_params(ks[6], ks[7], ks[8], ks[9], HIDDEN)

    # postlstm convs: Conv1d(S_PRE->C_POST1, 3, pad=1), Conv1d(C_POST1->C_POST2, 3, pad=1)
    w1 = n(ks[10], (C_POST1, S_PRE, 3))
    w2 = n(ks[11], (C_POST2, C_POST1, 3))
    # kernel layout: wc[co, k*Ci + ci] == torch_w[co, ci, k] (matches the in-kernel taps matrix)
    p["wc1"] = jnp.transpose(w1, (0, 2, 1)).reshape(C_POST1, 3 * S_PRE)
    p["bc1"] = n(ks[12], (C_POST1, 1))
    p["wc2"] = jnp.transpose(w2, (0, 2, 1)).reshape(C_POST2, 3 * C_POST1)
    p["bc2"] = n(ks[13], (C_POST2, 1))

    # fcn: PReLU alpha (torch init 0.25) + Conv1d(FC_IN -> FLAT_OUT, kernel=1)
    p["alpha"] = jnp.full((1, 1), 0.25, jnp.float32)
    wfc = n(ks[14], (FLAT_OUT, FC_IN))
    p["wfc_t"] = wfc.T                                                # (FC_IN, FLAT_OUT)
    p["bfc"] = n(ks[15], (1, FLAT_OUT))
    return p


# ------------------------------------------- forward ------------------------------------------------
@jax.jit
def generator_forward(x, p):
    # x: (B, NOISE_LEN)  (the PyTorch module does x.view(B, 1, -1) itself)
    Bv = x.shape[0]
    out = pl.pallas_call(
        generator_kernel,
        out_shape=jax.ShapeDtypeStruct((Bv, FLAT_OUT), jnp.float32),
        in_specs=[_VMEM] * 16,
        out_specs=_VMEM,
        # No grid: one fused program; total weights+activations << 1 MiB, fits every generation.
        # (v7x note: for bigger batches, grid over batch + dimension_semantics=("parallel",)
        #  would engage the second TensorCore.)
        compiler_params=pltpu.CompilerParams(vmem_limit_bytes=32 * 1024 * 1024),
    )(x, p["wpre_rep"], p["bpre_rep"],
      p["wih0_t"], p["whh0_t"], p["b0"],
      p["wih1_t"], p["whh1_t"], p["b1"],
      p["wc1"], p["bc1"], p["wc2"], p["bc2"],
      p["alpha"], p["wfc_t"], p["bfc"])
    return out.reshape((Bv,) + OUT_SIZE)


# ------------------------------- pure-JAX reference (correctness check) ------------------------------
def generator_reference(x, p):
    Bv = x.shape[0]
    H = HIDDEN
    hp = lax.Precision.HIGHEST

    xin = jnp.maximum(p["w_pre"].reshape(S_PRE, 1, 1) * x[None]
                      + p["b_pre"].reshape(S_PRE, 1, 1), 0.0)          # (S, B, F)

    def cell(g, c):
        i = jax.nn.sigmoid(g[:, :H]); f = jax.nn.sigmoid(g[:, H:2 * H])
        gg = jnp.tanh(g[:, 2 * H:3 * H]); o = jax.nn.sigmoid(g[:, 3 * H:])
        c2 = f * c + i * gg
        return o * jnp.tanh(c2), c2

    h0 = c0 = h1 = c1 = jnp.zeros((Bv, H), jnp.float32)
    outs = []
    for t in range(S_PRE):
        g0 = (jnp.dot(xin[t], p["wih0_t"], precision=hp)
              + jnp.dot(h0, p["whh0_t"], precision=hp) + p["b0"])
        h0, c0 = cell(g0, c0)
        g1 = (jnp.dot(h0, p["wih1_t"], precision=hp)
              + jnp.dot(h1, p["whh1_t"], precision=hp) + p["b1"])
        h1, c1 = cell(g1, c1)
        outs.append(h1)
    y = jnp.stack(outs, axis=1)                                        # (B, S_PRE, H)

    def conv_ref(yin, w_r, b_c, Ci, Co):
        w = w_r.reshape(Co, 3, Ci)                                     # [co, k, ci]
        pad = jnp.pad(yin, ((0, 0), (0, 0), (1, 1)))
        out = sum(jnp.einsum('bcl,oc->bol', pad[:, :, k:k + HIDDEN], w[:, k, :], precision=hp)
                  for k in range(3))
        return jnp.maximum(out + b_c.reshape(1, Co, 1), 0.0)

    y = conv_ref(y, p["wc1"], p["bc1"], S_PRE, C_POST1)
    y = conv_ref(y, p["wc2"], p["bc2"], C_POST1, C_POST2)
    y = y.reshape(Bv, FC_IN)
    yp = jnp.maximum(y, 0.0) + p["alpha"][0, 0] * jnp.minimum(y, 0.0)
    out = jnp.dot(yp, p["wfc_t"], precision=hp) + p["bfc"]
    return out.reshape((Bv,) + OUT_SIZE)


if __name__ == "__main__":
    key = jax.random.PRNGKey(0)
    kx, kp = jax.random.split(key)
    params = init_params(kp)
    x = jax.random.normal(kx, (B, NOISE_LEN), jnp.float32)

    out = generator_forward(x, params)
    out = jax.block_until_ready(out)

    assert out.shape == (B,) + OUT_SIZE, out.shape
    assert bool(jnp.all(jnp.isfinite(out)))

    ref = generator_reference(x, params)
    assert bool(jnp.allclose(out, ref, atol=2e-3, rtol=2e-3)), \
        float(jnp.max(jnp.abs(out - ref)))

    print("KERNEL_OK")
</pallas_src>

<mosaic_0001>
module attributes {stable_mosaic.version = 11 : i64} {
  func.func @generator_kernel(%arg0: memref<2x8xf32, #tpu.memory_space<vmem>>, %arg1: memref<32x1xf32, #tpu.memory_space<vmem>>, %arg2: memref<32x1xf32, #tpu.memory_space<vmem>>, %arg3: memref<8x128xf32, #tpu.memory_space<vmem>>, %arg4: memref<32x128xf32, #tpu.memory_space<vmem>>, %arg5: memref<1x128xf32, #tpu.memory_space<vmem>>, %arg6: memref<32x128xf32, #tpu.memory_space<vmem>>, %arg7: memref<32x128xf32, #tpu.memory_space<vmem>>, %arg8: memref<1x128xf32, #tpu.memory_space<vmem>>, %arg9: memref<8x48xf32, #tpu.memory_space<vmem>>, %arg10: memref<8x1xf32, #tpu.memory_space<vmem>>, %arg11: memref<4x24xf32, #tpu.memory_space<vmem>>, %arg12: memref<4x1xf32, #tpu.memory_space<vmem>>, %arg13: memref<1x1xf32, #tpu.memory_space<vmem>>, %arg14: memref<128x32xf32, #tpu.memory_space<vmem>>, %arg15: memref<1x32xf32, #tpu.memory_space<vmem>>, %arg16: memref<2x32xf32, #tpu.memory_space<vmem>>) attributes {dimension_semantics = [], scalar_prefetch = 0 : i64, scratch_operands = 0 : i64, tpu.core_type = #tpu.core_type<tc>} {
    %c0 = arith.constant 0 : index
    %c0_0 = arith.constant 0 : index
    %0 = vector.load %arg0[%c0, %c0_0] : memref<2x8xf32, #tpu.memory_space<vmem>>, vector<2x8xf32>
    %1 = tpu.concatenate %0, %0, %0, %0, %0, %0, %0, %0, %0, %0, %0, %0, %0, %0, %0, %0 in 0 : vector<2x8xf32>, vector<2x8xf32>, vector<2x8xf32>, vector<2x8xf32>, vector<2x8xf32>, vector<2x8xf32>, vector<2x8xf32>, vector<2x8xf32>, vector<2x8xf32>, vector<2x8xf32>, vector<2x8xf32>, vector<2x8xf32>, vector<2x8xf32>, vector<2x8xf32>, vector<2x8xf32>, vector<2x8xf32> -> vector<32x8xf32>
    %c0_1 = arith.constant 0 : index
    %c0_2 = arith.constant 0 : index
    %2 = vector.load %arg1[%c0_1, %c0_2] : memref<32x1xf32, #tpu.memory_space<vmem>>, vector<32x1xf32>
    %3 = vector.broadcast %2 : vector<32x1xf32> to vector<32x8xf32>
    %4 = arith.mulf %3, %1 : vector<32x8xf32>
    %c0_3 = arith.constant 0 : index
    %c0_4 = arith.constant 0 : index
    %5 = vector.load %arg2[%c0_3, %c0_4] : memref<32x1xf32, #tpu.memory_space<vmem>>, vector<32x1xf32>
    %6 = vector.broadcast %5 : vector<32x1xf32> to vector<32x8xf32>
    %7 = arith.addf %4, %6 : vector<32x8xf32>
    %cst = arith.constant 0.000000e+00 : f32
    %8 = vector.broadcast %cst : f32 to vector<32x8xf32>
    %9 = arith.maximumf %7, %8 : vector<32x8xf32>
    %c0_5 = arith.constant 0 : index
    %c0_6 = arith.constant 0 : index
    %10 = vector.load %arg3[%c0_5, %c0_6] : memref<8x128xf32, #tpu.memory_space<vmem>>, vector<8x128xf32>
    %cst_7 = arith.constant dense<0.000000e+00> : vector<32x128xf32>
    %11 = tpu.matmul %9, %10, %cst_7 {dimension_numbers = #tpu.dot_dimension_numbers<[1], [0], [0], [1], [0, 0, 1, 1], [], []>} : vector<32x8xf32>, vector<8x128xf32>, vector<32x128xf32> -> vector<32x128xf32>
    %c0_8 = arith.constant 0 : index
    %c0_9 = arith.constant 0 : index
    %12 = vector.load %arg5[%c0_8, %c0_9] : memref<1x128xf32, #tpu.memory_space<vmem>>, vector<1x128xf32>
    %13 = vector.broadcast %12 : vector<1x128xf32> to vector<32x128xf32>
    %14 = arith.addf %11, %13 : vector<32x128xf32>
    %c0_10 = arith.constant 0 : index
    %c0_11 = arith.constant 0 : index
    %15 = vector.load %arg4[%c0_10, %c0_11] : memref<32x128xf32, #tpu.memory_space<vmem>>, vector<32x128xf32>
    %c0_12 = arith.constant 0 : index
    %c0_13 = arith.constant 0 : index
    %16 = vector.load %arg6[%c0_12, %c0_13] : memref<32x128xf32, #tpu.memory_space<vmem>>, vector<32x128xf32>
    %c0_14 = arith.constant 0 : index
    %c0_15 = arith.constant 0 : index
    %17 = vector.load %arg7[%c0_14, %c0_15] : memref<32x128xf32, #tpu.memory_space<vmem>>, vector<32x128xf32>
    %c0_16 = arith.constant 0 : index
    %c0_17 = arith.constant 0 : index
    %18 = vector.load %arg8[%c0_16, %c0_17] : memref<1x128xf32, #tpu.memory_space<vmem>>, vector<1x128xf32>
    %cst_18 = arith.constant 0.000000e+00 : f32
    %19 = vector.broadcast %cst_18 : f32 to vector<2x32xf32>
    %cst_19 = arith.constant 0.000000e+00 : f32
    %20 = vector.broadcast %cst_19 : f32 to vector<2x32xf32>
    %cst_20 = arith.constant 0.000000e+00 : f32
    %21 = vector.broadcast %cst_20 : f32 to vector<2x32xf32>
    %cst_21 = arith.constant 0.000000e+00 : f32
    %22 = vector.broadcast %cst_21 : f32 to vector<2x32xf32>
    %23 = vector.extract_strided_slice %14 {offsets = [0, 0], sizes = [2, 128], strides = [1, 1]} : vector<32x128xf32> to vector<2x128xf32>
    %cst_22 = arith.constant dense<0.000000e+00> : vector<2x128xf32>
    %24 = tpu.matmul %19, %15, %cst_22 {dimension_numbers = #tpu.dot_dimension_numbers<[1], [0], [0], [1], [0, 0, 1, 1], [], []>} : vector<2x32xf32>, vector<32x128xf32>, vector<2x128xf32> -> vector<2x128xf32>
    %25 = arith.addf %23, %24 : vector<2x128xf32>
    %26 = arith.negf %25 : vector<2x128xf32>
    %27 = math.exp %26 : vector<2x128xf32>
    %cst_23 = arith.constant 1.000000e+00 : f32
    %28 = vector.broadcast %cst_23 : f32 to vector<2x128xf32>
    %29 = arith.addf %28, %27 : vector<2x128xf32>
    %30 = arith.divf %28, %29 : vector<2x128xf32>
    %31 = vector.extract_strided_slice %30 {offsets = [0, 0], sizes = [2, 32], strides = [1, 1]} : vector<2x128xf32> to vector<2x32xf32>
    %32 = vector.extract_strided_slice %30 {offsets = [0, 32], sizes = [2, 32], strides = [1, 1]} : vector<2x128xf32> to vector<2x32xf32>
    %33 = vector.extract_strided_slice %30 {offsets = [0, 96], sizes = [2, 32], strides = [1, 1]} : vector<2x128xf32> to vector<2x32xf32>
    %34 = vector.extract_strided_slice %25 {offsets = [0, 64], sizes = [2, 32], strides = [1, 1]} : vector<2x128xf32> to vector<2x32xf32>
    %35 = math.tanh %34 : vector<2x32xf32>
    %36 = arith.mulf %32, %20 : vector<2x32xf32>
    %37 = arith.mulf %31, %35 : vector<2x32xf32>
    %38 = arith.addf %36, %37 : vector<2x32xf32>
    %39 = math.tanh %38 : vector<2x32xf32>
    %40 = arith.mulf %33, %39 : vector<2x32xf32>
    %cst_24 = arith.constant dense<0.000000e+00> : vector<2x128xf32>
    %41 = tpu.matmul %40, %16, %cst_24 {dimension_numbers = #tpu.dot_dimension_numbers<[1], [0], [0], [1], [0, 0, 1, 1], [], []>} : vector<2x32xf32>, vector<32x128xf32>, vector<2x128xf32> -> vector<2x128xf32>
    %cst_25 = arith.constant dense<0.000000e+00> : vector<2x128xf32>
    %42 = tpu.matmul %21, %17, %cst_25 {dimension_numbers = #tpu.dot_dimension_numbers<[1], [0], [0], [1], [0, 0, 1, 1], [], []>} : vector<2x32xf32>, vector<32x128xf32>, vector<2x128xf32> -> vector<2x128xf32>
    %43 = arith.addf %41, %42 : vector<2x128xf32>
    %44 = vector.broadcast %18 : vector<1x128xf32> to vector<2x128xf32>
    %45 = arith.addf %43, %44 : vector<2x128xf32>
    %46 = arith.negf %45 : vector<2x128xf32>
    %47 = math.exp %46 : vector<2x128xf32>
    %cst_26 = arith.constant 1.000000e+00 : f32
    %48 = vector.broadcast %cst_26 : f32 to vector<2x128xf32>
    %49 = arith.addf %48, %47 : vector<2x128xf32>
    %50 = arith.divf %48, %49 : vector<2x128xf32>
    %51 = vector.extract_strided_slice %50 {offsets = [0, 0], sizes = [2, 32], strides = [1, 1]} : vector<2x128xf32> to vector<2x32xf32>
    %52 = vector.extract_strided_slice %50 {offsets = [0, 32], sizes = [2, 32], strides = [1, 1]} : vector<2x128xf32> to vector<2x32xf32>
    %53 = vector.extract_strided_slice %50 {offsets = [0, 96], sizes = [2, 32], strides = [1, 1]} : vector<2x128xf32> to vector<2x32xf32>
    %54 = vector.extract_strided_slice %45 {offsets = [0, 64], sizes = [2, 32], strides = [1, 1]} : vector<2x128xf32> to vector<2x32xf32>
    %55 = math.tanh %54 : vector<2x32xf32>
    %56 = arith.mulf %52, %22 : vector<2x32xf32>
    %57 = arith.mulf %51, %55 : vector<2x32xf32>
    %58 = arith.addf %56, %57 : vector<2x32xf32>
    %59 = math.tanh %58 : vector<2x32xf32>
    %60 = arith.mulf %53, %59 : vector<2x32xf32>
    %61 = vector.extract_strided_slice %60 {offsets = [0, 0], sizes = [1, 32], strides = [1, 1]} : vector<2x32xf32> to vector<1x32xf32>
    %62 = vector.extract_strided_slice %60 {offsets = [1, 0], sizes = [1, 32], strides = [1, 1]} : vector<2x32xf32> to vector<1x32xf32>
    %63 = tpu.concatenate %61, %62 in 1 : vector<1x32xf32>, vector<1x32xf32> -> vector<1x64xf32>
    %64 = vector.extract_strided_slice %14 {offsets = [2, 0], sizes = [2, 128], strides = [1, 1]} : vector<32x128xf32> to vector<2x128xf32>
    %cst_27 = arith.constant dense<0.000000e+00> : vector<2x128xf32>
    %65 = tpu.matmul %40, %15, %cst_27 {dimension_numbers = #tpu.dot_dimension_numbers<[1], [0], [0], [1], [0, 0, 1, 1], [], []>} : vector<2x32xf32>, vector<32x128xf32>, vector<2x128xf32> -> vector<2x128xf32>
    %66 = arith.addf %64, %65 : vector<2x128xf32>
    %67 = arith.negf %66 : vector<2x128xf32>
    %68 = math.exp %67 : vector<2x128xf32>
    %cst_28 = arith.constant 1.000000e+00 : f32
    %69 = vector.broadcast %cst_28 : f32 to vector<2x128xf32>
    %70 = arith.addf %69, %68 : vector<2x128xf32>
    %71 = arith.divf %69, %70 : vector<2x128xf32>
    %72 = vector.extract_strided_slice %71 {offsets = [0, 0], sizes = [2, 32], strides = [1, 1]} : vector<2x128xf32> to vector<2x32xf32>
    %73 = vector.extract_strided_slice %71 {offsets = [0, 32], sizes = [2, 32], strides = [1, 1]} : vector<2x128xf32> to vector<2x32xf32>
    %74 = vector.extract_strided_slice %71 {offsets = [0, 96], sizes = [2, 32], strides = [1, 1]} : vector<2x128xf32> to vector<2x32xf32>
    %75 = vector.extract_strided_slice %66 {offsets = [0, 64], sizes = [2, 32], strides = [1, 1]} : vector<2x128xf32> to vector<2x32xf32>
    %76 = math.tanh %75 : vector<2x32xf32>
    %77 = arith.mulf %73, %38 : vector<2x32xf32>
    %78 = arith.mulf %72, %76 : vector<2x32xf32>
    %79 = arith.addf %77, %78 : vector<2x32xf32>
    %80 = math.tanh %79 : vector<2x32xf32>
    %81 = arith.mulf %74, %80 : vector<2x32xf32>
    %cst_29 = arith.constant dense<0.000000e+00> : vector<2x128xf32>
    %82 = tpu.matmul %81, %16, %cst_29 {dimension_numbers = #tpu.dot_dimension_numbers<[1], [0], [0], [1], [0, 0, 1, 1], [], []>} : vector<2x32xf32>, vector<32x128xf32>, vector<2x128xf32> -> vector<2x128xf32>
    %cst_30 = arith.constant dense<0.000000e+00> : vector<2x128xf32>
    %83 = tpu.matmul %60, %17, %cst_30 {dimension_numbers = #tpu.dot_dimension_numbers<[1], [0], [0], [1], [0, 0, 1, 1], [], []>} : vector<2x32xf32>, vector<32x128xf32>, vector<2x128xf32> -> vector<2x128xf32>
    %84 = arith.addf %82, %83 : vector<2x128xf32>
    %85 = vector.broadcast %18 : vector<1x128xf32> to vector<2x128xf32>
    %86 = arith.addf %84, %85 : vector<2x128xf32>
    %87 = arith.negf %86 : vector<2x128xf32>
    %88 = math.exp %87 : vector<2x128xf32>
    %cst_31 = arith.constant 1.000000e+00 : f32
    %89 = vector.broadcast %cst_31 : f32 to vector<2x128xf32>
    %90 = arith.addf %89, %88 : vector<2x128xf32>
    %91 = arith.divf %89, %90 : vector<2x128xf32>
    %92 = vector.extract_strided_slice %91 {offsets = [0, 0], sizes = [2, 32], strides = [1, 1]} : vector<2x128xf32> to vector<2x32xf32>
    %93 = vector.extract_strided_slice %91 {offsets = [0, 32], sizes = [2, 32], strides = [1, 1]} : vector<2x128xf32> to vector<2x32xf32>
    %94 = vector.extract_strided_slice %91 {offsets = [0, 96], sizes = [2, 32], strides = [1, 1]} : vector<2x128xf32> to vector<2x32xf32>
    %95 = vector.extract_strided_slice %86 {offsets = [0, 64], sizes = [2, 32], strides = [1, 1]} : vector<2x128xf32> to vector<2x32xf32>
    %96 = math.tanh %95 : vector<2x32xf32>
    %97 = arith.mulf %93, %58 : vector<2x32xf32>
    %98 = arith.mulf %92, %96 : vector<2x32xf32>
    %99 = arith.addf %97, %98 : vector<2x32xf32>
    %100 = math.tanh %99 : vector<2x32xf32>
    %101 = arith.mulf %94, %100 : vector<2x32xf32>
    %102 = vector.extract_strided_slice %101 {offsets = [0, 0], sizes = [1, 32], strides = [1, 1]} : vector<2x32xf32> to vector<1x32xf32>
    %103 = vector.extract_strided_slice %101 {offsets = [1, 0], sizes = [1, 32], strides = [1, 1]} : vector<2x32xf32> to vector<1x32xf32>
    %104 = tpu.concatenate %102, %103 in 1 : vector<1x32xf32>, vector<1x32xf32> -> vector<1x64xf32>
    %105 = vector.extract_strided_slice %14 {offsets = [4, 0], sizes = [2, 128], strides = [1, 1]} : vector<32x128xf32> to vector<2x128xf32>
    %cst_32 = arith.constant dense<0.000000e+00> : vector<2x128xf32>
    %106 = tpu.matmul %81, %15, %cst_32 {dimension_numbers = #tpu.dot_dimension_numbers<[1], [0], [0], [1], [0, 0, 1, 1], [], []>} : vector<2x32xf32>, vector<32x128xf32>, vector<2x128xf32> -> vector<2x128xf32>
    %107 = arith.addf %105, %106 : vector<2x128xf32>
    %108 = arith.negf %107 : vector<2x128xf32>
    %109 = math.exp %108 : vector<2x128xf32>
    %cst_33 = arith.constant 1.000000e+00 : f32
    %110 = vector.broadcast %cst_33 : f32 to vector<2x128xf32>
    %111 = arith.addf %110, %109 : vector<2x128xf32>
    %112 = arith.divf %110, %111 : vector<2x128xf32>
    %113 = vector.extract_strided_slice %112 {offsets = [0, 0], sizes = [2, 32], strides = [1, 1]} : vector<2x128xf32> to vector<2x32xf32>
    %114 = vector.extract_strided_slice %112 {offsets = [0, 32], sizes = [2, 32], strides = [1, 1]} : vector<2x128xf32> to vector<2x32xf32>
    %115 = vector.extract_strided_slice %112 {offsets = [0, 96], sizes = [2, 32], strides = [1, 1]} : vector<2x128xf32> to vector<2x32xf32>
    %116 = vector.extract_strided_slice %107 {offsets = [0, 64], sizes = [2, 32], strides = [1, 1]} : vector<2x128xf32> to vector<2x32xf32>
    %117 = math.tanh %116 : vector<2x32xf32>
    %118 = arith.mulf %114, %79 : vector<2x32xf32>
    %119 = arith.mulf %113, %117 : vector<2x32xf32>
    %120 = arith.addf %118, %119 : vector<2x32xf32>
    %121 = math.tanh %120 : vector<2x32xf32>
    %122 = arith.mulf %115, %121 : vector<2x32xf32>
    %cst_34 = arith.constant dense<0.000000e+00> : vector<2x128xf32>
    %123 = tpu.matmul %122, %16, %cst_34 {dimension_numbers = #tpu.dot_dimension_numbers<[1], [0], [0], [1], [0, 0, 1, 1], [], []>} : vector<2x32xf32>, vector<32x128xf32>, vector<2x128xf32> -> vector<2x128xf32>
    %cst_35 = arith.constant dense<0.000000e+00> : vector<2x128xf32>
    %124 = tpu.matmul %101, %17, %cst_35 {dimension_numbers = #tpu.dot_dimension_numbers<[1], [0], [0], [1], [0, 0, 1, 1], [], []>} : vector<2x32xf32>, vector<32x128xf32>, vector<2x128xf32> -> vector<2x128xf32>
    %125 = arith.addf %123, %124 : vector<2x128xf32>
    %126 = vector.broadcast %18 : vector<1x128xf32> to vector<2x128xf32>
    %127 = arith.addf %125, %126 : vector<2x128xf32>
    %128 = arith.negf %127 : vector<2x128xf32>
    %129 = math.exp %128 : vector<2x128xf32>
    %cst_36 = arith.constant 1.000000e+00 : f32
    %130 = vector.broadcast %cst_36 : f32 to vector<2x128xf32>
    %131 = arith.addf %130, %129 : vector<2x128xf32>
    %132 = arith.divf %130, %131 : vector<2x128xf32>
    %133 = vector.extract_strided_slice %132 {offsets = [0, 0], sizes = [2, 32], strides = [1, 1]} : vector<2x128xf32> to vector<2x32xf32>
    %134 = vector.extract_strided_slice %132 {offsets = [0, 32], sizes = [2, 32], strides = [1, 1]} : vector<2x128xf32> to vector<2x32xf32>
    %135 = vector.extract_strided_slice %132 {offsets = [0, 96], sizes = [2, 32], strides = [1, 1]} : vector<2x128xf32> to vector<2x32xf32>
    %136 = vector.extract_strided_slice %127 {offsets = [0, 64], sizes = [2, 32], strides = [1, 1]} : vector<2x128xf32> to vector<2x32xf32>
    %137 = math.tanh %136 : vector<2x32xf32>
    %138 = arith.mulf %134, %99 : vector<2x32xf32>
    %139 = arith.mulf %133, %137 : vector<2x32xf32>
    %140 = arith.addf %138, %139 : vector<2x32xf32>
    %141 = math.tanh %140 : vector<2x32xf32>
    %142 = arith.mulf %135, %141 : vector<2x32xf32>
    %143 = vector.extract_strided_slice %142 {offsets = [0, 0], sizes = [1, 32], strides = [1, 1]} : vector<2x32xf32> to vector<1x32xf32>
    %144 = vector.extract_strided_slice %142 {offsets = [1, 0], sizes = [1, 32], strides = [1, 1]} : vector<2x32xf32> to vector<1x32xf32>
    %145 = tpu.concatenate %143, %144 in 1 : vector<1x32xf32>, vector<1x32xf32> -> vector<1x64xf32>
    %146 = vector.extract_strided_slice %14 {offsets = [6, 0], sizes = [2, 128], strides = [1, 1]} : vector<32x128xf32> to vector<2x128xf32>
    %cst_37 = arith.constant dense<0.000000e+00> : vector<2x128xf32>
    %147 = tpu.matmul %122, %15, %cst_37 {dimension_numbers = #tpu.dot_dimension_numbers<[1], [0], [0], [1], [0, 0, 1, 1], [], []>} : vector<2x32xf32>, vector<32x128xf32>, vector<2x128xf32> -> vector<2x128xf32>
    %148 = arith.addf %146, %147 : vector<2x128xf32>
    %149 = arith.negf %148 : vector<2x128xf32>
    %150 = math.exp %149 : vector<2x128xf32>
    %cst_38 = arith.constant 1.000000e+00 : f32
    %151 = vector.broadcast %cst_38 : f32 to vector<2x128xf32>
    %152 = arith.addf %151, %150 : vector<2x128xf32>
    %153 = arith.divf %151, %152 : vector<2x128xf32>
    %154 = vector.extract_strided_slice %153 {offsets = [0, 0], sizes = [2, 32], strides = [1, 1]} : vector<2x128xf32> to vector<2x32xf32>
    %155 = vector.extract_strided_slice %153 {offsets = [0, 32], sizes = [2, 32], strides = [1, 1]} : vector<2x128xf32> to vector<2x32xf32>
    %156 = vector.extract_strided_slice %153 {offsets = [0, 96], sizes = [2, 32], strides = [1, 1]} : vector<2x128xf32> to vector<2x32xf32>
    %157 = vector.extract_strided_slice %148 {offsets = [0, 64], sizes = [2, 32], strides = [1, 1]} : vector<2x128xf32> to vector<2x32xf32>
    %158 = math.tanh %157 : vector<2x32xf32>
    %159 = arith.mulf %155, %120 : vector<2x32xf32>
    %160 = arith.mulf %154, %158 : vector<2x32xf32>
    %161 = arith.addf %159, %160 : vector<2x32xf32>
    %162 = math.tanh %161 : vector<2x32xf32>
    %163 = arith.mulf %156, %162 : vector<2x32xf32>
    %cst_39 = arith.constant dense<0.000000e+00> : vector<2x128xf32>
    %164 = tpu.matmul %163, %16, %cst_39 {dimension_numbers = #tpu.dot_dimension_numbers<[1], [0], [0], [1], [0, 0, 1, 1], [], []>} : vector<2x32xf32>, vector<32x128xf32>, vector<2x128xf32> -> vector<2x128xf32>
    %cst_40 = arith.constant dense<0.000000e+00> : vector<2x128xf32>
    %165 = tpu.matmul %142, %17, %cst_40 {dimension_numbers = #tpu.dot_dimension_numbers<[1], [0], [0], [1], [0, 0, 1, 1], [], []>} : vector<2x32xf32>, vector<32x128xf32>, vector<2x128xf32> -> vector<2x128xf32>
    %166 = arith.addf %164, %165 : vector<2x128xf32>
    %167 = vector.broadcast %18 : vector<1x128xf32> to vector<2x128xf32>
    %168 = arith.addf %166, %167 : vector<2x128xf32>
    %169 = arith.negf %168 : vector<2x128xf32>
    %170 = math.exp %169 : vector<2x128xf32>
    %cst_41 = arith.constant 1.000000e+00 : f32
    %171 = vector.broadcast %cst_41 : f32 to vector<2x128xf32>
    %172 = arith.addf %171, %170 : vector<2x128xf32>
    %173 = arith.divf %171, %172 : vector<2x128xf32>
    %174 = vector.extract_strided_slice %173 {offsets = [0, 0], sizes = [2, 32], strides = [1, 1]} : vector<2x128xf32> to vector<2x32xf32>
    %175 = vector.extract_strided_slice %173 {offsets = [0, 32], sizes = [2, 32], strides = [1, 1]} : vector<2x128xf32> to vector<2x32xf32>
    %176 = vector.extract_strided_slice %173 {offsets = [0, 96], sizes = [2, 32], strides = [1, 1]} : vector<2x128xf32> to vector<2x32xf32>
    %177 = vector.extract_strided_slice %168 {offsets = [0, 64], sizes = [2, 32], strides = [1, 1]} : vector<2x128xf32> to vector<2x32xf32>
    %178 = math.tanh %177 : vector<2x32xf32>
    %179 = arith.mulf %175, %140 : vector<2x32xf32>
    %180 = arith.mulf %174, %178 : vector<2x32xf32>
    %181 = arith.addf %179, %180 : vector<2x32xf32>
    %182 = math.tanh %181 : vector<2x32xf32>
    %183 = arith.mulf %176, %182 : vector<2x32xf32>
    %184 = vector.extract_strided_slice %183 {offsets = [0, 0], sizes = [1, 32], strides = [1, 1]} : vector<2x32xf32> to vector<1x32xf32>
    %185 = vector.extract_strided_slice %183 {offsets = [1, 0], sizes = [1, 32], strides = [1, 1]} : vector<2x32xf32> to vector<1x32xf32>
    %186 = tpu.concatenate %184, %185 in 1 : vector<1x32xf32>, vector<1x32xf32> -> vector<1x64xf32>
    %187 = vector.extract_strided_slice %14 {offsets = [8, 0], sizes = [2, 128], strides = [1, 1]} : vector<32x128xf32> to vector<2x128xf32>
    %cst_42 = arith.constant dense<0.000000e+00> : vector<2x128xf32>
    %188 = tpu.matmul %163, %15, %cst_42 {dimension_numbers = #tpu.dot_dimension_numbers<[1], [0], [0], [1], [0, 0, 1, 1], [], []>} : vector<2x32xf32>, vector<32x128xf32>, vector<2x128xf32> -> vector<2x128xf32>
    %189 = arith.addf %187, %188 : vector<2x128xf32>
    %190 = arith.negf %189 : vector<2x128xf32>
    %191 = math.exp %190 : vector<2x128xf32>
    %cst_43 = arith.constant 1.000000e+00 : f32
    %192 = vector.broadcast %cst_43 : f32 to vector<2x128xf32>
    %193 = arith.addf %192, %191 : vector<2x128xf32>
    %194 = arith.divf %192, %193 : vector<2x128xf32>
    %195 = vector.extract_strided_slice %194 {offsets = [0, 0], sizes = [2, 32], strides = [1, 1]} : vector<2x128xf32> to vector<2x32xf32>
    %196 = vector.extract_strided_slice %194 {offsets = [0, 32], sizes = [2, 32], strides = [1, 1]} : vector<2x128xf32> to vector<2x32xf32>
    %197 = vector.extract_strided_slice %194 {offsets = [0, 96], sizes = [2, 32], strides = [1, 1]} : vector<2x128xf32> to vector<2x32xf32>
    %198 = vector.extract_strided_slice %189 {offsets = [0, 64], sizes = [2, 32], strides = [1, 1]} : vector<2x128xf32> to vector<2x32xf32>
    %199 = math.tanh %198 : vector<2x32xf32>
    %200 = arith.mulf %196, %161 : vector<2x32xf32>
    %201 = arith.mulf %195, %199 : vector<2x32xf32>
    %202 = arith.addf %200, %201 : vector<2x32xf32>
    %203 = math.tanh %202 : vector<2x32xf32>
    %204 = arith.mulf %197, %203 : vector<2x32xf32>
    %cst_44 = arith.constant dense<0.000000e+00> : vector<2x128xf32>
    %205 = tpu.matmul %204, %16, %cst_44 {dimension_numbers = #tpu.dot_dimension_numbers<[1], [0], [0], [1], [0, 0, 1, 1], [], []>} : vector<2x32xf32>, vector<32x128xf32>, vector<2x128xf32> -> vector<2x128xf32>
    %cst_45 = arith.constant dense<0.000000e+00> : vector<2x128xf32>
    %206 = tpu.matmul %183, %17, %cst_45 {dimension_numbers = #tpu.dot_dimension_numbers<[1], [0], [0], [1], [0, 0, 1, 1], [], []>} : vector<2x32xf32>, vector<32x128xf32>, vector<2x128xf32> -> vector<2x128xf32>
    %207 = arith.addf %205, %206 : vector<2x128xf32>
    %208 = vector.broadcast %18 : vector<1x128xf32> to vector<2x128xf32>
    %209 = arith.addf %207, %208 : vector<2x128xf32>
    %210 = arith.negf %209 : vector<2x128xf32>
    %211 = math.exp %210 : vector<2x128xf32>
    %cst_46 = arith.constant 1.000000e+00 : f32
    %212 = vector.broadcast %cst_46 : f32 to vector<2x128xf32>
    %213 = arith.addf %212, %211 : vector<2x128xf32>
    %214 = arith.divf %212, %213 : vector<2x128xf32>
    %215 = vector.extract_strided_slice %214 {offsets = [0, 0], sizes = [2, 32], strides = [1, 1]} : vector<2x128xf32> to vector<2x32xf32>
    %216 = vector.extract_strided_slice %214 {offsets = [0, 32], sizes = [2, 32], strides = [1, 1]} : vector<2x128xf32> to vector<2x32xf32>
    %217 = vector.extract_strided_slice %214 {offsets = [0, 96], sizes = [2, 32], strides = [1, 1]} : vector<2x128xf32> to vector<2x32xf32>
    %218 = vector.extract_strided_slice %209 {offsets = [0, 64], sizes = [2, 32], strides = [1, 1]} : vector<2x128xf32> to vector<2x32xf32>
    %219 = math.tanh %218 : vector<2x32xf32>
    %220 = arith.mulf %216, %181 : vector<2x32xf32>
    %221 = arith.mulf %215, %219 : vector<2x32xf32>
    %222 = arith.addf %220, %221 : vector<2x32xf32>
    %223 = math.tanh %222 : vector<2x32xf32>
    %224 = arith.mulf %217, %223 : vector<2x32xf32>
    %225 = vector.extract_strided_slice %224 {offsets = [0, 0], sizes = [1, 32], strides = [1, 1]} : vector<2x32xf32> to vector<1x32xf32>
    %226 = vector.extract_strided_slice %224 {offsets = [1, 0], sizes = [1, 32], strides = [1, 1]} : vector<2x32xf32> to vector<1x32xf32>
    %227 = tpu.concatenate %225, %226 in 1 : vector<1x32xf32>, vector<1x32xf32> -> vector<1x64xf32>
    %228 = vector.extract_strided_slice %14 {offsets = [10, 0], sizes = [2, 128], strides = [1, 1]} : vector<32x128xf32> to vector<2x128xf32>
    %cst_47 = arith.constant dense<0.000000e+00> : vector<2x128xf32>
    %229 = tpu.matmul %204, %15, %cst_47 {dimension_numbers = #tpu.dot_dimension_numbers<[1], [0], [0], [1], [0, 0, 1, 1], [], []>} : vector<2x32xf32>, vector<32x128xf32>, vector<2x128xf32> -> vector<2x128xf32>
    %230 = arith.addf %228, %229 : vector<2x128xf32>
    %231 = arith.negf %230 : vector<2x128xf32>
    %232 = math.exp %231 : vector<2x128xf32>
    %cst_48 = arith.constant 1.000000e+00 : f32
    %233 = vector.broadcast %cst_48 : f32 to vector<2x128xf32>
    %234 = arith.addf %233, %232 : vector<2x128xf32>
    %235 = arith.divf %233, %234 : vector<2x128xf32>
    %236 = vector.extract_strided_slice %235 {offsets = [0, 0], sizes = [2, 32], strides = [1, 1]} : vector<2x128xf32> to vector<2x32xf32>
    %237 = vector.extract_strided_slice %235 {offsets = [0, 32], sizes = [2, 32], strides = [1, 1]} : vector<2x128xf32> to vector<2x32xf32>
    %238 = vector.extract_strided_slice %235 {offsets = [0, 96], sizes = [2, 32], strides = [1, 1]} : vector<2x128xf32> to vector<2x32xf32>
    %239 = vector.extract_strided_slice %230 {offsets = [0, 64], sizes = [2, 32], strides = [1, 1]} : vector<2x128xf32> to vector<2x32xf32>
    %240 = math.tanh %239 : vector<2x32xf32>
    %241 = arith.mulf %237, %202 : vector<2x32xf32>
    %242 = arith.mulf %236, %240 : vector<2x32xf32>
    %243 = arith.addf %241, %242 : vector<2x32xf32>
    %244 = math.tanh %243 : vector<2x32xf32>
    %245 = arith.mulf %238, %244 : vector<2x32xf32>
    %cst_49 = arith.constant dense<0.000000e+00> : vector<2x128xf32>
    %246 = tpu.matmul %245, %16, %cst_49 {dimension_numbers = #tpu.dot_dimension_numbers<[1], [0], [0], [1], [0, 0, 1, 1], [], []>} : vector<2x32xf32>, vector<32x128xf32>, vector<2x128xf32> -> vector<2x128xf32>
    %cst_50 = arith.constant dense<0.000000e+00> : vector<2x128xf32>
    %247 = tpu.matmul %224, %17, %cst_50 {dimension_numbers = #tpu.dot_dimension_numbers<[1], [0], [0], [1], [0, 0, 1, 1], [], []>} : vector<2x32xf32>, vector<32x128xf32>, vector<2x128xf32> -> vector<2x128xf32>
    %248 = arith.addf %246, %247 : vector<2x128xf32>
    %249 = vector.broadcast %18 : vector<1x128xf32> to vector<2x128xf32>
    %250 = arith.addf %248, %249 : vector<2x128xf32>
    %251 = arith.negf %250 : vector<2x128xf32>
    %252 = math.exp %251 : vector<2x128xf32>
    %cst_51 = arith.constant 1.000000e+00 : f32
    %253 = vector.broadcast %cst_51 : f32 to vector<2x128xf32>
    %254 = arith.addf %253, %252 : vector<2x128xf32>
    %255 = arith.divf %253, %254 : vector<2x128xf32>
    %256 = vector.extract_strided_slice %255 {offsets = [0, 0], sizes = [2, 32], strides = [1, 1]} : vector<2x128xf32> to vector<2x32xf32>
    %257 = vector.extract_strided_slice %255 {offsets = [0, 32], sizes = [2, 32], strides = [1, 1]} : vector<2x128xf32> to vector<2x32xf32>
    %258 = vector.extract_strided_slice %255 {offsets = [0, 96], sizes = [2, 32], strides = [1, 1]} : vector<2x128xf32> to vector<2x32xf32>
    %259 = vector.extract_strided_slice %250 {offsets = [0, 64], sizes = [2, 32], strides = [1, 1]} : vector<2x128xf32> to vector<2x32xf32>
    %260 = math.tanh %259 : vector<2x32xf32>
    %261 = arith.mulf %257, %222 : vector<2x32xf32>
    %262 = arith.mulf %256, %260 : vector<2x32xf32>
    %263 = arith.addf %261, %262 : vector<2x32xf32>
    %264 = math.tanh %263 : vector<2x32xf32>
    %265 = arith.mulf %258, %264 : vector<2x32xf32>
    %266 = vector.extract_strided_slice %265 {offsets = [0, 0], sizes = [1, 32], strides = [1, 1]} : vector<2x32xf32> to vector<1x32xf32>
    %267 = vector.extract_strided_slice %265 {offsets = [1, 0], sizes = [1, 32], strides = [1, 1]} : vector<2x32xf32> to vector<1x32xf32>
    %268 = tpu.concatenate %266, %267 in 1 : vector<1x32xf32>, vector<1x32xf32> -> vector<1x64xf32>
    %269 = vector.extract_strided_slice %14 {offsets = [12, 0], sizes = [2, 128], strides = [1, 1]} : vector<32x128xf32> to vector<2x128xf32>
    %cst_52 = arith.constant dense<0.000000e+00> : vector<2x128xf32>
    %270 = tpu.matmul %245, %15, %cst_52 {dimension_numbers = #tpu.dot_dimension_numbers<[1], [0], [0], [1], [0, 0, 1, 1], [], []>} : vector<2x32xf32>, vector<32x128xf32>, vector<2x128xf32> -> vector<2x128xf32>
    %271 = arith.addf %269, %270 : vector<2x128xf32>
    %272 = arith.negf %271 : vector<2x128xf32>
    %273 = math.exp %272 : vector<2x128xf32>
    %cst_53 = arith.constant 1.000000e+00 : f32
    %274 = vector.broadcast %cst_53 : f32 to vector<2x128xf32>
    %275 = arith.addf %274, %273 : vector<2x128xf32>
    %276 = arith.divf %274, %275 : vector<2x128xf32>
    %277 = vector.extract_strided_slice %276 {offsets = [0, 0], sizes = [2, 32], strides = [1, 1]} : vector<2x128xf32> to vector<2x32xf32>
    %278 = vector.extract_strided_slice %276 {offsets = [0, 32], sizes = [2, 32], strides = [1, 1]} : vector<2x128xf32> to vector<2x32xf32>
    %279 = vector.extract_strided_slice %276 {offsets = [0, 96], sizes = [2, 32], strides = [1, 1]} : vector<2x128xf32> to vector<2x32xf32>
    %280 = vector.extract_strided_slice %271 {offsets = [0, 64], sizes = [2, 32], strides = [1, 1]} : vector<2x128xf32> to vector<2x32xf32>
    %281 = math.tanh %280 : vector<2x32xf32>
    %282 = arith.mulf %278, %243 : vector<2x32xf32>
    %283 = arith.mulf %277, %281 : vector<2x32xf32>
    %284 = arith.addf %282, %283 : vector<2x32xf32>
    %285 = math.tanh %284 : vector<2x32xf32>
    %286 = arith.mulf %279, %285 : vector<2x32xf32>
    %cst_54 = arith.constant dense<0.000000e+00> : vector<2x128xf32>
    %287 = tpu.matmul %286, %16, %cst_54 {dimension_numbers = #tpu.dot_dimension_numbers<[1], [0], [0], [1], [0, 0, 1, 1], [], []>} : vector<2x32xf32>, vector<32x128xf32>, vector<2x128xf32> -> vector<2x128xf32>
    %cst_55 = arith.constant dense<0.000000e+00> : vector<2x128xf32>
    %288 = tpu.matmul %265, %17, %cst_55 {dimension_numbers = #tpu.dot_dimension_numbers<[1], [0], [0], [1], [0, 0, 1, 1], [], []>} : vector<2x32xf32>, vector<32x128xf32>, vector<2x128xf32> -> vector<2x128xf32>
    %289 = arith.addf %287, %288 : vector<2x128xf32>
    %290 = vector.broadcast %18 : vector<1x128xf32> to vector<2x128xf32>
    %291 = arith.addf %289, %290 : vector<2x128xf32>
    %292 = arith.negf %291 : vector<2x128xf32>
    %293 = math.exp %292 : vector<2x128xf32>
    %cst_56 = arith.constant 1.000000e+00 : f32
    %294 = vector.broadcast %cst_56 : f32 to vector<2x128xf32>
    %295 = arith.addf %294, %293 : vector<2x128xf32>
    %296 = arith.divf %294, %295 : vector<2x128xf32>
    %297 = vector.extract_strided_slice %296 {offsets = [0, 0], sizes = [2, 32], strides = [1, 1]} : vector<2x128xf32> to vector<2x32xf32>
    %298 = vector.extract_strided_slice %296 {offsets = [0, 32], sizes = [2, 32], strides = [1, 1]} : vector<2x128xf32> to vector<2x32xf32>
    %299 = vector.extract_strided_slice %296 {offsets = [0, 96], sizes = [2, 32], strides = [1, 1]} : vector<2x128xf32> to vector<2x32xf32>
    %300 = vector.extract_strided_slice %291 {offsets = [0, 64], sizes = [2, 32], strides = [1, 1]} : vector<2x128xf32> to vector<2x32xf32>
    %301 = math.tanh %300 : vector<2x32xf32>
    %302 = arith.mulf %298, %263 : vector<2x32xf32>
    %303 = arith.mulf %297, %301 : vector<2x32xf32>
    %304 = arith.addf %302, %303 : vector<2x32xf32>
    %305 = math.tanh %304 : vector<2x32xf32>
    %306 = arith.mulf %299, %305 : vector<2x32xf32>
    %307 = vector.extract_strided_slice %306 {offsets = [0, 0], sizes = [1, 32], strides = [1, 1]} : vector<2x32xf32> to vector<1x32xf32>
    %308 = vector.extract_strided_slice %306 {offsets = [1, 0], sizes = [1, 32], strides = [1, 1]} : vector<2x32xf32> to vector<1x32xf32>
    %309 = tpu.concatenate %307, %308 in 1 : vector<1x32xf32>, vector<1x32xf32> -> vector<1x64xf32>
    %310 = vector.extract_strided_slice %14 {offsets = [14, 0], sizes = [2, 128], strides = [1, 1]} : vector<32x128xf32> to vector<2x128xf32>
    %cst_57 = arith.constant dense<0.000000e+00> : vector<2x128xf32>
    %311 = tpu.matmul %286, %15, %cst_57 {dimension_numbers = #tpu.dot_dimension_numbers<[1], [0], [0], [1], [0, 0, 1, 1], [], []>} : vector<2x32xf32>, vector<32x128xf32>, vector<2x128xf32> -> vector<2x128xf32>
    %312 = arith.addf %310, %311 : vector<2x128xf32>
    %313 = arith.negf %312 : vector<2x128xf32>
    %314 = math.exp %313 : vector<2x128xf32>
    %cst_58 = arith.constant 1.000000e+00 : f32
    %315 = vector.broadcast %cst_58 : f32 to vector<2x128xf32>
    %316 = arith.addf %315, %314 : vector<2x128xf32>
    %317 = arith.divf %315, %316 : vector<2x128xf32>
    %318 = vector.extract_strided_slice %317 {offsets = [0, 0], sizes = [2, 32], strides = [1, 1]} : vector<2x128xf32> to vector<2x32xf32>
    %319 = vector.extract_strided_slice %317 {offsets = [0, 32], sizes = [2, 32], strides = [1, 1]} : vector<2x128xf32> to vector<2x32xf32>
    %320 = vector.extract_strided_slice %317 {offsets = [0, 96], sizes = [2, 32], strides = [1, 1]} : vector<2x128xf32> to vector<2x32xf32>
    %321 = vector.extract_strided_slice %312 {offsets = [0, 64], sizes = [2, 32], strides = [1, 1]} : vector<2x128xf32> to vector<2x32xf32>
    %322 = math.tanh %321 : vector<2x32xf32>
    %323 = arith.mulf %319, %284 : vector<2x32xf32>
    %324 = arith.mulf %318, %322 : vector<2x32xf32>
    %325 = arith.addf %323, %324 : vector<2x32xf32>
    %326 = math.tanh %325 : vector<2x32xf32>
    %327 = arith.mulf %320, %326 : vector<2x32xf32>
    %cst_59 = arith.constant dense<0.000000e+00> : vector<2x128xf32>
    %328 = tpu.matmul %327, %16, %cst_59 {dimension_numbers = #tpu.dot_dimension_numbers<[1], [0], [0], [1], [0, 0, 1, 1], [], []>} : vector<2x32xf32>, vector<32x128xf32>, vector<2x128xf32> -> vector<2x128xf32>
    %cst_60 = arith.constant dense<0.000000e+00> : vector<2x128xf32>
    %329 = tpu.matmul %306, %17, %cst_60 {dimension_numbers = #tpu.dot_dimension_numbers<[1], [0], [0], [1], [0, 0, 1, 1], [], []>} : vector<2x32xf32>, vector<32x128xf32>, vector<2x128xf32> -> vector<2x128xf32>
    %330 = arith.addf %328, %329 : vector<2x128xf32>
    %331 = vector.broadcast %18 : vector<1x128xf32> to vector<2x128xf32>
    %332 = arith.addf %330, %331 : vector<2x128xf32>
    %333 = arith.negf %332 : vector<2x128xf32>
    %334 = math.exp %333 : vector<2x128xf32>
    %cst_61 = arith.constant 1.000000e+00 : f32
    %335 = vector.broadcast %cst_61 : f32 to vector<2x128xf32>
    %336 = arith.addf %335, %334 : vector<2x128xf32>
    %337 = arith.divf %335, %336 : vector<2x128xf32>
    %338 = vector.extract_strided_slice %337 {offsets = [0, 0], sizes = [2, 32], strides = [1, 1]} : vector<2x128xf32> to vector<2x32xf32>
    %339 = vector.extract_strided_slice %337 {offsets = [0, 32], sizes = [2, 32], strides = [1, 1]} : vector<2x128xf32> to vector<2x32xf32>
    %340 = vector.extract_strided_slice %337 {offsets = [0, 96], sizes = [2, 32], strides = [1, 1]} : vector<2x128xf32> to vector<2x32xf32>
    %341 = vector.extract_strided_slice %332 {offsets = [0, 64], sizes = [2, 32], strides = [1, 1]} : vector<2x128xf32> to vector<2x32xf32>
    %342 = math.tanh %341 : vector<2x32xf32>
    %343 = arith.mulf %339, %304 : vector<2x32xf32>
    %344 = arith.mulf %338, %342 : vector<2x32xf32>
    %345 = arith.addf %343, %344 : vector<2x32xf32>
    %346 = math.tanh %345 : vector<2x32xf32>
    %347 = arith.mulf %340, %346 : vector<2x32xf32>
    %348 = vector.extract_strided_slice %347 {offsets = [0, 0], sizes = [1, 32], strides = [1, 1]} : vector<2x32xf32> to vector<1x32xf32>
    %349 = vector.extract_strided_slice %347 {offsets = [1, 0], sizes = [1, 32], strides = [1, 1]} : vector<2x32xf32> to vector<1x32xf32>
    %350 = tpu.concatenate %348, %349 in 1 : vector<1x32xf32>, vector<1x32xf32> -> vector<1x64xf32>
    %351 = vector.extract_strided_slice %14 {offsets = [16, 0], sizes = [2, 128], strides = [1, 1]} : vector<32x128xf32> to vector<2x128xf32>
    %cst_62 = arith.constant dense<0.000000e+00> : vector<2x128xf32>
    %352 = tpu.matmul %327, %15, %cst_62 {dimension_numbers = #tpu.dot_dimension_numbers<[1], [0], [0], [1], [0, 0, 1, 1], [], []>} : vector<2x32xf32>, vector<32x128xf32>, vector<2x128xf32> -> vector<2x128xf32>
    %353 = arith.addf %351, %352 : vector<2x128xf32>
    %354 = arith.negf %353 : vector<2x128xf32>
    %355 = math.exp %354 : vector<2x128xf32>
    %cst_63 = arith.constant 1.000000e+00 : f32
    %356 = vector.broadcast %cst_63 : f32 to vector<2x128xf32>
    %357 = arith.addf %356, %355 : vector<2x128xf32>
    %358 = arith.divf %356, %357 : vector<2x128xf32>
    %359 = vector.extract_strided_slice %358 {offsets = [0, 0], sizes = [2, 32], strides = [1, 1]} : vector<2x128xf32> to vector<2x32xf32>
    %360 = vector.extract_strided_slice %358 {offsets = [0, 32], sizes = [2, 32], strides = [1, 1]} : vector<2x128xf32> to vector<2x32xf32>
    %361 = vector.extract_strided_slice %358 {offsets = [0, 96], sizes = [2, 32], strides = [1, 1]} : vector<2x128xf32> to vector<2x32xf32>
    %362 = vector.extract_strided_slice %353 {offsets = [0, 64], sizes = [2, 32], strides = [1, 1]} : vector<2x128xf32> to vector<2x32xf32>
    %363 = math.tanh %362 : vector<2x32xf32>
    %364 = arith.mulf %360, %325 : vector<2x32xf32>
    %365 = arith.mulf %359, %363 : vector<2x32xf32>
    %366 = arith.addf %364, %365 : vector<2x32xf32>
    %367 = math.tanh %366 : vector<2x32xf32>
    %368 = arith.mulf %361, %367 : vector<2x32xf32>
    %cst_64 = arith.constant dense<0.000000e+00> : vector<2x128xf32>
    %369 = tpu.matmul %368, %16, %cst_64 {dimension_numbers = #tpu.dot_dimension_numbers<[1], [0], [0], [1], [0, 0, 1, 1], [], []>} : vector<2x32xf32>, vector<32x128xf32>, vector<2x128xf32> -> vector<2x128xf32>
    %cst_65 = arith.constant dense<0.000000e+00> : vector<2x128xf32>
    %370 = tpu.matmul %347, %17, %cst_65 {dimension_numbers = #tpu.dot_dimension_numbers<[1], [0], [0], [1], [0, 0, 1, 1], [], []>} : vector<2x32xf32>, vector<32x128xf32>, vector<2x128xf32> -> vector<2x128xf32>
    %371 = arith.addf %369, %370 : vector<2x128xf32>
    %372 = vector.broadcast %18 : vector<1x128xf32> to vector<2x128xf32>
    %373 = arith.addf %371, %372 : vector<2x128xf32>
    %374 = arith.negf %373 : vector<2x128xf32>
    %375 = math.exp %374 : vector<2x128xf32>
    %cst_66 = arith.constant 1.000000e+00 : f32
    %376 = vector.broadcast %cst_66 : f32 to vector<2x128xf32>
    %377 = arith.addf %376, %375 : vector<2x128xf32>
    %378 = arith.divf %376, %377 : vector<2x128xf32>
    %379 = vector.extract_strided_slice %378 {offsets = [0, 0], sizes = [2, 32], strides = [1, 1]} : vector<2x128xf32> to vector<2x32xf32>
    %380 = vector.extract_strided_slice %378 {offsets = [0, 32], sizes = [2, 32], strides = [1, 1]} : vector<2x128xf32> to vector<2x32xf32>
    %381 = vector.extract_strided_slice %378 {offsets = [0, 96], sizes = [2, 32], strides = [1, 1]} : vector<2x128xf32> to vector<2x32xf32>
    %382 = vector.extract_strided_slice %373 {offsets = [0, 64], sizes = [2, 32], strides = [1, 1]} : vector<2x128xf32> to vector<2x32xf32>
    %383 = math.tanh %382 : vector<2x32xf32>
    %384 = arith.mulf %380, %345 : vector<2x32xf32>
    %385 = arith.mulf %379, %383 : vector<2x32xf32>
    %386 = arith.addf %384, %385 : vector<2x32xf32>
    %387 = math.tanh %386 : vector<2x32xf32>
    %388 = arith.mulf %381, %387 : vector<2x32xf32>
    %389 = vector.extract_strided_slice %388 {offsets = [0, 0], sizes = [1, 32], strides = [1, 1]} : vector<2x32xf32> to vector<1x32xf32>
    %390 = vector.extract_strided_slice %388 {offsets = [1, 0], sizes = [1, 32], strides = [1, 1]} : vector<2x32xf32> to vector<1x32xf32>
    %391 = tpu.concatenate %389, %390 in 1 : vector<1x32xf32>, vector<1x32xf32> -> vector<1x64xf32>
    %392 = vector.extract_strided_slice %14 {offsets = [18, 0], sizes = [2, 128], strides = [1, 1]} : vector<32x128xf32> to vector<2x128xf32>
    %cst_67 = arith.constant dense<0.000000e+00> : vector<2x128xf32>
    %393 = tpu.matmul %368, %15, %cst_67 {dimension_numbers = #tpu.dot_dimension_numbers<[1], [0], [0], [1], [0, 0, 1, 1], [], []>} : vector<2x32xf32>, vector<32x128xf32>, vector<2x128xf32> -> vector<2x128xf32>
    %394 = arith.addf %392, %393 : vector<2x128xf32>
    %395 = arith.negf %394 : vector<2x128xf32>
    %396 = math.exp %395 : vector<2x128xf32>
    %cst_68 = arith.constant 1.000000e+00 : f32
    %397 = vector.broadcast %cst_68 : f32 to vector<2x128xf32>
    %398 = arith.addf %397, %396 : vector<2x128xf32>
    %399 = arith.divf %397, %398 : vector<2x128xf32>
    %400 = vector.extract_strided_slice %399 {offsets = [0, 0], sizes = [2, 32], strides = [1, 1]} : vector<2x128xf32> to vector<2x32xf32>
    %401 = vector.extract_strided_slice %399 {offsets = [0, 32], sizes = [2, 32], strides = [1, 1]} : vector<2x128xf32> to vector<2x32xf32>
    %402 = vector.extract_strided_slice %399 {offsets = [0, 96], sizes = [2, 32], strides = [1, 1]} : vector<2x128xf32> to vector<2x32xf32>
    %403 = vector.extract_strided_slice %394 {offsets = [0, 64], sizes = [2, 32], strides = [1, 1]} : vector<2x128xf32> to vector<2x32xf32>
    %404 = math.tanh %403 : vector<2x32xf32>
    %405 = arith.mulf %401, %366 : vector<2x32xf32>
    %406 = arith.mulf %400, %404 : vector<2x32xf32>
    %407 = arith.addf %405, %406 : vector<2x32xf32>
    %408 = math.tanh %407 : vector<2x32xf32>
    %409 = arith.mulf %402, %408 : vector<2x32xf32>
    %cst_69 = arith.constant dense<0.000000e+00> : vector<2x128xf32>
    %410 = tpu.matmul %409, %16, %cst_69 {dimension_numbers = #tpu.dot_dimension_numbers<[1], [0], [0], [1], [0, 0, 1, 1], [], []>} : vector<2x32xf32>, vector<32x128xf32>, vector<2x128xf32> -> vector<2x128xf32>
    %cst_70 = arith.constant dense<0.000000e+00> : vector<2x128xf32>
    %411 = tpu.matmul %388, %17, %cst_70 {dimension_numbers = #tpu.dot_dimension_numbers<[1], [0], [0], [1], [0, 0, 1, 1], [], []>} : vector<2x32xf32>, vector<32x128xf32>, vector<2x128xf32> -> vector<2x128xf32>
    %412 = arith.addf %410, %411 : vector<2x128xf32>
    %413 = vector.broadcast %18 : vector<1x128xf32> to vector<2x128xf32>
    %414 = arith.addf %412, %413 : vector<2x128xf32>
    %415 = arith.negf %414 : vector<2x128xf32>
    %416 = math.exp %415 : vector<2x128xf32>
    %cst_71 = arith.constant 1.000000e+00 : f32
    %417 = vector.broadcast %cst_71 : f32 to vector<2x128xf32>
    %418 = arith.addf %417, %416 : vector<2x128xf32>
    %419 = arith.divf %417, %418 : vector<2x128xf32>
    %420 = vector.extract_strided_slice %419 {offsets = [0, 0], sizes = [2, 32], strides = [1, 1]} : vector<2x128xf32> to vector<2x32xf32>
    %421 = vector.extract_strided_slice %419 {offsets = [0, 32], sizes = [2, 32], strides = [1, 1]} : vector<2x128xf32> to vector<2x32xf32>
    %422 = vector.extract_strided_slice %419 {offsets = [0, 96], sizes = [2, 32], strides = [1, 1]} : vector<2x128xf32> to vector<2x32xf32>
    %423 = vector.extract_strided_slice %414 {offsets = [0, 64], sizes = [2, 32], strides = [1, 1]} : vector<2x128xf32> to vector<2x32xf32>
    %424 = math.tanh %423 : vector<2x32xf32>
    %425 = arith.mulf %421, %386 : vector<2x32xf32>
    %426 = arith.mulf %420, %424 : vector<2x32xf32>
    %427 = arith.addf %425, %426 : vector<2x32xf32>
    %428 = math.tanh %427 : vector<2x32xf32>
    %429 = arith.mulf %422, %428 : vector<2x32xf32>
    %430 = vector.extract_strided_slice %429 {offsets = [0, 0], sizes = [1, 32], strides = [1, 1]} : vector<2x32xf32> to vector<1x32xf32>
    %431 = vector.extract_strided_slice %429 {offsets = [1, 0], sizes = [1, 32], strides = [1, 1]} : vector<2x32xf32> to vector<1x32xf32>
    %432 = tpu.concatenate %430, %431 in 1 : vector<1x32xf32>, vector<1x32xf32> -> vector<1x64xf32>
    %433 = vector.extract_strided_slice %14 {offsets = [20, 0], sizes = [2, 128], strides = [1, 1]} : vector<32x128xf32> to vector<2x128xf32>
    %cst_72 = arith.constant dense<0.000000e+00> : vector<2x128xf32>
    %434 = tpu.matmul %409, %15, %cst_72 {dimension_numbers = #tpu.dot_dimension_numbers<[1], [0], [0], [1], [0, 0, 1, 1], [], []>} : vector<2x32xf32>, vector<32x128xf32>, vector<2x128xf32> -> vector<2x128xf32>
    %435 = arith.addf %433, %434 : vector<2x128xf32>
    %436 = arith.negf %435 : vector<2x128xf32>
    %437 = math.exp %436 : vector<2x128xf32>
    %cst_73 = arith.constant 1.000000e+00 : f32
    %438 = vector.broadcast %cst_73 : f32 to vector<2x128xf32>
    %439 = arith.addf %438, %437 : vector<2x128xf32>
    %440 = arith.divf %438, %439 : vector<2x128xf32>
    %441 = vector.extract_strided_slice %440 {offsets = [0, 0], sizes = [2, 32], strides = [1, 1]} : vector<2x128xf32> to vector<2x32xf32>
    %442 = vector.extract_strided_slice %440 {offsets = [0, 32], sizes = [2, 32], strides = [1, 1]} : vector<2x128xf32> to vector<2x32xf32>
    %443 = vector.extract_strided_slice %440 {offsets = [0, 96], sizes = [2, 32], strides = [1, 1]} : vector<2x128xf32> to vector<2x32xf32>
    %444 = vector.extract_strided_slice %435 {offsets = [0, 64], sizes = [2, 32], strides = [1, 1]} : vector<2x128xf32> to vector<2x32xf32>
    %445 = math.tanh %444 : vector<2x32xf32>
    %446 = arith.mulf %442, %407 : vector<2x32xf32>
    %447 = arith.mulf %441, %445 : vector<2x32xf32>
    %448 = arith.addf %446, %447 : vector<2x32xf32>
    %449 = math.tanh %448 : vector<2x32xf32>
    %450 = arith.mulf %443, %449 : vector<2x32xf32>
    %cst_74 = arith.constant dense<0.000000e+00> : vector<2x128xf32>
    %451 = tpu.matmul %450, %16, %cst_74 {dimension_numbers = #tpu.dot_dimension_numbers<[1], [0], [0], [1], [0, 0, 1, 1], [], []>} : vector<2x32xf32>, vector<32x128xf32>, vector<2x128xf32> -> vector<2x128xf32>
    %cst_75 = arith.constant dense<0.000000e+00> : vector<2x128xf32>
    %452 = tpu.matmul %429, %17, %cst_75 {dimension_numbers = #tpu.dot_dimension_numbers<[1], [0], [0], [1], [0, 0, 1, 1], [], []>} : vector<2x32xf32>, vector<32x128xf32>, vector<2x128xf32> -> vector<2x128xf32>
    %453 = arith.addf %451, %452 : vector<2x128xf32>
    %454 = vector.broadcast %18 : vector<1x128xf32> to vector<2x128xf32>
    %455 = arith.addf %453, %454 : vector<2x128xf32>
    %456 = arith.negf %455 : vector<2x128xf32>
    %457 = math.exp %456 : vector<2x128xf32>
    %cst_76 = arith.constant 1.000000e+00 : f32
    %458 = vector.broadcast %cst_76 : f32 to vector<2x128xf32>
    %459 = arith.addf %458, %457 : vector<2x128xf32>
    %460 = arith.divf %458, %459 : vector<2x128xf32>
    %461 = vector.extract_strided_slice %460 {offsets = [0, 0], sizes = [2, 32], strides = [1, 1]} : vector<2x128xf32> to vector<2x32xf32>
    %462 = vector.extract_strided_slice %460 {offsets = [0, 32], sizes = [2, 32], strides = [1, 1]} : vector<2x128xf32> to vector<2x32xf32>
    %463 = vector.extract_strided_slice %460 {offsets = [0, 96], sizes = [2, 32], strides = [1, 1]} : vector<2x128xf32> to vector<2x32xf32>
    %464 = vector.extract_strided_slice %455 {offsets = [0, 64], sizes = [2, 32], strides = [1, 1]} : vector<2x128xf32> to vector<2x32xf32>
    %465 = math.tanh %464 : vector<2x32xf32>
    %466 = arith.mulf %462, %427 : vector<2x32xf32>
    %467 = arith.mulf %461, %465 : vector<2x32xf32>
    %468 = arith.addf %466, %467 : vector<2x32xf32>
    %469 = math.tanh %468 : vector<2x32xf32>
    %470 = arith.mulf %463, %469 : vector<2x32xf32>
    %471 = vector.extract_strided_slice %470 {offsets = [0, 0], sizes = [1, 32], strides = [1, 1]} : vector<2x32xf32> to vector<1x32xf32>
    %472 = vector.extract_strided_slice %470 {offsets = [1, 0], sizes = [1, 32], strides = [1, 1]} : vector<2x32xf32> to vector<1x32xf32>
    %473 = tpu.concatenate %471, %472 in 1 : vector<1x32xf32>, vector<1x32xf32> -> vector<1x64xf32>
    %474 = vector.extract_strided_slice %14 {offsets = [22, 0], sizes = [2, 128], strides = [1, 1]} : vector<32x128xf32> to vector<2x128xf32>
    %cst_77 = arith.constant dense<0.000000e+00> : vector<2x128xf32>
    %475 = tpu.matmul %450, %15, %cst_77 {dimension_numbers = #tpu.dot_dimension_numbers<[1], [0], [0], [1], [0, 0, 1, 1], [], []>} : vector<2x32xf32>, vector<32x128xf32>, vector<2x128xf32> -> vector<2x128xf32>
    %476 = arith.addf %474, %475 : vector<2x128xf32>
    %477 = arith.negf %476 : vector<2x128xf32>
    %478 = math.exp %477 : vector<2x128xf32>
    %cst_78 = arith.constant 1.000000e+00 : f32
    %479 = vector.broadcast %cst_78 : f32 to vector<2x128xf32>
    %480 = arith.addf %479, %478 : vector<2x128xf32>
    %481 = arith.divf %479, %480 : vector<2x128xf32>
    %482 = vector.extract_strided_slice %481 {offsets = [0, 0], sizes = [2, 32], strides = [1, 1]} : vector<2x128xf32> to vector<2x32xf32>
    %483 = vector.extract_strided_slice %481 {offsets = [0, 32], sizes = [2, 32], strides = [1, 1]} : vector<2x128xf32> to vector<2x32xf32>
    %484 = vector.extract_strided_slice %481 {offsets = [0, 96], sizes = [2, 32], strides = [1, 1]} : vector<2x128xf32> to vector<2x32xf32>
    %485 = vector.extract_strided_slice %476 {offsets = [0, 64], sizes = [2, 32], strides = [1, 1]} : vector<2x128xf32> to vector<2x32xf32>
    %486 = math.tanh %485 : vector<2x32xf32>
    %487 = arith.mulf %483, %448 : vector<2x32xf32>
    %488 = arith.mulf %482, %486 : vector<2x32xf32>
    %489 = arith.addf %487, %488 : vector<2x32xf32>
    %490 = math.tanh %489 : vector<2x32xf32>
    %491 = arith.mulf %484, %490 : vector<2x32xf32>
    %cst_79 = arith.constant dense<0.000000e+00> : vector<2x128xf32>
    %492 = tpu.matmul %491, %16, %cst_79 {dimension_numbers = #tpu.dot_dimension_numbers<[1], [0], [0], [1], [0, 0, 1, 1], [], []>} : vector<2x32xf32>, vector<32x128xf32>, vector<2x128xf32> -> vector<2x128xf32>
    %cst_80 = arith.constant dense<0.000000e+00> : vector<2x128xf32>
    %493 = tpu.matmul %470, %17, %cst_80 {dimension_numbers = #tpu.dot_dimension_numbers<[1], [0], [0], [1], [0, 0, 1, 1], [], []>} : vector<2x32xf32>, vector<32x128xf32>, vector<2x128xf32> -> vector<2x128xf32>
    %494 = arith.addf %492, %493 : vector<2x128xf32>
    %495 = vector.broadcast %18 : vector<1x128xf32> to vector<2x128xf32>
    %496 = arith.addf %494, %495 : vector<2x128xf32>
    %497 = arith.negf %496 : vector<2x128xf32>
    %498 = math.exp %497 : vector<2x128xf32>
    %cst_81 = arith.constant 1.000000e+00 : f32
    %499 = vector.broadcast %cst_81 : f32 to vector<2x128xf32>
    %500 = arith.addf %499, %498 : vector<2x128xf32>
    %501 = arith.divf %499, %500 : vector<2x128xf32>
    %502 = vector.extract_strided_slice %501 {offsets = [0, 0], sizes = [2, 32], strides = [1, 1]} : vector<2x128xf32> to vector<2x32xf32>
    %503 = vector.extract_strided_slice %501 {offsets = [0, 32], sizes = [2, 32], strides = [1, 1]} : vector<2x128xf32> to vector<2x32xf32>
    %504 = vector.extract_strided_slice %501 {offsets = [0, 96], sizes = [2, 32], strides = [1, 1]} : vector<2x128xf32> to vector<2x32xf32>
    %505 = vector.extract_strided_slice %496 {offsets = [0, 64], sizes = [2, 32], strides = [1, 1]} : vector<2x128xf32> to vector<2x32xf32>
    %506 = math.tanh %505 : vector<2x32xf32>
    %507 = arith.mulf %503, %468 : vector<2x32xf32>
    %508 = arith.mulf %502, %506 : vector<2x32xf32>
    %509 = arith.addf %507, %508 : vector<2x32xf32>
    %510 = math.tanh %509 : vector<2x32xf32>
    %511 = arith.mulf %504, %510 : vector<2x32xf32>
    %512 = vector.extract_strided_slice %511 {offsets = [0, 0], sizes = [1, 32], strides = [1, 1]} : vector<2x32xf32> to vector<1x32xf32>
    %513 = vector.extract_strided_slice %511 {offsets = [1, 0], sizes = [1, 32], strides = [1, 1]} : vector<2x32xf32> to vector<1x32xf32>
    %514 = tpu.concatenate %512, %513 in 1 : vector<1x32xf32>, vector<1x32xf32> -> vector<1x64xf32>
    %515 = vector.extract_strided_slice %14 {offsets = [24, 0], sizes = [2, 128], strides = [1, 1]} : vector<32x128xf32> to vector<2x128xf32>
    %cst_82 = arith.constant dense<0.000000e+00> : vector<2x128xf32>
    %516 = tpu.matmul %491, %15, %cst_82 {dimension_numbers = #tpu.dot_dimension_numbers<[1], [0], [0], [1], [0, 0, 1, 1], [], []>} : vector<2x32xf32>, vector<32x128xf32>, vector<2x128xf32> -> vector<2x128xf32>
    %517 = arith.addf %515, %516 : vector<2x128xf32>
    %518 = arith.negf %517 : vector<2x128xf32>
    %519 = math.exp %518 : vector<2x128xf32>
    %cst_83 = arith.constant 1.000000e+00 : f32
    %520 = vector.broadcast %cst_83 : f32 to vector<2x128xf32>
    %521 = arith.addf %520, %519 : vector<2x128xf32>
    %522 = arith.divf %520, %521 : vector<2x128xf32>
    %523 = vector.extract_strided_slice %522 {offsets = [0, 0], sizes = [2, 32], strides = [1, 1]} : vector<2x128xf32> to vector<2x32xf32>
    %524 = vector.extract_strided_slice %522 {offsets = [0, 32], sizes = [2, 32], strides = [1, 1]} : vector<2x128xf32> to vector<2x32xf32>
    %525 = vector.extract_strided_slice %522 {offsets = [0, 96], sizes = [2, 32], strides = [1, 1]} : vector<2x128xf32> to vector<2x32xf32>
    %526 = vector.extract_strided_slice %517 {offsets = [0, 64], sizes = [2, 32], strides = [1, 1]} : vector<2x128xf32> to vector<2x32xf32>
    %527 = math.tanh %526 : vector<2x32xf32>
    %528 = arith.mulf %524, %489 : vector<2x32xf32>
    %529 = arith.mulf %523, %527 : vector<2x32xf32>
    %530 = arith.addf %528, %529 : vector<2x32xf32>
    %531 = math.tanh %530 : vector<2x32xf32>
    %532 = arith.mulf %525, %531 : vector<2x32xf32>
    %cst_84 = arith.constant dense<0.000000e+00> : vector<2x128xf32>
    %533 = tpu.matmul %532, %16, %cst_84 {dimension_numbers = #tpu.dot_dimension_numbers<[1], [0], [0], [1], [0, 0, 1, 1], [], []>} : vector<2x32xf32>, vector<32x128xf32>, vector<2x128xf32> -> vector<2x128xf32>
    %cst_85 = arith.constant dense<0.000000e+00> : vector<2x128xf32>
    %534 = tpu.matmul %511, %17, %cst_85 {dimension_numbers = #tpu.dot_dimension_numbers<[1], [0], [0], [1], [0, 0, 1, 1], [], []>} : vector<2x32xf32>, vector<32x128xf32>, vector<2x128xf32> -> vector<2x128xf32>
    %535 = arith.addf %533, %534 : vector<2x128xf32>
    %536 = vector.broadcast %18 : vector<1x128xf32> to vector<2x128xf32>
    %537 = arith.addf %535, %536 : vector<2x128xf32>
    %538 = arith.negf %537 : vector<2x128xf32>
    %539 = math.exp %538 : vector<2x128xf32>
    %cst_86 = arith.constant 1.000000e+00 : f32
    %540 = vector.broadcast %cst_86 : f32 to vector<2x128xf32>
    %541 = arith.addf %540, %539 : vector<2x128xf32>
    %542 = arith.divf %540, %541 : vector<2x128xf32>
    %543 = vector.extract_strided_slice %542 {offsets = [0, 0], sizes = [2, 32], strides = [1, 1]} : vector<2x128xf32> to vector<2x32xf32>
    %544 = vector.extract_strided_slice %542 {offsets = [0, 32], sizes = [2, 32], strides = [1, 1]} : vector<2x128xf32> to vector<2x32xf32>
    %545 = vector.extract_strided_slice %542 {offsets = [0, 96], sizes = [2, 32], strides = [1, 1]} : vector<2x128xf32> to vector<2x32xf32>
    %546 = vector.extract_strided_slice %537 {offsets = [0, 64], sizes = [2, 32], strides = [1, 1]} : vector<2x128xf32> to vector<2x32xf32>
    %547 = math.tanh %546 : vector<2x32xf32>
    %548 = arith.mulf %544, %509 : vector<2x32xf32>
    %549 = arith.mulf %543, %547 : vector<2x32xf32>
    %550 = arith.addf %548, %549 : vector<2x32xf32>
    %551 = math.tanh %550 : vector<2x32xf32>
    %552 = arith.mulf %545, %551 : vector<2x32xf32>
    %553 = vector.extract_strided_slice %552 {offsets = [0, 0], sizes = [1, 32], strides = [1, 1]} : vector<2x32xf32> to vector<1x32xf32>
    %554 = vector.extract_strided_slice %552 {offsets = [1, 0], sizes = [1, 32], strides = [1, 1]} : vector<2x32xf32> to vector<1x32xf32>
    %555 = tpu.concatenate %553, %554 in 1 : vector<1x32xf32>, vector<1x32xf32> -> vector<1x64xf32>
    %556 = vector.extract_strided_slice %14 {offsets = [26, 0], sizes = [2, 128], strides = [1, 1]} : vector<32x128xf32> to vector<2x128xf32>
    %cst_87 = arith.constant dense<0.000000e+00> : vector<2x128xf32>
    %557 = tpu.matmul %532, %15, %cst_87 {dimension_numbers = #tpu.dot_dimension_numbers<[1], [0], [0], [1], [0, 0, 1, 1], [], []>} : vector<2x32xf32>, vector<32x128xf32>, vector<2x128xf32> -> vector<2x128xf32>
    %558 = arith.addf %556, %557 : vector<2x128xf32>
    %559 = arith.negf %558 : vector<2x128xf32>
    %560 = math.exp %559 : vector<2x128xf32>
    %cst_88 = arith.constant 1.000000e+00 : f32
    %561 = vector.broadcast %cst_88 : f32 to vector<2x128xf32>
    %562 = arith.addf %561, %560 : vector<2x128xf32>
    %563 = arith.divf %561, %562 : vector<2x128xf32>
    %564 = vector.extract_strided_slice %563 {offsets = [0, 0], sizes = [2, 32], strides = [1, 1]} : vector<2x128xf32> to vector<2x32xf32>
    %565 = vector.extract_strided_slice %563 {offsets = [0, 32], sizes = [2, 32], strides = [1, 1]} : vector<2x128xf32> to vector<2x32xf32>
    %566 = vector.extract_strided_slice %563 {offsets = [0, 96], sizes = [2, 32], strides = [1, 1]} : vector<2x128xf32> to vector<2x32xf32>
    %567 = vector.extract_strided_slice %558 {offsets = [0, 64], sizes = [2, 32], strides = [1, 1]} : vector<2x128xf32> to vector<2x32xf32>
    %568 = math.tanh %567 : vector<2x32xf32>
    %569 = arith.mulf %565, %530 : vector<2x32xf32>
    %570 = arith.mulf %564, %568 : vector<2x32xf32>
    %571 = arith.addf %569, %570 : vector<2x32xf32>
    %572 = math.tanh %571 : vector<2x32xf32>
    %573 = arith.mulf %566, %572 : vector<2x32xf32>
    %cst_89 = arith.constant dense<0.000000e+00> : vector<2x128xf32>
    %574 = tpu.matmul %573, %16, %cst_89 {dimension_numbers = #tpu.dot_dimension_numbers<[1], [0], [0], [1], [0, 0, 1, 1], [], []>} : vector<2x32xf32>, vector<32x128xf32>, vector<2x128xf32> -> vector<2x128xf32>
    %cst_90 = arith.constant dense<0.000000e+00> : vector<2x128xf32>
    %575 = tpu.matmul %552, %17, %cst_90 {dimension_numbers = #tpu.dot_dimension_numbers<[1], [0], [0], [1], [0, 0, 1, 1], [], []>} : vector<2x32xf32>, vector<32x128xf32>, vector<2x128xf32> -> vector<2x128xf32>
    %576 = arith.addf %574, %575 : vector<2x128xf32>
    %577 = vector.broadcast %18 : vector<1x128xf32> to vector<2x128xf32>
    %578 = arith.addf %576, %577 : vector<2x128xf32>
    %579 = arith.negf %578 : vector<2x128xf32>
    %580 = math.exp %579 : vector<2x128xf32>
    %cst_91 = arith.constant 1.000000e+00 : f32
    %581 = vector.broadcast %cst_91 : f32 to vector<2x128xf32>
    %582 = arith.addf %581, %580 : vector<2x128xf32>
    %583 = arith.divf %581, %582 : vector<2x128xf32>
    %584 = vector.extract_strided_slice %583 {offsets = [0, 0], sizes = [2, 32], strides = [1, 1]} : vector<2x128xf32> to vector<2x32xf32>
    %585 = vector.extract_strided_slice %583 {offsets = [0, 32], sizes = [2, 32], strides = [1, 1]} : vector<2x128xf32> to vector<2x32xf32>
    %586 = vector.extract_strided_slice %583 {offsets = [0, 96], sizes = [2, 32], strides = [1, 1]} : vector<2x128xf32> to vector<2x32xf32>
    %587 = vector.extract_strided_slice %578 {offsets = [0, 64], sizes = [2, 32], strides = [1, 1]} : vector<2x128xf32> to vector<2x32xf32>
    %588 = math.tanh %587 : vector<2x32xf32>
    %589 = arith.mulf %585, %550 : vector<2x32xf32>
    %590 = arith.mulf %584, %588 : vector<2x32xf32>
    %591 = arith.addf %589, %590 : vector<2x32xf32>
    %592 = math.tanh %591 : vector<2x32xf32>
    %593 = arith.mulf %586, %592 : vector<2x32xf32>
    %594 = vector.extract_strided_slice %593 {offsets = [0, 0], sizes = [1, 32], strides = [1, 1]} : vector<2x32xf32> to vector<1x32xf32>
    %595 = vector.extract_strided_slice %593 {offsets = [1, 0], sizes = [1, 32], strides = [1, 1]} : vector<2x32xf32> to vector<1x32xf32>
    %596 = tpu.concatenate %594, %595 in 1 : vector<1x32xf32>, vector<1x32xf32> -> vector<1x64xf32>
    %597 = vector.extract_strided_slice %14 {offsets = [28, 0], sizes = [2, 128], strides = [1, 1]} : vector<32x128xf32> to vector<2x128xf32>
    %cst_92 = arith.constant dense<0.000000e+00> : vector<2x128xf32>
    %598 = tpu.matmul %573, %15, %cst_92 {dimension_numbers = #tpu.dot_dimension_numbers<[1], [0], [0], [1], [0, 0, 1, 1], [], []>} : vector<2x32xf32>, vector<32x128xf32>, vector<2x128xf32> -> vector<2x128xf32>
    %599 = arith.addf %597, %598 : vector<2x128xf32>
    %600 = arith.negf %599 : vector<2x128xf32>
    %601 = math.exp %600 : vector<2x128xf32>
    %cst_93 = arith.constant 1.000000e+00 : f32
    %602 = vector.broadcast %cst_93 : f32 to vector<2x128xf32>
    %603 = arith.addf %602, %601 : vector<2x128xf32>
    %604 = arith.divf %602, %603 : vector<2x128xf32>
    %605 = vector.extract_strided_slice %604 {offsets = [0, 0], sizes = [2, 32], strides = [1, 1]} : vector<2x128xf32> to vector<2x32xf32>
    %606 = vector.extract_strided_slice %604 {offsets = [0, 32], sizes = [2, 32], strides = [1, 1]} : vector<2x128xf32> to vector<2x32xf32>
    %607 = vector.extract_strided_slice %604 {offsets = [0, 96], sizes = [2, 32], strides = [1, 1]} : vector<2x128xf32> to vector<2x32xf32>
    %608 = vector.extract_strided_slice %599 {offsets = [0, 64], sizes = [2, 32], strides = [1, 1]} : vector<2x128xf32> to vector<2x32xf32>
    %609 = math.tanh %608 : vector<2x32xf32>
    %610 = arith.mulf %606, %571 : vector<2x32xf32>
    %611 = arith.mulf %605, %609 : vector<2x32xf32>
    %612 = arith.addf %610, %611 : vector<2x32xf32>
    %613 = math.tanh %612 : vector<2x32xf32>
    %614 = arith.mulf %607, %613 : vector<2x32xf32>
    %cst_94 = arith.constant dense<0.000000e+00> : vector<2x128xf32>
    %615 = tpu.matmul %614, %16, %cst_94 {dimension_numbers = #tpu.dot_dimension_numbers<[1], [0], [0], [1], [0, 0, 1, 1], [], []>} : vector<2x32xf32>, vector<32x128xf32>, vector<2x128xf32> -> vector<2x128xf32>
    %cst_95 = arith.constant dense<0.000000e+00> : vector<2x128xf32>
    %616 = tpu.matmul %593, %17, %cst_95 {dimension_numbers = #tpu.dot_dimension_numbers<[1], [0], [0], [1], [0, 0, 1, 1], [], []>} : vector<2x32xf32>, vector<32x128xf32>, vector<2x128xf32> -> vector<2x128xf32>
    %617 = arith.addf %615, %616 : vector<2x128xf32>
    %618 = vector.broadcast %18 : vector<1x128xf32> to vector<2x128xf32>
    %619 = arith.addf %617, %618 : vector<2x128xf32>
    %620 = arith.negf %619 : vector<2x128xf32>
    %621 = math.exp %620 : vector<2x128xf32>
    %cst_96 = arith.constant 1.000000e+00 : f32
    %622 = vector.broadcast %cst_96 : f32 to vector<2x128xf32>
    %623 = arith.addf %622, %621 : vector<2x128xf32>
    %624 = arith.divf %622, %623 : vector<2x128xf32>
    %625 = vector.extract_strided_slice %624 {offsets = [0, 0], sizes = [2, 32], strides = [1, 1]} : vector<2x128xf32> to vector<2x32xf32>
    %626 = vector.extract_strided_slice %624 {offsets = [0, 32], sizes = [2, 32], strides = [1, 1]} : vector<2x128xf32> to vector<2x32xf32>
    %627 = vector.extract_strided_slice %624 {offsets = [0, 96], sizes = [2, 32], strides = [1, 1]} : vector<2x128xf32> to vector<2x32xf32>
    %628 = vector.extract_strided_slice %619 {offsets = [0, 64], sizes = [2, 32], strides = [1, 1]} : vector<2x128xf32> to vector<2x32xf32>
    %629 = math.tanh %628 : vector<2x32xf32>
    %630 = arith.mulf %626, %591 : vector<2x32xf32>
    %631 = arith.mulf %625, %629 : vector<2x32xf32>
    %632 = arith.addf %630, %631 : vector<2x32xf32>
    %633 = math.tanh %632 : vector<2x32xf32>
    %634 = arith.mulf %627, %633 : vector<2x32xf32>
    %635 = vector.extract_strided_slice %634 {offsets = [0, 0], sizes = [1, 32], strides = [1, 1]} : vector<2x32xf32> to vector<1x32xf32>
    %636 = vector.extract_strided_slice %634 {offsets = [1, 0], sizes = [1, 32], strides = [1, 1]} : vector<2x32xf32> to vector<1x32xf32>
    %637 = tpu.concatenate %635, %636 in 1 : vector<1x32xf32>, vector<1x32xf32> -> vector<1x64xf32>
    %638 = vector.extract_strided_slice %14 {offsets = [30, 0], sizes = [2, 128], strides = [1, 1]} : vector<32x128xf32> to vector<2x128xf32>
    %cst_97 = arith.constant dense<0.000000e+00> : vector<2x128xf32>
    %639 = tpu.matmul %614, %15, %cst_97 {dimension_numbers = #tpu.dot_dimension_numbers<[1], [0], [0], [1], [0, 0, 1, 1], [], []>} : vector<2x32xf32>, vector<32x128xf32>, vector<2x128xf32> -> vector<2x128xf32>
    %640 = arith.addf %638, %639 : vector<2x128xf32>
    %641 = arith.negf %640 : vector<2x128xf32>
    %642 = math.exp %641 : vector<2x128xf32>
    %cst_98 = arith.constant 1.000000e+00 : f32
    %643 = vector.broadcast %cst_98 : f32 to vector<2x128xf32>
    %644 = arith.addf %643, %642 : vector<2x128xf32>
    %645 = arith.divf %643, %644 : vector<2x128xf32>
    %646 = vector.extract_strided_slice %645 {offsets = [0, 0], sizes = [2, 32], strides = [1, 1]} : vector<2x128xf32> to vector<2x32xf32>
    %647 = vector.extract_strided_slice %645 {offsets = [0, 32], sizes = [2, 32], strides = [1, 1]} : vector<2x128xf32> to vector<2x32xf32>
    %648 = vector.extract_strided_slice %645 {offsets = [0, 96], sizes = [2, 32], strides = [1, 1]} : vector<2x128xf32> to vector<2x32xf32>
    %649 = vector.extract_strided_slice %640 {offsets = [0, 64], sizes = [2, 32], strides = [1, 1]} : vector<2x128xf32> to vector<2x32xf32>
    %650 = math.tanh %649 : vector<2x32xf32>
    %651 = arith.mulf %647, %612 : vector<2x32xf32>
    %652 = arith.mulf %646, %650 : vector<2x32xf32>
    %653 = arith.addf %651, %652 : vector<2x32xf32>
    %654 = math.tanh %653 : vector<2x32xf32>
    %655 = arith.mulf %648, %654 : vector<2x32xf32>
    %cst_99 = arith.constant dense<0.000000e+00> : vector<2x128xf32>
    %656 = tpu.matmul %655, %16, %cst_99 {dimension_numbers = #tpu.dot_dimension_numbers<[1], [0], [0], [1], [0, 0, 1, 1], [], []>} : vector<2x32xf32>, vector<32x128xf32>, vector<2x128xf32> -> vector<2x128xf32>
    %cst_100 = arith.constant dense<0.000000e+00> : vector<2x128xf32>
    %657 = tpu.matmul %634, %17, %cst_100 {dimension_numbers = #tpu.dot_dimension_numbers<[1], [0], [0], [1], [0, 0, 1, 1], [], []>} : vector<2x32xf32>, vector<32x128xf32>, vector<2x128xf32> -> vector<2x128xf32>
    %658 = arith.addf %656, %657 : vector<2x128xf32>
    %659 = vector.broadcast %18 : vector<1x128xf32> to vector<2x128xf32>
    %660 = arith.addf %658, %659 : vector<2x128xf32>
    %661 = arith.negf %660 : vector<2x128xf32>
    %662 = math.exp %661 : vector<2x128xf32>
    %cst_101 = arith.constant 1.000000e+00 : f32
    %663 = vector.broadcast %cst_101 : f32 to vector<2x128xf32>
    %664 = arith.addf %663, %662 : vector<2x128xf32>
    %665 = arith.divf %663, %664 : vector<2x128xf32>
    %666 = vector.extract_strided_slice %665 {offsets = [0, 0], sizes = [2, 32], strides = [1, 1]} : vector<2x128xf32> to vector<2x32xf32>
    %667 = vector.extract_strided_slice %665 {offsets = [0, 32], sizes = [2, 32], strides = [1, 1]} : vector<2x128xf32> to vector<2x32xf32>
    %668 = vector.extract_strided_slice %665 {offsets = [0, 96], sizes = [2, 32], strides = [1, 1]} : vector<2x128xf32> to vector<2x32xf32>
    %669 = vector.extract_strided_slice %660 {offsets = [0, 64], sizes = [2, 32], strides = [1, 1]} : vector<2x128xf32> to vector<2x32xf32>
    %670 = math.tanh %669 : vector<2x32xf32>
    %671 = arith.mulf %667, %632 : vector<2x32xf32>
    %672 = arith.mulf %666, %670 : vector<2x32xf32>
    %673 = arith.addf %671, %672 : vector<2x32xf32>
    %674 = math.tanh %673 : vector<2x32xf32>
    %675 = arith.mulf %668, %674 : vector<2x32xf32>
    %676 = vector.extract_strided_slice %675 {offsets = [0, 0], sizes = [1, 32], strides = [1, 1]} : vector<2x32xf32> to vector<1x32xf32>
    %677 = vector.extract_strided_slice %675 {offsets = [1, 0], sizes = [1, 32], strides = [1, 1]} : vector<2x32xf32> to vector<1x32xf32>
    %678 = tpu.concatenate %676, %677 in 1 : vector<1x32xf32>, vector<1x32xf32> -> vector<1x64xf32>
    %679 = tpu.concatenate %63, %104, %145, %186, %227, %268, %309, %350, %391, %432, %473, %514, %555, %596, %637, %678 in 0 : vector<1x64xf32>, vector<1x64xf32>, vector<1x64xf32>, vector<1x64xf32>, vector<1x64xf32>, vector<1x64xf32>, vector<1x64xf32>, vector<1x64xf32>, vector<1x64xf32>, vector<1x64xf32>, vector<1x64xf32>, vector<1x64xf32>, vector<1x64xf32>, vector<1x64xf32>, vector<1x64xf32>, vector<1x64xf32> -> vector<16x64xf32>
    %c0_102 = arith.constant 0 : index
    %c0_103 = arith.constant 0 : index
    %680 = vector.load %arg9[%c0_102, %c0_103] : memref<8x48xf32, #tpu.memory_space<vmem>>, vector<8x48xf32>
    %c0_104 = arith.constant 0 : index
    %c0_105 = arith.constant 0 : index
    %681 = vector.load %arg10[%c0_104, %c0_105] : memref<8x1xf32, #tpu.memory_space<vmem>>, vector<8x1xf32>
    %682 = tpu.iota {dimensions = array<i32: 1>} : vector<1x64xi32>
    %c0_i32 = arith.constant 0 : i32
    %683 = vector.broadcast %c0_i32 : i32 to vector<1x64xi32>
    %684 = arith.cmpi eq, %682, %683 : vector<1x64xi32>
    %c32_i32 = arith.constant 32 : i32
    %685 = vector.broadcast %c32_i32 : i32 to vector<1x64xi32>
    %686 = arith.cmpi eq, %682, %685 : vector<1x64xi32>
    %687 = arith.ori %684, %686 : vector<1x64xi1>
    %c31_i32 = arith.constant 31 : i32
    %688 = vector.broadcast %c31_i32 : i32 to vector<1x64xi32>
    %689 = arith.cmpi eq, %682, %688 : vector<1x64xi32>
    %c63_i32 = arith.constant 63 : i32
    %690 = vector.broadcast %c63_i32 : i32 to vector<1x64xi32>
    %691 = arith.cmpi eq, %682, %690 : vector<1x64xi32>
    %692 = arith.ori %689, %691 : vector<1x64xi1>
    %cst_106 = arith.constant 0.000000e+00 : f32
    %693 = vector.broadcast %cst_106 : f32 to vector<16x1xf32>
    %694 = vector.extract_strided_slice %679 {offsets = [0, 0], sizes = [16, 63], strides = [1, 1]} : vector<16x64xf32> to vector<16x63xf32>
    %695 = tpu.concatenate %693, %694 in 1 : vector<16x1xf32>, vector<16x63xf32> -> vector<16x64xf32>
    %696 = vector.extract_strided_slice %679 {offsets = [0, 1], sizes = [16, 63], strides = [1, 1]} : vector<16x64xf32> to vector<16x63xf32>
    %697 = tpu.concatenate %696, %693 in 1 : vector<16x63xf32>, vector<16x1xf32> -> vector<16x64xf32>
    %cst_107 = arith.constant 0.000000e+00 : f32
    %698 = vector.shape_cast %687 : vector<1x64xi1> to vector<1x64xi1>
    %699 = vector.broadcast %698 : vector<1x64xi1> to vector<16x64xi1>
    %700 = vector.broadcast %cst_107 : f32 to vector<16x64xf32>
    %701 = arith.select %699, %700, %695 : vector<16x64xi1>, vector<16x64xf32>
    %cst_108 = arith.constant 0.000000e+00 : f32
    %702 = vector.shape_cast %692 : vector<1x64xi1> to vector<1x64xi1>
    %703 = vector.broadcast %702 : vector<1x64xi1> to vector<16x64xi1>
    %704 = vector.broadcast %cst_108 : f32 to vector<16x64xf32>
    %705 = arith.select %703, %704, %697 : vector<16x64xi1>, vector<16x64xf32>
    %706 = tpu.concatenate %701, %679, %705 in 0 : vector<16x64xf32>, vector<16x64xf32>, vector<16x64xf32> -> vector<48x64xf32>
    %cst_109 = arith.constant dense<0.000000e+00> : vector<8x64xf32>
    %707 = tpu.matmul %680, %706, %cst_109 {dimension_numbers = #tpu.dot_dimension_numbers<[1], [0], [0], [1], [0, 0, 1, 1], [], []>} : vector<8x48xf32>, vector<48x64xf32>, vector<8x64xf32> -> vector<8x64xf32>
    %708 = vector.broadcast %681 : vector<8x1xf32> to vector<8x64xf32>
    %709 = arith.addf %707, %708 : vector<8x64xf32>
    %cst_110 = arith.constant 0.000000e+00 : f32
    %710 = vector.broadcast %cst_110 : f32 to vector<8x64xf32>
    %711 = arith.maximumf %709, %710 : vector<8x64xf32>
    %c0_111 = arith.constant 0 : index
    %c0_112 = arith.constant 0 : index
    %712 = vector.load %arg11[%c0_111, %c0_112] : memref<4x24xf32, #tpu.memory_space<vmem>>, vector<4x24xf32>
    %c0_113 = arith.constant 0 : index
    %c0_114 = arith.constant 0 : index
    %713 = vector.load %arg12[%c0_113, %c0_114] : memref<4x1xf32, #tpu.memory_space<vmem>>, vector<4x1xf32>
    %714 = tpu.iota {dimensions = array<i32: 1>} : vector<1x64xi32>
    %c0_i32_115 = arith.constant 0 : i32
    %715 = vector.broadcast %c0_i32_115 : i32 to vector<1x64xi32>
    %716 = arith.cmpi eq, %714, %715 : vector<1x64xi32>
    %c32_i32_116 = arith.constant 32 : i32
    %717 = vector.broadcast %c32_i32_116 : i32 to vector<1x64xi32>
    %718 = arith.cmpi eq, %714, %717 : vector<1x64xi32>
    %719 = arith.ori %716, %718 : vector<1x64xi1>
    %c31_i32_117 = arith.constant 31 : i32
    %720 = vector.broadcast %c31_i32_117 : i32 to vector<1x64xi32>
    %721 = arith.cmpi eq, %714, %720 : vector<1x64xi32>
    %c63_i32_118 = arith.constant 63 : i32
    %722 = vector.broadcast %c63_i32_118 : i32 to vector<1x64xi32>
    %723 = arith.cmpi eq, %714, %722 : vector<1x64xi32>
    %724 = arith.ori %721, %723 : vector<1x64xi1>
    %cst_119 = arith.constant 0.000000e+00 : f32
    %725 = vector.broadcast %cst_119 : f32 to vector<8x1xf32>
    %726 = vector.extract_strided_slice %711 {offsets = [0, 0], sizes = [8, 63], strides = [1, 1]} : vector<8x64xf32> to vector<8x63xf32>
    %727 = tpu.concatenate %725, %726 in 1 : vector<8x1xf32>, vector<8x63xf32> -> vector<8x64xf32>
    %728 = vector.extract_strided_slice %711 {offsets = [0, 1], sizes = [8, 63], strides = [1, 1]} : vector<8x64xf32> to vector<8x63xf32>
    %729 = tpu.concatenate %728, %725 in 1 : vector<8x63xf32>, vector<8x1xf32> -> vector<8x64xf32>
    %cst_120 = arith.constant 0.000000e+00 : f32
    %730 = vector.shape_cast %719 : vector<1x64xi1> to vector<1x64xi1>
    %731 = vector.broadcast %730 : vector<1x64xi1> to vector<8x64xi1>
    %732 = vector.broadcast %cst_120 : f32 to vector<8x64xf32>
    %733 = arith.select %731, %732, %727 : vector<8x64xi1>, vector<8x64xf32>
    %cst_121 = arith.constant 0.000000e+00 : f32
    %734 = vector.shape_cast %724 : vector<1x64xi1> to vector<1x64xi1>
    %735 = vector.broadcast %734 : vector<1x64xi1> to vector<8x64xi1>
    %736 = vector.broadcast %cst_121 : f32 to vector<8x64xf32>
    %737 = arith.select %735, %736, %729 : vector<8x64xi1>, vector<8x64xf32>
    %738 = tpu.concatenate %733, %711, %737 in 0 : vector<8x64xf32>, vector<8x64xf32>, vector<8x64xf32> -> vector<24x64xf32>
    %cst_122 = arith.constant dense<0.000000e+00> : vector<4x64xf32>
    %739 = tpu.matmul %712, %738, %cst_122 {dimension_numbers = #tpu.dot_dimension_numbers<[1], [0], [0], [1], [0, 0, 1, 1], [], []>} : vector<4x24xf32>, vector<24x64xf32>, vector<4x64xf32> -> vector<4x64xf32>
    %740 = vector.broadcast %713 : vector<4x1xf32> to vector<4x64xf32>
    %741 = arith.addf %739, %740 : vector<4x64xf32>
    %cst_123 = arith.constant 0.000000e+00 : f32
    %742 = vector.broadcast %cst_123 : f32 to vector<4x64xf32>
    %743 = arith.maximumf %741, %742 : vector<4x64xf32>
    %c0_124 = arith.constant 0 : index
    %c0_125 = arith.constant 0 : index
    %744 = vector.load %arg13[%c0_124, %c0_125] : memref<1x1xf32, #tpu.memory_space<vmem>>, vector<1x1xf32>
    %cst_126 = arith.constant 0.000000e+00 : f32
    %745 = vector.broadcast %cst_126 : f32 to vector<4x64xf32>
    %746 = arith.maximumf %743, %745 : vector<4x64xf32>
    %cst_127 = arith.constant 0.000000e+00 : f32
    %747 = vector.broadcast %cst_127 : f32 to vector<4x64xf32>
    %748 = arith.minimumf %743, %747 : vector<4x64xf32>
    %749 = vector.broadcast %744 : vector<1x1xf32> to vector<4x64xf32>
    %750 = arith.mulf %749, %748 : vector<4x64xf32>
    %751 = arith.addf %746, %750 : vector<4x64xf32>
    %752 = vector.extract_strided_slice %751 {offsets = [0, 0], sizes = [1, 32], strides = [1, 1]} : vector<4x64xf32> to vector<1x32xf32>
    %753 = vector.extract_strided_slice %751 {offsets = [1, 0], sizes = [1, 32], strides = [1, 1]} : vector<4x64xf32> to vector<1x32xf32>
    %754 = vector.extract_strided_slice %751 {offsets = [2, 0], sizes = [1, 32], strides = [1, 1]} : vector<4x64xf32> to vector<1x32xf32>
    %755 = vector.extract_strided_slice %751 {offsets = [3, 0], sizes = [1, 32], strides = [1, 1]} : vector<4x64xf32> to vector<1x32xf32>
    %756 = tpu.concatenate %752, %753, %754, %755 in 1 : vector<1x32xf32>, vector<1x32xf32>, vector<1x32xf32>, vector<1x32xf32> -> vector<1x128xf32>
    %757 = vector.extract_strided_slice %751 {offsets = [0, 32], sizes = [1, 32], strides = [1, 1]} : vector<4x64xf32> to vector<1x32xf32>
    %758 = vector.extract_strided_slice %751 {offsets = [1, 32], sizes = [1, 32], strides = [1, 1]} : vector<4x64xf32> to vector<1x32xf32>
    %759 = vector.extract_strided_slice %751 {offsets = [2, 32], sizes = [1, 32], strides = [1, 1]} : vector<4x64xf32> to vector<1x32xf32>
    %760 = vector.extract_strided_slice %751 {offsets = [3, 32], sizes = [1, 32], strides = [1, 1]} : vector<4x64xf32> to vector<1x32xf32>
    %761 = tpu.concatenate %757, %758, %759, %760 in 1 : vector<1x32xf32>, vector<1x32xf32>, vector<1x32xf32>, vector<1x32xf32> -> vector<1x128xf32>
    %762 = tpu.concatenate %756, %761 in 0 : vector<1x128xf32>, vector<1x128xf32> -> vector<2x128xf32>
    %c0_128 = arith.constant 0 : index
    %c0_129 = arith.constant 0 : index
    %763 = vector.load %arg14[%c0_128, %c0_129] : memref<128x32xf32, #tpu.memory_space<vmem>>, vector<128x32xf32>
    %cst_130 = arith.constant dense<0.000000e+00> : vector<2x32xf32>
    %764 = tpu.matmul %762, %763, %cst_130 {dimension_numbers = #tpu.dot_dimension_numbers<[1], [0], [0], [1], [0, 0, 1, 1], [], []>} : vector<2x128xf32>, vector<128x32xf32>, vector<2x32xf32> -> vector<2x32xf32>
    %c0_131 = arith.constant 0 : index
    %c0_132 = arith.constant 0 : index
    %765 = vector.load %arg15[%c0_131, %c0_132] : memref<1x32xf32, #tpu.memory_space<vmem>>, vector<1x32xf32>
    %766 = vector.broadcast %765 : vector<1x32xf32> to vector<2x32xf32>
    %767 = arith.addf %764, %766 : vector<2x32xf32>
    %c0_133 = arith.constant 0 : index
    %c0_134 = arith.constant 0 : index
    %768 = vector.load %arg16[%c0_133, %c0_134] : memref<2x32xf32, #tpu.memory_space<vmem>>, vector<2x32xf32>
    tpu.vector_store %arg16[%c0_133, %c0_134], %767 {strides = array<i32>} : memref<2x32xf32, #tpu.memory_space<vmem>>, vector<2x32xf32>,
    return
  }
}

</mosaic_0001>

<bundles_post_ra>
// kernel: generator_forward.1
= control target key start
LH: loop header
LB: loop body
LE: loop exit
PB: predicated region body
PF: predicated region fallthrough
CT: control target
= control target key end

     0   :  { %v3386_v0 = vmov 0   ;;  %v3387_v8 = vmov 0.0   ;;  %vm63_vm0 = vcmask 1041408   ;;  %vm65_vm1 = vcmask 1043456   ;;  %s3388_s24 = smov 64   ;;  %s3389_s25 = smov 32   ;;  %s4549_s1 = inlined_call_operand.vmem [shape: f32[32,1], index: 1, kind: input, shape index: {}]   ;;  %s4550_s5 = inlined_call_operand.vmem [shape: f32[1,128], index: 5, kind: input, shape index: {}]   ;;  %s4551_s2 = inlined_call_operand.vmem [shape: f32[32,1], index: 2, kind: input, shape index: {}]   ;;  %s4552_s4 = inlined_call_operand.vmem [shape: f32[32,128], index: 4, kind: input, shape index: {}]   ;;  %s4553_s3 = inlined_call_operand.vmem [shape: f32[8,128], index: 3, kind: input, shape index: {}]   ;;  %s4554_s0 = inlined_call_operand.vmem [shape: f32[2,8], index: 0, kind: input, shape index: {}]   ;;  %s4555_s7 = inlined_call_operand.vmem [shape: f32[32,128], index: 7, kind: input, shape index: {}]   ;;  %s4556_s6 = inlined_call_operand.vmem [shape: f32[32,128], index: 6, kind: input, shape index: {}]   ;;  %s4557_s8 = inlined_call_operand.vmem [shape: f32[1,128], index: 8, kind: input, shape index: {}]   ;;  %s4558_s10 = inlined_call_operand.vmem [shape: f32[8,1], index: 10, kind: input, shape index: {}]   ;;  %s4559_s12 = inlined_call_operand.vmem [shape: f32[4,1], index: 12, kind: input, shape index: {}]   ;;  %s4560_s9 = inlined_call_operand.vmem [shape: f32[8,48], index: 9, kind: input, shape index: {}]   ;;  %s4561_s13 = inlined_call_operand.<no memory space> [shape: f32[1,1], index: 13, kind: input, shape index: {}]   ;;  %s4562_s11 = inlined_call_operand.vmem [shape: f32[4,24], index: 11, kind: input, shape index: {}]   ;;  %s4563_s15 = inlined_call_operand.vmem [shape: f32[1,32], index: 15, kind: input, shape index: {}]   ;;  %s4564_s14 = inlined_call_operand.vmem [shape: f32[128,32], index: 14, kind: input, shape index: {}]   ;;  %s4565_s16 = inlined_call_operand.vmem [shape: f32[2,32], index: 16, kind: output, shape index: {}]  }
   0x1   :  { %4567 = sst [smem:[#allocation3_spill]] %s4549_s1  ;;  %3086 = vset.pattern.permute.xlu0 %v3386_v0  ;;  %3087 = vset.pattern.permute.xlu1 %v3386_v0  ;;  %v97_v2 = vld [vmem:[%s4551_s2] sm:$0xff]  ;;  %v3487_v3 = vld [vmem:[%s4552_s4 + $0x18] sm:$0xff]  ;;  %v3493_v4 = vld [vmem:[%s4552_s4 + $0x10] sm:$0xff]  ;;  %vm67_vm2 = vcmask 1045504   ;;  %vm134_vm3 = vcmask 64512  }
   0x2   :  { %s4568_s23 = sld [smem:[#allocation3_spill]]  ;;  %3088 = vset.pattern.permute.xlu2 %v3386_v0  ;;  %205 = vmatpush.msra.mxu1 %v3487_v3  ;;  %v129_v5 = vld [vmem:[%s4553_s3] sm:$0xff]  ;;  %v3502_v6 = vld [vmem:[%s4552_s4 + $0x8] sm:$0xff]  ;;  %v3548_v46 = vld [vmem:[%s4555_s7 + $0x18] sm:$0xff]  ;;  %vm189_vm8 = vcmask 261120   ;;  %s3392_s18 = smov 96  }
   0x3   :  { %162 = vmatpush.msra.mxu0 %v129_v5  ;;  %v3508_v7 = vld [vmem:[%s4552_s4] sm:$0xff]  ;;  %v3553_v47 = vld [vmem:[%s4555_s7 + $0x10] sm:$0xff]  ;;  %263 = vmatpush.msra.mxu3 %v3548_v46  ;;  %v3560_v48 = vld [vmem:[%s4555_s7 + $0x8] sm:$0xff] }
   0x4   :  { %206 = vmatpush.msra.mxu1 %v3493_v4  ;;  %v55_v9 = vld [vmem:[%s4554_s0] sm:$0x3]  ;;  %583 = vmatpush.msra.mxu2 %v3548_v46  ;;  %v3576_v50 = vld [vmem:[%s4556_s6 + $0x18] sm:$0xff]  ;;  %v3585_v51 = vld [vmem:[%s4556_s6 + $0x10] sm:$0xff] }
   0x5   :  { %v57_v10 = vrot.slane %v55_v9, 6  ;;  %v59_v11 = vrot.slane %v55_v9, 4  ;;  %v61_v14 = vrot.slane %v55_v9, 2  ;;  %v3533_v21 = vld [vmem:[%s4550_s5] ss:$0 sm:$0xff]  ;;  %424 = vmatpush.msrb.mxu0 %v3548_v46  ;;  %264 = vmatpush.msra.mxu3 %v3553_v47  ;;  %v3593_v52 = vld [vmem:[%s4556_s6 + $0x8] sm:$0xff] }
   0x6   :  { %207 = vmatpush.msra.mxu1 %v3502_v6  ;;  %v3568_v49 = vld [vmem:[%s4555_s7] sm:$0xff]  ;;  %584 = vmatpush.msra.mxu2 %v3553_v47 }
   0x7   :  { %v64_v12 = vsel %vm63_vm0, %v55_v9, %v57_v10  ;;  %425 = vmatpush.msrb.mxu0 %v3553_v47  ;;  %265 = vmatpush.msra.mxu3 %v3560_v48  ;;  %v3601_v53 = vld [vmem:[%s4556_s6] sm:$0xff] }
   0x8   :  { %v69_v1 = vld [vmem:[%s4568_s23] sm:$0xff]  ;;  %208 = vmatpush.msra.mxu1 %v3508_v7  ;;  %v66_v15 = vsel %vm65_vm1, %v64_v12, %v59_v11  ;;  %585 = vmatpush.msra.mxu2 %v3560_v48 }
   0x9   :  { %75 = vperm.xlu0 %3086, %v69_v1   ;;  %209 = vmatmul.f32.vlgmr.msra.gmra.mxu1 %v3387_v8  ;;  %v3526_v16 = vsel %vm67_vm2, %v66_v15, %v61_v14  ;;  %v3629_v61 = vld [vmem:[%s4557_s8] ss:$0 sm:$0xff] }
   0xa   :  { %358 = vmatpush.msrb.mxu1 %v3487_v3  ;;  %426 = vmatpush.msrb.mxu0 %v3560_v48 }
   0xb   :  { %266 = vmatpush.msra.mxu3 %v3568_v49  ;;  %586 = vmatpush.msra.mxu2 %v3568_v49 }
   0xc   :  { %359 = vmatpush.msrb.mxu1 %v3493_v4  ;;  %427 = vmatpush.msrb.mxu0 %v3568_v49 }
   0xd   :  { %267 = vmatmul.f32.vlgmr.msra.gmra.mxu3 %v3387_v8  ;;  %742 = vmatpush.msrb.mxu2 %v3548_v46 }
   0xe   :  { %360 = vmatpush.msrb.mxu1 %v3502_v6  ;;  %288 = vmatpush.msrb.mxu3 %v3576_v50 }
   0xf   :  { %743 = vmatpush.msrb.mxu2 %v3553_v47 }
  0x10   :  { %361 = vmatpush.msrb.mxu1 %v3508_v7  ;;  %289 = vmatpush.msrb.mxu3 %v3585_v51 }
  0x11   :  { %103 = vperm.xlu0 %3086, %v97_v2   ;;  %744 = vmatpush.msrb.mxu2 %v3560_v48 }
  0x12   :  { %517 = vmatpush.msra.mxu1 %v3487_v3  ;;  %290 = vmatpush.msrb.mxu3 %v3593_v52 }
  0x13   :  { %745 = vmatpush.msrb.mxu2 %v3568_v49 }
  0x14   :  { %518 = vmatpush.msra.mxu1 %v3493_v4  ;;  %291 = vmatpush.msrb.mxu3 %v3601_v53 }
  0x16   :  { %519 = vmatpush.msra.mxu1 %v3502_v6  ;;  %450 = vmatpush.msra.mxu3 %v3576_v50 }
  0x18   :  { %520 = vmatpush.msra.mxu1 %v3508_v7  ;;  %451 = vmatpush.msra.mxu3 %v3585_v51 }
  0x1a   :  { %452 = vmatpush.msra.mxu3 %v3593_v52 }
  0x1c   :  { %453 = vmatpush.msra.mxu3 %v3601_v53 }
  0x7b   :  { %v76_v13 = vpop.permute.xlu0 %75 }
  0x7c   :  { %v93_v17 = vmul.f32 %v76_v13, %v3526_v16 }
  0x83   :  { %v104_v18 = vpop.permute.xlu0 %103 }
  0x84   :  { %v121_v19 = vadd.f32 %v104_v18, %v93_v17 }
  0x86   :  { %v125_v20 = vmax.f32 %v121_v19, 0.0  ;;  %v210_v23 = vpop.f32.mrf.mxu1 }
  0x88   :  { %2982 = vmatmul.msk.f32.vlgmr.msra.gmra.mxu0 %vm134_vm3, %v125_v20 }
  0x89   :  { %835 = vmatpush.msra.mxu0 %v3487_v3 }
  0x8b   :  { %836 = vmatpush.msra.mxu0 %v3493_v4 }
  0x8d   :  { %837 = vmatpush.msra.mxu0 %v3502_v6 }
  0x8f   :  { %838 = vmatpush.msra.mxu0 %v3508_v7 }
  0x90   :  { %v268_v57 = vpop.f32.mrf.mxu3 }
 0x105   :  { %v164_v22 = vpop.f32.mrf.mxu0 }
 0x106   :  { %v3536_v24 = vadd.f32 %v3533_v21, %v164_v22 }
 0x108   :  { %v213_v25 = vadd.f32 %v210_v23, %v3536_v24 }
 0x10a   :  { %3103 = vtanh.f32 %v213_v25  ;;  %v2986_v27 = vmul.f32 -1.442695, %v213_v25 }
 0x10c   :  { %3105 = vpow2.f32 %v2986_v27 }
 0x110   :  { %v3104_v26 = vpop.eup %3103 }
 0x111   :  { %236 = vrot.lane.b32.xlu1 %v3104_v26, %s3388_s24 }
 0x112   :  { %v3106_v28 = vpop.eup %3105 }
 0x113   :  { %v217_v29 = vadd.f32 1.0, %v3106_v28 }
 0x115   :  { %3107 = vrcp.f32 %v217_v29  ;;  %v229_v35 = vand.u32 2147483648, %v217_v29  ;;  %vm223_vm5 = vweird.f32 %v217_v29  ;;  %v227_v36 = vand.u32 2147483647, %v217_v29 }
 0x117   :  { %v230_v38 = vor.u32 1.1754944e-38, %v229_v35  ;;  %vm228_vm7 = vcmp.eq.f32.partialorder %v227_v36, 8.507059e+37 }
 0x11b   :  { %v3108_v30 = vpop.eup %3107 }
 0x11c   :  { %v219_v31 = vmul.f32 %v3108_v30, %v217_v29  ;;  %vm224_vm4 = vweird.f32 %v3108_v30 }
 0x11d   :  { %vm225_vm6 = vmor %vm223_vm5, %vm224_vm4 }
 0x11e   :  { %v220_v32 = vsub.f32 1.0, %v219_v31 }
 0x120   :  { %v221_v33 = vmul.f32 %v3108_v30, %v220_v32 }
 0x122   :  { %v222_v34 = vadd.f32 %v3108_v30, %v221_v33 }
 0x124   :  { %v226_v37 = vsel %vm225_vm6, %v3108_v30, %v222_v34 }
 0x125   :  { %v231_v40 = vsel %vm228_vm7, %v230_v38, %v226_v37 }
 0x126   :  { %v234_v42 = vmul.f32 0.0, %v231_v40 }
 0x183   :  { %v237_v39 = vpop.permute.xlu1 %236 }
 0x184   :  { %v239_v41 = vmul.f32 %v237_v39, %v231_v40 }
 0x186   :  { %241 = vrot.lane.b32.xlu1 %v239_v41, %s3389_s25  ;;  %v99_v41 = vld [vmem:[%s4551_s2 + $0x10] sm:$0xff] }
 0x1f8   :  { %v242_v43 = vpop.permute.xlu1 %241 }
 0x1f9   :  { %v3541_v44 = vadd.f32 %v242_v43, %v234_v42 }
 0x1fb   :  { %3109 = vtanh.f32 %v3541_v44  ;;  %v391_v42 = vrot.slane %v3541_v44, 6 }
 0x201   :  { %v3110_v45 = vpop.eup %3109 }
 0x202   :  { %247 = vrot.lane.b32.xlu2 %v3110_v45, %s3388_s24 }
 0x25c   :  { %v248_v54 = vpop.permute.xlu2 %247 }
 0x25d   :  { %v250_v55 = vmul.f32 %v248_v54, %v231_v40  ;;  %v70_v40 = vld [vmem:[%s4568_s23 + $0x8] sm:$0xff] }
 0x25f   :  { %272 = vrot.lane.b32.xlu2 %v250_v55, %s3389_s25 }
 0x2b9   :  { %v273_v56 = vpop.permute.xlu2 %272 }
 0x2ba   :  { %2987 = vmatmul.msk.f32.vlgmr.msrb.gmra.mxu3 %vm189_vm8, %v273_v56  ;;  %2989 = vmatmul.msk.f32.vlgmr.msrb.gmra.mxu1 %vm189_vm8, %v273_v56  ;;  %v98_v56 = vld [vmem:[%s4551_s2 + $0x8] sm:$0xff] }
 0x2bb   :  { %609 = vmatpush.msrb.mxu3 %v3576_v50  ;;  %676 = vmatpush.msrb.mxu1 %v3487_v3 }
 0x2bd   :  { %610 = vmatpush.msrb.mxu3 %v3585_v51  ;;  %677 = vmatpush.msrb.mxu1 %v3493_v4 }
 0x2bf   :  { %611 = vmatpush.msrb.mxu3 %v3593_v52  ;;  %678 = vmatpush.msrb.mxu1 %v3502_v6 }
 0x2c1   :  { %612 = vmatpush.msrb.mxu3 %v3601_v53  ;;  %679 = vmatpush.msrb.mxu1 %v3508_v7 }
 0x337   :  { %v363_v58 = vpop.f32.mrf.mxu1 }
 0x338   :  { %v367_v59 = vrot.slane %v363_v58, 6 }
 0x33a   :  { %v369_v60 = vadd.f32 %v367_v59, %v3536_v24 }
 0x33c   :  { %3111 = vtanh.f32 %v369_v60  ;;  %v2990_v5 = vmul.f32 -1.442695, %v369_v60 }
 0x33d   :  { %v293_v62 = vpop.f32.mrf.mxu3 }
 0x33e   :  { %v294_v63 = vadd.f32 %v293_v62, %v268_v57  ;;  %v72_v57 = vld [vmem:[%s4568_s23 + $0x18] sm:$0xff]  ;;  %v71_v62 = vld [vmem:[%s4568_s23 + $0x10] sm:$0xff]  ;;  %s3391_s23 = smov 127  }
 0x340   :  { %v299_v0 = vadd.f32 %v3629_v61, %v294_v63  ;;  %v100_v63 = vld [vmem:[%s4551_s2 + $0x18] sm:$0xff] }
 0x342   :  { %v3112_v1 = vpop.eup %3111  ;;  %3113 = vtanh.f32 %v299_v0  ;;  %v2988_v8 = vmul.f32 -1.442695, %v299_v0 }
 0x343   :  { %395 = vrot.lane.b32.xlu0 %v3112_v1, %s3388_s24  ;;  %3115 = vpow2.f32 %v2990_v5 }
 0x344   :  { %3117 = vpow2.f32 %v2988_v8 }
 0x348   :  { %v3114_v2 = vpop.eup %3113 }
 0x349   :  { %322 = vrot.lane.b32.xlu1 %v3114_v2, %s3388_s24  ;;  %v3116_v9 = vpop.eup %3115 }
 0x34a   :  { %v373_v10 = vadd.f32 1.0, %v3116_v9  ;;  %v3118_v11 = vpop.eup %3117 }
 0x34b   :  { %v303_v12 = vadd.f32 1.0, %v3118_v11 }
 0x34c   :  { %3119 = vrcp.f32 %v373_v10  ;;  %v385_v23 = vand.u32 2147483648, %v373_v10  ;;  %vm379_vm10 = vweird.f32 %v373_v10  ;;  %v383_v25 = vand.u32 2147483647, %v373_v10 }
 0x34d   :  { %3121 = vrcp.f32 %v303_v12  ;;  %v315_v32 = vand.u32 2147483648, %v303_v12  ;;  %vm309_vm14 = vweird.f32 %v303_v12  ;;  %v313_v34 = vand.u32 2147483647, %v303_v12 }
 0x34e   :  { %v386_v28 = vor.u32 1.1754944e-38, %v385_v23  ;;  %vm384_vm12 = vcmp.eq.f32.partialorder %v383_v25, 8.507059e+37 }
 0x34f   :  { %v316_v36 = vor.u32 1.1754944e-38, %v315_v32  ;;  %vm314_vm4 = vcmp.eq.f32.partialorder %v313_v34, 8.507059e+37 }
 0x352   :  { %v3120_v13 = vpop.eup %3119 }
 0x353   :  { %v375_v14 = vmul.f32 %v3120_v13, %v373_v10  ;;  %v3122_v15 = vpop.eup %3121  ;;  %vm380_vm9 = vweird.f32 %v3120_v13 }
 0x354   :  { %v305_v18 = vmul.f32 %v3122_v15, %v303_v12  ;;  %vm381_vm11 = vmor %vm379_vm10, %vm380_vm9  ;;  %vm310_vm13 = vweird.f32 %v3122_v15 }
 0x355   :  { %v376_v17 = vsub.f32 1.0, %v375_v14  ;;  %vm311_vm15 = vmor %vm309_vm14, %vm310_vm13 }
 0x356   :  { %v306_v20 = vsub.f32 1.0, %v305_v18 }
 0x357   :  { %v377_v19 = vmul.f32 %v3120_v13, %v376_v17 }
 0x358   :  { %v307_v26 = vmul.f32 %v3122_v15, %v306_v20 }
 0x359   :  { %v378_v22 = vadd.f32 %v3120_v13, %v377_v19 }
 0x35a   :  { %v308_v29 = vadd.f32 %v3122_v15, %v307_v26 }
 0x35b   :  { %v382_v27 = vsel %vm381_vm11, %v3120_v13, %v378_v22 }
 0x35c   :  { %v387_v31 = vsel %vm384_vm12, %v386_v28, %v382_v27  ;;  %v312_v35 = vsel %vm311_vm15, %v3122_v15, %v308_v29 }
 0x35d   :  { %v317_v38 = vsel %vm314_vm4, %v316_v36, %v312_v35  ;;  %v393_v43 = vmul.f32 %v391_v42, %v387_v31 }
 0x35e   :  { %v320_v44 = vmul.f32 0.0, %v317_v38 }
 0x3b5   :  { %v396_v30 = vpop.permute.xlu0 %395 }
 0x3b6   :  { %v398_v33 = vmul.f32 %v396_v30, %v387_v31 }
 0x3b8   :  { %400 = vrot.lane.b32.xlu2 %v398_v33, %s3389_s25 }
 0x3bb   :  { %v323_v37 = vpop.permute.xlu1 %322 }
 0x3bc   :  { %v325_v39 = vmul.f32 %v323_v37, %v317_v38 }
 0x3be   :  { %327 = vrot.lane.b32.xlu0 %v325_v39, %s3389_s25 }
 0x3c6   :  { %80 = vperm.xlu0 %3086, %v70_v40  }
 0x3ce   :  { %113 = vperm.xlu0 %3086, %v99_v41  }
 0x412   :  { %v401_v45 = vpop.permute.xlu2 %400 }
 0x413   :  { %v3643_v54 = vadd.f32 %v401_v45, %v393_v43 }
 0x415   :  { %3123 = vtanh.f32 %v3643_v54 }
 0x41b   :  { %v3124_v55 = vpop.eup %3123 }
 0x41c   :  { %406 = vrot.lane.b32.xlu1 %v3124_v55, %s3388_s24 }
 0x424   :  { %108 = vperm.xlu1 %3087, %v98_v56  }
 0x42c   :  { %90 = vperm.xlu1 %3087, %v72_v57  }
 0x430   :  { %v328_v58 = vpop.permute.xlu0 %327 }
 0x431   :  { %v3653_v59 = vadd.f32 %v328_v58, %v320_v44 }
 0x433   :  { %3125 = vtanh.f32 %v3653_v59 }
 0x438   :  { %v81_v5 = vpop.permute.xlu0 %80 }
 0x439   :  { %v3126_v60 = vpop.eup %3125  ;;  %v94_v9 = vmul.f32 %v81_v5, %v3526_v16 }
 0x43a   :  { %333 = vrot.lane.b32.xlu2 %v3126_v60, %s3388_s24 }
 0x440   :  { %v114_v17 = vpop.permute.xlu0 %113 }
 0x442   :  { %85 = vperm.xlu2 %3088, %v71_v62  }
 0x44a   :  { %118 = vperm.xlu2 %3088, %v100_v63  }
 0x48e   :  { %v407_v0 = vpop.permute.xlu1 %406 }
 0x48f   :  { %v409_v1 = vmul.f32 %v407_v0, %v387_v31 }
 0x491   :  { %v433_v2 = vrot.slane %v409_v1, 2 }
 0x493   :  { %434 = vrot.lane.b32.xlu0 %v433_v2, %s3389_s25 }
 0x494   :  { %v334_v8 = vpop.permute.xlu2 %333 }
 0x495   :  { %v3665_v10 = vmul.f32 %v334_v8, %v317_v38 }
 0x496   :  { %v109_v11 = vpop.permute.xlu1 %108 }
 0x497   :  { %v122_v12 = vadd.f32 %v109_v11, %v94_v9  ;;  %338 = vrot.lane.b32.xlu1 %v3665_v10, %s3389_s25 }
 0x499   :  { %v126_v13 = vmax.f32 %v122_v12, 0.0 }
 0x49b   :  { %2983 = vmatmul.msk.f32.gmra.mxu0 %vm134_vm3, %v126_v13 }
 0x49c   :  { %v86_v14 = vpop.permute.xlu2 %85 }
 0x49d   :  { %v95_v15 = vmul.f32 %v86_v14, %v3526_v16 }
 0x49e   :  { %v91_v20 = vpop.permute.xlu1 %90 }
 0x49f   :  { %v123_v18 = vadd.f32 %v114_v17, %v95_v15  ;;  %v96_v22 = vmul.f32 %v91_v20, %v3526_v16 }
 0x4a1   :  { %v127_v19 = vmax.f32 %v123_v18, 0.0 }
 0x4a3   :  { %2984 = vmatmul.msk.f32.gmra.mxu0 %vm134_vm3, %v127_v19 }
 0x4a4   :  { %v119_v23 = vpop.permute.xlu2 %118 }
 0x4a5   :  { %v124_v25 = vadd.f32 %v119_v23, %v96_v22 }
 0x4a7   :  { %v128_v26 = vmax.f32 %v124_v25, 0.0  ;;  %v550_v25 = vrot.slane %v3643_v54, 6 }
 0x4ab   :  { %2985 = vmatmul.msk.f32.gmra.mxu0 %vm134_vm3, %v128_v26 }
 0x505   :  { %v435_v27 = vpop.permute.xlu0 %434 }
 0x506   :  { %2992 = vmatmul.msk.f32.vlgmr.msra.gmra.mxu3 %vm189_vm8, %v435_v27  ;;  %2994 = vmatmul.msk.f32.vlgmr.msra.gmra.mxu1 %vm189_vm8, %v435_v27 }
 0x507   :  { %768 = vmatpush.msra.mxu3 %v3576_v50  ;;  %898 = vmatpush.msra.mxu1 %v3548_v46 }
 0x509   :  { %v3678_v28 = vpop.permute.xlu1 %338  ;;  %769 = vmatpush.msra.mxu3 %v3585_v51  ;;  %899 = vmatpush.msra.mxu1 %v3553_v47 }
 0x50a   :  { %2991 = vmatmul.msk.f32.vlgmr.msrb.gmra.mxu0 %vm189_vm8, %v3678_v28 }
 0x50b   :  { %770 = vmatpush.msra.mxu3 %v3593_v52  ;;  %900 = vmatpush.msra.mxu1 %v3560_v48 }
 0x50c   :  { %1056 = vmatpush.msrb.mxu0 %v3548_v46 }
 0x50d   :  { %771 = vmatpush.msra.mxu3 %v3601_v53  ;;  %901 = vmatpush.msra.mxu1 %v3568_v49 }
 0x50e   :  { %1057 = vmatpush.msrb.mxu0 %v3553_v47 }
 0x510   :  { %1058 = vmatpush.msrb.mxu0 %v3560_v48 }
 0x512   :  { %1059 = vmatpush.msrb.mxu0 %v3568_v49 }
 0x518   :  { %v3692_v16 = vpop.f32.mrf.mxu0 }
 0x520   :  { %v3694_v29 = vpop.f32.mrf.mxu0 }
 0x528   :  { %v3696_v30 = vpop.f32.mrf.mxu0 }
 0x583   :  { %v522_v31 = vpop.f32.mrf.mxu1 }
 0x584   :  { %v526_v32 = vrot.slane %v522_v31, 4 }
 0x586   :  { %v528_v33 = vadd.f32 %v526_v32, %v3536_v24 }
 0x587   :  { %v429_v34 = vpop.f32.mrf.mxu0 }
 0x588   :  { %3127 = vtanh.f32 %v528_v33  ;;  %v2995_v40 = vmul.f32 -1.442695, %v528_v33 }
 0x589   :  { %v455_v35 = vpop.f32.mrf.mxu3 }
 0x58a   :  { %v456_v36 = vadd.f32 %v455_v35, %v429_v34 }
 0x58c   :  { %v458_v37 = vadd.f32 %v3629_v61, %v456_v36 }
 0x58e   :  { %v3128_v38 = vpop.eup %3127  ;;  %3129 = vtanh.f32 %v458_v37  ;;  %v2993_v55 = vmul.f32 -1.442695, %v458_v37 }
 0x58f   :  { %554 = vrot.lane.b32.xlu2 %v3128_v38, %s3388_s24  ;;  %3131 = vpow2.f32 %v2995_v40 }
 0x594   :  { %v3130_v39 = vpop.eup %3129 }
 0x595   :  { %481 = vrot.lane.b32.xlu0 %v3130_v39, %s3388_s24  ;;  %v3132_v41 = vpop.eup %3131 }
 0x596   :  { %v532_v42 = vadd.f32 1.0, %v3132_v41 }
 0x598   :  { %3133 = vrcp.f32 %v532_v42  ;;  %v544_v58 = vand.u32 2147483648, %v532_v42  ;;  %vm538_vm5 = vweird.f32 %v532_v42  ;;  %v542_v62 = vand.u32 2147483647, %v532_v42 }
 0x599   :  { %3135 = vpow2.f32 %v2993_v55 }
 0x59a   :  { %v545_v1 = vor.u32 1.1754944e-38, %v544_v58  ;;  %vm543_vm7 = vcmp.eq.f32.partialorder %v542_v62, 8.507059e+37 }
 0x59e   :  { %v3134_v43 = vpop.eup %3133 }
 0x59f   :  { %v534_v45 = vmul.f32 %v3134_v43, %v532_v42  ;;  %vm539_vm3 = vweird.f32 %v3134_v43  ;;  %v3136_v60 = vpop.eup %3135 }
 0x5a0   :  { %vm540_vm6 = vmor %vm538_vm5, %vm539_vm3  ;;  %v462_v0 = vadd.f32 1.0, %v3136_v60 }
 0x5a1   :  { %v535_v56 = vsub.f32 1.0, %v534_v45 }
 0x5a2   :  { %3137 = vrcp.f32 %v462_v0  ;;  %v474_v15 = vand.u32 2147483648, %v462_v0  ;;  %vm468_vm10 = vweird.f32 %v462_v0  ;;  %v472_v17 = vand.u32 2147483647, %v462_v0 }
 0x5a3   :  { %v536_v57 = vmul.f32 %v3134_v43, %v535_v56 }
 0x5a4   :  { %v475_v19 = vor.u32 1.1754944e-38, %v474_v15  ;;  %vm473_vm12 = vcmp.eq.f32.partialorder %v472_v17, 8.507059e+37 }
 0x5a5   :  { %v537_v44 = vadd.f32 %v3134_v43, %v536_v57 }
 0x5a7   :  { %v541_v63 = vsel %vm540_vm6, %v3134_v43, %v537_v44 }
 0x5a8   :  { %v546_v2 = vsel %vm543_vm7, %v545_v1, %v541_v63  ;;  %v3138_v9 = vpop.eup %3137 }
 0x5a9   :  { %v464_v11 = vmul.f32 %v3138_v9, %v462_v0  ;;  %vm469_vm9 = vweird.f32 %v3138_v9  ;;  %v552_v26 = vmul.f32 %v550_v25, %v546_v2 }
 0x5aa   :  { %vm470_vm11 = vmor %vm468_vm10, %vm469_vm9 }
 0x5ab   :  { %v465_v12 = vsub.f32 1.0, %v464_v11 }
 0x5ad   :  { %v466_v13 = vmul.f32 %v3138_v9, %v465_v12 }
 0x5af   :  { %v467_v14 = vadd.f32 %v3138_v9, %v466_v13 }
 0x5b1   :  { %v471_v18 = vsel %vm470_vm11, %v3138_v9, %v467_v14 }
 0x5b2   :  { %v476_v22 = vsel %vm473_vm12, %v475_v19, %v471_v18 }
 0x5b3   :  { %v479_v32 = vmul.f32 %v476_v22, %v3653_v59 }
 0x5e9   :  { %v555_v5 = vpop.permute.xlu2 %554 }
 0x5ea   :  { %v557_v8 = vmul.f32 %v555_v5, %v546_v2 }
 0x5ec   :  { %559 = vrot.lane.b32.xlu1 %v557_v8, %s3389_s25 }
 0x607   :  { %v482_v20 = vpop.permute.xlu0 %481 }
 0x608   :  { %v484_v23 = vmul.f32 %v482_v20, %v476_v22 }
 0x60a   :  { %486 = vrot.lane.b32.xlu2 %v484_v23, %s3389_s25 }
 0x65e   :  { %v560_v27 = vpop.permute.xlu1 %559 }
 0x65f   :  { %v3705_v31 = vadd.f32 %v560_v27, %v552_v26 }
 0x661   :  { %3139 = vtanh.f32 %v3705_v31 }
 0x664   :  { %v487_v33 = vpop.permute.xlu2 %486 }
 0x665   :  { %v3709_v34 = vadd.f32 %v487_v33, %v479_v32 }
 0x667   :  { %v3140_v35 = vpop.eup %3139  ;;  %3141 = vtanh.f32 %v3709_v34 }
 0x668   :  { %565 = vrot.lane.b32.xlu0 %v3140_v35, %s3388_s24 }
 0x66d   :  { %v3142_v36 = vpop.eup %3141 }
 0x66e   :  { %492 = vrot.lane.b32.xlu1 %v3142_v36, %s3388_s24 }
 0x6da   :  { %v566_v54 = vpop.permute.xlu0 %565 }
 0x6db   :  { %v568_v37 = vmul.f32 %v566_v54, %v546_v2 }
 0x6dd   :  { %v592_v38 = vrot.slane %v568_v37, 4 }
 0x6df   :  { %593 = vrot.lane.b32.xlu2 %v592_v38, %s3389_s25 }
 0x6e0   :  { %v493_v39 = vpop.permute.xlu1 %492 }
 0x6e1   :  { %v3715_v40 = vmul.f32 %v493_v39, %v476_v22  ;;  %v709_v39 = vrot.slane %v3705_v31, 6 }
 0x6e3   :  { %497 = vrot.lane.b32.xlu0 %v3715_v40, %s3389_s25 }
 0x739   :  { %v594_v59 = vpop.permute.xlu2 %593 }
 0x73a   :  { %2997 = vmatmul.msk.f32.vlgmr.msrb.gmra.mxu3 %vm189_vm8, %v594_v59  ;;  %2999 = vmatmul.msk.f32.vlgmr.msrb.gmra.mxu1 %vm189_vm8, %v594_v59 }
 0x73b   :  { %990 = vmatpush.msrb.mxu3 %v3487_v3  ;;  %1082 = vmatpush.msrb.mxu1 %v3576_v50 }
 0x73d   :  { %991 = vmatpush.msrb.mxu3 %v3493_v4  ;;  %1083 = vmatpush.msrb.mxu1 %v3585_v51 }
 0x73f   :  { %992 = vmatpush.msrb.mxu3 %v3502_v6  ;;  %1084 = vmatpush.msrb.mxu1 %v3593_v52 }
 0x741   :  { %993 = vmatpush.msrb.mxu3 %v3508_v7  ;;  %1085 = vmatpush.msrb.mxu1 %v3601_v53 }
 0x755   :  { %v3729_v41 = vpop.permute.xlu0 %497 }
 0x756   :  { %2996 = vmatmul.msk.f32.vlgmr.msra.gmra.mxu2 %vm189_vm8, %v3729_v41 }
 0x757   :  { %923 = vmatpush.msra.mxu2 %v3576_v50 }
 0x759   :  { %924 = vmatpush.msra.mxu2 %v3585_v51 }
 0x75b   :  { %925 = vmatpush.msra.mxu2 %v3593_v52 }
 0x75d   :  { %926 = vmatpush.msra.mxu2 %v3601_v53 }
 0x7b7   :  { %v681_v42 = vpop.f32.mrf.mxu1 }
 0x7b8   :  { %v685_v43 = vrot.slane %v681_v42, 2 }
 0x7ba   :  { %v687_v45 = vadd.f32 %v685_v43, %v3536_v24 }
 0x7bc   :  { %3143 = vtanh.f32 %v687_v45  ;;  %v3000_v62 = vmul.f32 -1.442695, %v687_v45 }
 0x7bd   :  { %v614_v56 = vpop.f32.mrf.mxu3 }
 0x7c2   :  { %v3144_v55 = vpop.eup %3143 }
 0x7c3   :  { %713 = vrot.lane.b32.xlu1 %v3144_v55, %s3388_s24 }
 0x7d9   :  { %v588_v57 = vpop.f32.mrf.mxu2 }
 0x7da   :  { %v615_v44 = vadd.f32 %v614_v56, %v588_v57 }
 0x7dc   :  { %v617_v58 = vadd.f32 %v3629_v61, %v615_v44 }
 0x7de   :  { %3145 = vtanh.f32 %v617_v58  ;;  %v2998_v0 = vmul.f32 -1.442695, %v617_v58 }
 0x7df   :  { %3147 = vpow2.f32 %v3000_v62 }
 0x7e0   :  { %3149 = vpow2.f32 %v2998_v0 }
 0x7e4   :  { %v3146_v60 = vpop.eup %3145 }
 0x7e5   :  { %640 = vrot.lane.b32.xlu2 %v3146_v60, %s3388_s24  ;;  %v3148_v63 = vpop.eup %3147 }
 0x7e6   :  { %v691_v1 = vadd.f32 1.0, %v3148_v63  ;;  %v3150_v24 = vpop.eup %3149 }
 0x7e7   :  { %v621_v5 = vadd.f32 1.0, %v3150_v24 }
 0x7e8   :  { %3151 = vrcp.f32 %v691_v1  ;;  %v703_v15 = vand.u32 2147483648, %v691_v1  ;;  %vm697_vm14 = vweird.f32 %v691_v1  ;;  %v701_v17 = vand.u32 2147483647, %v691_v1 }
 0x7e9   :  { %3153 = vrcp.f32 %v621_v5  ;;  %v633_v32 = vand.u32 2147483648, %v621_v5  ;;  %vm627_vm5 = vweird.f32 %v621_v5  ;;  %v631_v33 = vand.u32 2147483647, %v621_v5 }
 0x7ea   :  { %v704_v20 = vor.u32 1.1754944e-38, %v703_v15  ;;  %vm702_vm4 = vcmp.eq.f32.partialorder %v701_v17, 8.507059e+37 }
 0x7eb   :  { %v634_v36 = vor.u32 1.1754944e-38, %v633_v32  ;;  %vm632_vm7 = vcmp.eq.f32.partialorder %v631_v33, 8.507059e+37 }
 0x7ee   :  { %v3152_v2 = vpop.eup %3151 }
 0x7ef   :  { %v693_v8 = vmul.f32 %v3152_v2, %v691_v1  ;;  %v3154_v11 = vpop.eup %3153  ;;  %vm698_vm13 = vweird.f32 %v3152_v2  ;;  %v3778_v1 = vadd.f32 %v3533_v21, %v3692_v16 }
 0x7f0   :  { %v623_v13 = vmul.f32 %v3154_v11, %v621_v5  ;;  %vm699_vm15 = vmor %vm697_vm14, %vm698_vm13  ;;  %vm628_vm3 = vweird.f32 %v3154_v11 }
 0x7f1   :  { %v694_v9 = vsub.f32 1.0, %v693_v8  ;;  %vm629_vm6 = vmor %vm627_vm5, %vm628_vm3 }
 0x7f2   :  { %v624_v18 = vsub.f32 1.0, %v623_v13 }
 0x7f3   :  { %v695_v12 = vmul.f32 %v3152_v2, %v694_v9 }
 0x7f4   :  { %v625_v22 = vmul.f32 %v3154_v11, %v624_v18 }
 0x7f5   :  { %v696_v14 = vadd.f32 %v3152_v2, %v695_v12 }
 0x7f6   :  { %v626_v27 = vadd.f32 %v3154_v11, %v625_v22 }
 0x7f7   :  { %v700_v19 = vsel %vm699_vm15, %v3152_v2, %v696_v14 }
 0x7f8   :  { %v705_v25 = vsel %vm702_vm4, %v704_v20, %v700_v19  ;;  %v630_v35 = vsel %vm629_vm6, %v3154_v11, %v626_v27 }
 0x7f9   :  { %v635_v37 = vsel %vm632_vm7, %v634_v36, %v630_v35  ;;  %v711_v59 = vmul.f32 %v709_v39, %v705_v25 }
 0x7fa   :  { %v638_v55 = vmul.f32 %v635_v37, %v3709_v34 }
 0x835   :  { %v714_v23 = vpop.permute.xlu1 %713 }
 0x836   :  { %v716_v26 = vmul.f32 %v714_v23, %v705_v25 }
 0x838   :  { %718 = vrot.lane.b32.xlu0 %v716_v26, %s3389_s25 }
 0x83f   :  { %v641_v54 = vpop.permute.xlu2 %640 }
 0x840   :  { %v643_v38 = vmul.f32 %v641_v54, %v635_v37 }
 0x842   :  { %645 = vrot.lane.b32.xlu1 %v643_v38, %s3389_s25 }
 0x8aa   :  { %v719_v42 = vpop.permute.xlu0 %718 }
 0x8ab   :  { %v3744_v43 = vadd.f32 %v719_v42, %v711_v59 }
 0x8ad   :  { %3155 = vtanh.f32 %v3744_v43 }
 0x8b3   :  { %v3156_v45 = vpop.eup %3155 }
 0x8b4   :  { %724 = vrot.lane.b32.xlu2 %v3156_v45, %s3388_s24  ;;  %v646_v56 = vpop.permute.xlu1 %645 }
 0x8b5   :  { %v3749_v57 = vadd.f32 %v646_v56, %v638_v55 }
 0x8b7   :  { %3157 = vtanh.f32 %v3749_v57 }
 0x8bd   :  { %v3158_v44 = vpop.eup %3157 }
 0x8be   :  { %651 = vrot.lane.b32.xlu0 %v3158_v44, %s3388_s24  ;;  %v865_v44 = vrot.slane %v3744_v43, 6 }
 0x90e   :  { %v725_v31 = vpop.permute.xlu2 %724 }
 0x90f   :  { %v727_v58 = vmul.f32 %v725_v31, %v705_v25 }
 0x911   :  { %v751_v60 = vrot.slane %v727_v58, 6 }
 0x913   :  { %752 = vrot.lane.b32.xlu1 %v751_v60, %s3389_s25 }
 0x930   :  { %v652_v62 = vpop.permute.xlu0 %651 }
 0x931   :  { %v3754_v63 = vmul.f32 %v652_v62, %v635_v37 }
 0x933   :  { %656 = vrot.lane.b32.xlu2 %v3754_v63, %s3389_s25 }
 0x985   :  { %v753_v34 = vpop.permute.xlu1 %752 }
 0x986   :  { %3002 = vmatmul.msk.f32.vlgmr.msra.gmra.mxu3 %vm189_vm8, %v753_v34  ;;  %3004 = vmatmul.msk.f32.vlgmr.msra.gmra.mxu0 %vm189_vm8, %v753_v34 }
 0x987   :  { %1215 = vmatpush.msra.mxu3 %v3548_v46  ;;  %1241 = vmatpush.msra.mxu0 %v3576_v50 }
 0x989   :  { %1216 = vmatpush.msra.mxu3 %v3553_v47  ;;  %1242 = vmatpush.msra.mxu0 %v3585_v51 }
 0x98b   :  { %1217 = vmatpush.msra.mxu3 %v3560_v48  ;;  %1243 = vmatpush.msra.mxu0 %v3593_v52 }
 0x98d   :  { %v3766_v0 = vpop.permute.xlu2 %656  ;;  %1218 = vmatpush.msra.mxu3 %v3568_v49  ;;  %1244 = vmatpush.msra.mxu0 %v3601_v53 }
 0x98e   :  { %3001 = vmatmul.msk.f32.vlgmr.msrb.gmra.mxu2 %vm189_vm8, %v3766_v0 }
 0x98f   :  { %1149 = vmatpush.msrb.mxu2 %v3487_v3 }
 0x991   :  { %1150 = vmatpush.msrb.mxu2 %v3493_v4 }
 0x993   :  { %1151 = vmatpush.msrb.mxu2 %v3502_v6 }
 0x995   :  { %1152 = vmatpush.msrb.mxu2 %v3508_v7 }
 0xa03   :  { %v840_v24 = vpop.f32.mrf.mxu0 }
 0xa04   :  { %v843_v2 = vadd.f32 %v840_v24, %v3778_v1 }
 0xa06   :  { %3159 = vtanh.f32 %v843_v2  ;;  %v3005_v7 = vmul.f32 -1.442695, %v843_v2 }
 0xa09   :  { %v773_v8 = vpop.f32.mrf.mxu3 }
 0xa0c   :  { %v3160_v5 = vpop.eup %3159 }
 0xa0d   :  { %869 = vrot.lane.b32.xlu0 %v3160_v5, %s3388_s24 }
 0xa11   :  { %v747_v9 = vpop.f32.mrf.mxu2 }
 0xa12   :  { %v774_v3 = vadd.f32 %v773_v8, %v747_v9 }
 0xa14   :  { %v776_v4 = vadd.f32 %v3629_v61, %v774_v3 }
 0xa16   :  { %3161 = vtanh.f32 %v776_v4  ;;  %v3003_v11 = vmul.f32 -1.442695, %v776_v4 }
 0xa17   :  { %3163 = vpow2.f32 %v3005_v7 }
 0xa1c   :  { %v3162_v6 = vpop.eup %3161 }
 0xa1d   :  { %799 = vrot.lane.b32.xlu1 %v3162_v6, %s3388_s24  ;;  %v3164_v21 = vpop.eup %3163 }
 0xa1e   :  { %v847_v16 = vadd.f32 1.0, %v3164_v21 }
 0xa20   :  { %3165 = vrcp.f32 %v847_v16  ;;  %v859_v22 = vand.u32 2147483648, %v847_v16  ;;  %vm853_vm10 = vweird.f32 %v847_v16  ;;  %v857_v23 = vand.u32 2147483647, %v847_v16 }
 0xa21   :  { %3167 = vpow2.f32 %v3003_v11 }
 0xa22   :  { %v860_v27 = vor.u32 1.1754944e-38, %v859_v22  ;;  %vm858_vm12 = vcmp.eq.f32.partialorder %v857_v23, 8.507059e+37 }
 0xa26   :  { %v3166_v12 = vpop.eup %3165 }
 0xa27   :  { %v3168_v13 = vpop.eup %3167  ;;  %v849_v14 = vmul.f32 %v3166_v12, %v847_v16  ;;  %vm854_vm9 = vweird.f32 %v3166_v12 }
 0xa28   :  { %v780_v15 = vadd.f32 1.0, %v3168_v13  ;;  %vm855_vm11 = vmor %vm853_vm10, %vm854_vm9 }
 0xa29   :  { %v850_v17 = vsub.f32 1.0, %v849_v14 }
 0xa2a   :  { %3169 = vrcp.f32 %v780_v15  ;;  %v792_v38 = vand.u32 2147483648, %v780_v15  ;;  %vm786_vm14 = vweird.f32 %v780_v15  ;;  %v790_v39 = vand.u32 2147483647, %v780_v15 }
 0xa2b   :  { %v851_v18 = vmul.f32 %v3166_v12, %v850_v17 }
 0xa2c   :  { %v793_v42 = vor.u32 1.1754944e-38, %v792_v38  ;;  %vm791_vm4 = vcmp.eq.f32.partialorder %v790_v39, 8.507059e+37 }
 0xa2d   :  { %v852_v19 = vadd.f32 %v3166_v12, %v851_v18 }
 0xa2f   :  { %v856_v25 = vsel %vm855_vm11, %v3166_v12, %v852_v19 }
 0xa30   :  { %v3170_v20 = vpop.eup %3169  ;;  %v861_v32 = vsel %vm858_vm12, %v860_v27, %v856_v25 }
 0xa31   :  { %v782_v26 = vmul.f32 %v3170_v20, %v780_v15  ;;  %vm787_vm13 = vweird.f32 %v3170_v20  ;;  %v867_v31 = vmul.f32 %v865_v44, %v861_v32 }
 0xa32   :  { %vm788_vm15 = vmor %vm786_vm14, %vm787_vm13 }
 0xa33   :  { %v783_v36 = vsub.f32 1.0, %v782_v26 }
 0xa35   :  { %v784_v54 = vmul.f32 %v3170_v20, %v783_v36 }
 0xa37   :  { %v785_v37 = vadd.f32 %v3170_v20, %v784_v54 }
 0xa39   :  { %v789_v59 = vsel %vm788_vm15, %v3170_v20, %v785_v37 }
 0xa3a   :  { %v794_v55 = vsel %vm791_vm4, %v793_v42, %v789_v59 }
 0xa3b   :  { %v797_v34 = vmul.f32 %v794_v55, %v3749_v57 }
 0xa7f   :  { %v870_v33 = vpop.permute.xlu0 %869 }
 0xa80   :  { %v872_v35 = vmul.f32 %v870_v33, %v861_v32 }
 0xa82   :  { %874 = vrot.lane.b32.xlu2 %v872_v35, %s3389_s25 }
 0xa8f   :  { %v800_v45 = vpop.permute.xlu1 %799 }
 0xa90   :  { %v802_v56 = vmul.f32 %v800_v45, %v794_v55 }
 0xa92   :  { %804 = vrot.lane.b32.xlu0 %v802_v56, %s3389_s25 }
 0xadc   :  { %v875_v58 = vpop.permute.xlu2 %874 }
 0xadd   :  { %v3787_v60 = vadd.f32 %v875_v58, %v867_v31 }
 0xadf   :  { %3171 = vtanh.f32 %v3787_v60 }
 0xae5   :  { %v3172_v62 = vpop.eup %3171 }
 0xae6   :  { %880 = vrot.lane.b32.xlu1 %v3172_v62, %s3388_s24 }
 0xb04   :  { %v805_v24 = vpop.permute.xlu0 %804 }
 0xb05   :  { %v3792_v2 = vadd.f32 %v805_v24, %v797_v34  ;;  %v1023_v34 = vrot.slane %v3787_v60, 6 }
 0xb07   :  { %3173 = vtanh.f32 %v3792_v2 }
 0xb0d   :  { %v3174_v5 = vpop.eup %3173 }
 0xb0e   :  { %810 = vrot.lane.b32.xlu2 %v3174_v5, %s3388_s24 }
 0xb58   :  { %v881_v43 = vpop.permute.xlu1 %880 }
 0xb59   :  { %v883_v8 = vmul.f32 %v881_v43, %v861_v32 }
 0xb5b   :  { %907 = vrot.lane.b32.xlu0 %v883_v8, %s3389_s25 }
 0xb68   :  { %v811_v9 = vpop.permute.xlu2 %810 }
 0xb69   :  { %v3797_v3 = vmul.f32 %v811_v9, %v794_v55 }
 0xb6b   :  { %815 = vrot.lane.b32.xlu1 %v3797_v3, %s3389_s25 }
 0xbcd   :  { %v908_v4 = vpop.permute.xlu0 %907 }
 0xbce   :  { %3007 = vmatmul.msk.f32.vlgmr.msra.gmra.mxu2 %vm189_vm8, %v908_v4  ;;  %3009 = vmatmul.msk.f32.vlgmr.msrb.gmra.mxu3 %vm189_vm8, %v908_v4 }
 0xbcf   :  { %1400 = vmatpush.msrb.mxu3 %v3576_v50  ;;  %1374 = vmatpush.msra.mxu2 %v3548_v46  ;;  %v3818_v46 = vld [vmem:[%s4552_s4 + $0x18] sm:$0xff] }
 0xbd1   :  { %1401 = vmatpush.msrb.mxu3 %v3585_v51  ;;  %1375 = vmatpush.msra.mxu2 %v3553_v47  ;;  %v3824_v47 = vld [vmem:[%s4552_s4 + $0x10] sm:$0xff] }
 0xbd3   :  { %1402 = vmatpush.msrb.mxu3 %v3593_v52  ;;  %1376 = vmatpush.msra.mxu2 %v3560_v48  ;;  %v3830_v48 = vld [vmem:[%s4552_s4 + $0x8] sm:$0xff] }
 0xbd5   :  { %1403 = vmatpush.msrb.mxu3 %v3601_v53  ;;  %1377 = vmatpush.msra.mxu2 %v3568_v49  ;;  %v3836_v49 = vld [vmem:[%s4552_s4] sm:$0xff] }
 0xbdd   :  { %v3811_v57 = vpop.permute.xlu1 %815 }
 0xbde   :  { %3006 = vmatmul.msk.f32.vlgmr.msra.gmra.mxu1 %vm189_vm8, %v3811_v57 }
 0xbdf   :  { %1308 = vmatpush.msra.mxu1 %v3818_v46 }
 0xbe1   :  { %1309 = vmatpush.msra.mxu1 %v3824_v47 }
 0xbe3   :  { %1310 = vmatpush.msra.mxu1 %v3830_v48 }
 0xbe5   :  { %1311 = vmatpush.msra.mxu1 %v3836_v49 }
 0xc51   :  { %v995_v50 = vpop.f32.mrf.mxu3  ;;  %v928_v53 = vpop.f32.mrf.mxu2 }
 0xc52   :  { %v999_v51 = vrot.slane %v995_v50, 6 }
 0xc54   :  { %v1001_v52 = vadd.f32 %v999_v51, %v3778_v1 }
 0xc56   :  { %3175 = vtanh.f32 %v1001_v52  ;;  %v3010_v12 = vmul.f32 -1.442695, %v1001_v52 }
 0xc5b   :  { %v903_v6 = vpop.f32.mrf.mxu1 }
 0xc5c   :  { %v3176_v7 = vpop.eup %3175  ;;  %v929_v21 = vadd.f32 %v928_v53, %v903_v6 }
 0xc5d   :  { %1027 = vrot.lane.b32.xlu2 %v3176_v7, %s3388_s24 }
 0xc5e   :  { %v931_v16 = vadd.f32 %v3629_v61, %v929_v21  ;;  %v3865_v21 = vld [vmem:[%s4556_s6 + $0x18] sm:$0xff] }
 0xc60   :  { %3177 = vtanh.f32 %v931_v16  ;;  %v3008_v19 = vmul.f32 -1.442695, %v931_v16  ;;  %v3871_v16 = vld [vmem:[%s4555_s7 + $0x18] sm:$0xff] }
 0xc61   :  { %3179 = vpow2.f32 %v3010_v12  ;;  %v3883_v12 = vld [vmem:[%s4555_s7 + $0x10] sm:$0xff] }
 0xc66   :  { %v3178_v11 = vpop.eup %3177 }
 0xc67   :  { %954 = vrot.lane.b32.xlu0 %v3178_v11, %s3388_s24  ;;  %v3180_v13 = vpop.eup %3179  ;;  %v3877_v11 = vld [vmem:[%s4556_s6 + $0x10] sm:$0xff] }
 0xc68   :  { %v1005_v14 = vadd.f32 1.0, %v3180_v13  ;;  %v3889_v13 = vld [vmem:[%s4556_s6 + $0x8] sm:$0xff] }
 0xc6a   :  { %3181 = vrcp.f32 %v1005_v14  ;;  %v1017_v23 = vand.u32 2147483648, %v1005_v14  ;;  %vm1011_vm5 = vweird.f32 %v1005_v14  ;;  %v1015_v25 = vand.u32 2147483647, %v1005_v14 }
 0xc6b   :  { %3183 = vpow2.f32 %v3008_v19 }
 0xc6c   :  { %v1018_v27 = vor.u32 1.1754944e-38, %v1017_v23  ;;  %vm1016_vm7 = vcmp.eq.f32.partialorder %v1015_v25, 8.507059e+37 }
 0xc70   :  { %v3182_v15 = vpop.eup %3181 }
 0xc71   :  { %v1007_v17 = vmul.f32 %v3182_v15, %v1005_v14  ;;  %vm1012_vm3 = vweird.f32 %v3182_v15  ;;  %v3184_v32 = vpop.eup %3183  ;;  %v3895_v14 = vld [vmem:[%s4555_s7 + $0x8] sm:$0xff] }
 0xc72   :  { %vm1013_vm6 = vmor %vm1011_vm5, %vm1012_vm3  ;;  %v935_v54 = vadd.f32 1.0, %v3184_v32 }
 0xc73   :  { %v1008_v18 = vsub.f32 1.0, %v1007_v17  ;;  %v3907_v17 = vld [vmem:[%s4555_s7] sm:$0xff] }
 0xc74   :  { %3185 = vrcp.f32 %v935_v54  ;;  %v947_v45 = vand.u32 2147483648, %v935_v54  ;;  %vm941_vm10 = vweird.f32 %v935_v54  ;;  %v945_v55 = vand.u32 2147483647, %v935_v54 }
 0xc75   :  { %v1009_v20 = vmul.f32 %v3182_v15, %v1008_v18 }
 0xc76   :  { %v948_v44 = vor.u32 1.1754944e-38, %v947_v45  ;;  %vm946_vm12 = vcmp.eq.f32.partialorder %v945_v55, 8.507059e+37 }
 0xc77   :  { %v1010_v22 = vadd.f32 %v3182_v15, %v1009_v20 }
 0xc79   :  { %v1014_v26 = vsel %vm1013_vm6, %v3182_v15, %v1010_v22  ;;  %v3901_v15 = vld [vmem:[%s4556_s6] sm:$0xff] }
 0xc7a   :  { %v1019_v35 = vsel %vm1016_vm7, %v1018_v27, %v1014_v26  ;;  %v3186_v37 = vpop.eup %3185 }
 0xc7b   :  { %v937_v38 = vmul.f32 %v3186_v37, %v935_v54  ;;  %vm942_vm9 = vweird.f32 %v3186_v37  ;;  %v1025_v24 = vmul.f32 %v1023_v34, %v1019_v35 }
 0xc7c   :  { %vm943_vm11 = vmor %vm941_vm10, %vm942_vm9 }
 0xc7d   :  { %v938_v39 = vsub.f32 1.0, %v937_v38 }
 0xc7f   :  { %v939_v59 = vmul.f32 %v3186_v37, %v938_v39 }
 0xc81   :  { %v940_v42 = vadd.f32 %v3186_v37, %v939_v59 }
 0xc83   :  { %v944_v56 = vsel %vm943_vm11, %v3186_v37, %v940_v42 }
 0xc84   :  { %v949_v58 = vsel %vm946_vm12, %v948_v44, %v944_v56 }
 0xc85   :  { %v952_v9 = vmul.f32 %v949_v58, %v3792_v2 }
 0xcb7   :  { %v1028_v33 = vpop.permute.xlu2 %1027 }
 0xcb8   :  { %v1030_v36 = vmul.f32 %v1028_v33, %v1019_v35 }
 0xcba   :  { %1032 = vrot.lane.b32.xlu1 %v1030_v36, %s3389_s25 }
 0xcd9   :  { %v955_v31 = vpop.permute.xlu0 %954 }
 0xcda   :  { %v957_v62 = vmul.f32 %v955_v31, %v949_v58 }
 0xcdc   :  { %959 = vrot.lane.b32.xlu2 %v957_v62, %s3389_s25 }
 0xd2c   :  { %v1033_v5 = vpop.permute.xlu1 %1032 }
 0xd2d   :  { %v3846_v43 = vadd.f32 %v1033_v5, %v1025_v24 }
 0xd2f   :  { %3187 = vtanh.f32 %v3846_v43 }
 0xd35   :  { %v3188_v8 = vpop.eup %3187 }
 0xd36   :  { %1038 = vrot.lane.b32.xlu0 %v3188_v8, %s3388_s24  ;;  %v960_v4 = vpop.permute.xlu2 %959 }
 0xd37   :  { %v3851_v50 = vadd.f32 %v960_v4, %v952_v9 }
 0xd39   :  { %3189 = vtanh.f32 %v3851_v50 }
 0xd3f   :  { %v3190_v51 = vpop.eup %3189 }
 0xd40   :  { %965 = vrot.lane.b32.xlu1 %v3190_v51, %s3388_s24 }
 0xda8   :  { %v1039_v60 = vpop.permute.xlu0 %1038 }
 0xda9   :  { %v1041_v52 = vmul.f32 %v1039_v60, %v1019_v35 }
 0xdab   :  { %v1065_v53 = vrot.slane %v1041_v52, 2 }
 0xdad   :  { %1066 = vrot.lane.b32.xlu2 %v1065_v53, %s3389_s25 }
 0xdb2   :  { %v966_v6 = vpop.permute.xlu1 %965 }
 0xdb3   :  { %v3856_v7 = vmul.f32 %v966_v6, %v949_v58 }
 0xdb5   :  { %970 = vrot.lane.b32.xlu0 %v3856_v7, %s3389_s25 }
 0xe07   :  { %v1067_v2 = vpop.permute.xlu2 %1066 }
 0xe08   :  { %3012 = vmatmul.msk.f32.vlgmr.msrb.gmra.mxu1 %vm189_vm8, %v1067_v2  ;;  %3014 = vmatmul.msk.f32.vlgmr.msrb.gmra.mxu2 %vm189_vm8, %v1067_v2 }
 0xe09   :  { %1555 = vmatpush.msrb.mxu2 %v3865_v21  ;;  %1530 = vmatpush.msrb.mxu1 %v3871_v16 }
 0xe0b   :  { %1556 = vmatpush.msrb.mxu2 %v3877_v11  ;;  %1531 = vmatpush.msrb.mxu1 %v3883_v12 }
 0xe0d   :  { %1557 = vmatpush.msrb.mxu2 %v3889_v13  ;;  %1532 = vmatpush.msrb.mxu1 %v3895_v14 }
 0xe0f   :  { %1558 = vmatpush.msrb.mxu2 %v3901_v15  ;;  %1533 = vmatpush.msrb.mxu1 %v3907_v17 }
 0xe27   :  { %v3910_v18 = vpop.permute.xlu0 %970 }
 0xe28   :  { %3011 = vmatmul.msk.f32.vlgmr.msrb.gmra.mxu0 %vm189_vm8, %v3910_v18 }
 0xe29   :  { %1467 = vmatpush.msrb.mxu0 %v3818_v46 }
 0xe2b   :  { %1468 = vmatpush.msrb.mxu0 %v3824_v47 }
 0xe2d   :  { %1469 = vmatpush.msrb.mxu0 %v3830_v48 }
 0xe2f   :  { %1470 = vmatpush.msrb.mxu0 %v3836_v49 }
 0xe85   :  { %v1087_v25 = vpop.f32.mrf.mxu1 }
 0xe8b   :  { %v1154_v19 = vpop.f32.mrf.mxu2 }
 0xe8c   :  { %v1158_v20 = vrot.slane %v1154_v19, 4 }
 0xe8e   :  { %v1160_v22 = vadd.f32 %v1158_v20, %v3778_v1 }
 0xe90   :  { %3191 = vtanh.f32 %v1160_v22  ;;  %v3015_v35 = vmul.f32 -1.442695, %v1160_v22  ;;  %v1182_v22 = vrot.slane %v3846_v43, 6 }
 0xe96   :  { %v3192_v23 = vpop.eup %3191 }
 0xe97   :  { %1186 = vrot.lane.b32.xlu1 %v3192_v23, %s3388_s24 }
 0xea5   :  { %v1061_v26 = vpop.f32.mrf.mxu0 }
 0xea6   :  { %v1088_v27 = vadd.f32 %v1087_v25, %v1061_v26 }
 0xea8   :  { %v1090_v32 = vadd.f32 %v3629_v61, %v1088_v27 }
 0xeaa   :  { %3193 = vtanh.f32 %v1090_v32  ;;  %v3013_v36 = vmul.f32 -1.442695, %v1090_v32 }
 0xeab   :  { %3195 = vpow2.f32 %v3015_v35 }
 0xeac   :  { %3197 = vpow2.f32 %v3013_v36 }
 0xeb0   :  { %v3194_v33 = vpop.eup %3193 }
 0xeb1   :  { %1113 = vrot.lane.b32.xlu2 %v3194_v33, %s3388_s24  ;;  %v3196_v54 = vpop.eup %3195 }
 0xeb2   :  { %v3198_v37 = vpop.eup %3197  ;;  %v1164_v38 = vadd.f32 1.0, %v3196_v54 }
 0xeb3   :  { %v1094_v39 = vadd.f32 1.0, %v3198_v37 }
 0xeb4   :  { %3199 = vrcp.f32 %v1164_v38  ;;  %v1176_v62 = vand.u32 2147483648, %v1164_v38  ;;  %vm1170_vm14 = vweird.f32 %v1164_v38  ;;  %v1174_v34 = vand.u32 2147483647, %v1164_v38 }
 0xeb5   :  { %3201 = vrcp.f32 %v1094_v39  ;;  %v1106_v5 = vand.u32 2147483648, %v1094_v39  ;;  %vm1100_vm3 = vweird.f32 %v1094_v39  ;;  %v1104_v9 = vand.u32 2147483647, %v1094_v39 }
 0xeb6   :  { %v1177_v4 = vor.u32 1.1754944e-38, %v1176_v62  ;;  %vm1175_vm6 = vcmp.eq.f32.partialorder %v1174_v34, 8.507059e+37 }
 0xeb7   :  { %v1107_v53 = vor.u32 1.1754944e-38, %v1106_v5  ;;  %vm1105_vm7 = vcmp.eq.f32.partialorder %v1104_v9, 8.507059e+37 }
 0xeba   :  { %v3200_v59 = vpop.eup %3199 }
 0xebb   :  { %v3202_v42 = vpop.eup %3201  ;;  %v1166_v45 = vmul.f32 %v3200_v59, %v1164_v38  ;;  %vm1171_vm13 = vweird.f32 %v3200_v59 }
 0xebc   :  { %v1096_v55 = vmul.f32 %v3202_v42, %v1094_v39  ;;  %vm1101_vm15 = vweird.f32 %v3202_v42  ;;  %vm1172_vm4 = vmor %vm1170_vm14, %vm1171_vm13 }
 0xebd   :  { %v1167_v56 = vsub.f32 1.0, %v1166_v45  ;;  %vm1102_vm5 = vmor %vm1100_vm3, %vm1101_vm15 }
 0xebe   :  { %v1097_v61 = vsub.f32 1.0, %v1096_v55 }
 0xebf   :  { %v1168_v44 = vmul.f32 %v3200_v59, %v1167_v56 }
 0xec0   :  { %v1098_v31 = vmul.f32 %v3202_v42, %v1097_v61 }
 0xec1   :  { %v1169_v58 = vadd.f32 %v3200_v59, %v1168_v44 }
 0xec2   :  { %v1099_v24 = vadd.f32 %v3202_v42, %v1098_v31  ;;  %v3961_v31 = vld [vmem:[%s4557_s8] ss:$0 sm:$0xff] }
 0xec3   :  { %v1173_v8 = vsel %vm1172_vm4, %v3200_v59, %v1169_v58 }
 0xec4   :  { %v1103_v51 = vsel %vm1102_vm5, %v3202_v42, %v1099_v24  ;;  %v1178_v60 = vsel %vm1175_vm6, %v1177_v4, %v1173_v8 }
 0xec5   :  { %v1108_v19 = vsel %vm1105_vm7, %v1107_v53, %v1103_v51  ;;  %v1184_v23 = vmul.f32 %v1182_v22, %v1178_v60 }
 0xec6   :  { %v1111_v27 = vmul.f32 %v1108_v19, %v3851_v50 }
 0xf09   :  { %v1187_v52 = vpop.permute.xlu1 %1186 }
 0xf0a   :  { %v1189_v6 = vmul.f32 %v1187_v52, %v1178_v60 }
 0xf0b   :  { %v1114_v2 = vpop.permute.xlu2 %1113 }
 0xf0c   :  { %v1116_v20 = vmul.f32 %v1114_v2, %v1108_v19  ;;  %1191 = vrot.lane.b32.xlu0 %v1189_v6, %s3389_s25 }
 0xf0e   :  { %1118 = vrot.lane.b32.xlu1 %v1116_v20, %s3389_s25 }
 0xf7e   :  { %v1192_v25 = vpop.permute.xlu0 %1191 }
 0xf7f   :  { %v3925_v26 = vadd.f32 %v1192_v25, %v1184_v23 }
 0xf80   :  { %v1119_v32 = vpop.permute.xlu1 %1118 }
 0xf81   :  { %3203 = vtanh.f32 %v3925_v26  ;;  %v3929_v33 = vadd.f32 %v1119_v32, %v1111_v27 }
 0xf83   :  { %3205 = vtanh.f32 %v3929_v33 }
 0xf87   :  { %v3204_v35 = vpop.eup %3203 }
 0xf88   :  { %1197 = vrot.lane.b32.xlu2 %v3204_v35, %s3388_s24 }
 0xf89   :  { %v3206_v36 = vpop.eup %3205 }
 0xf8a   :  { %1124 = vrot.lane.b32.xlu0 %v3206_v36, %s3388_s24 }
 0xfe2   :  { %v1198_v43 = vpop.permute.xlu2 %1197 }
 0xfe3   :  { %v1200_v54 = vmul.f32 %v1198_v43, %v1178_v60 }
 0xfe5   :  { %v1224_v37 = vrot.slane %v1200_v54, 4 }
 0xfe7   :  { %1225 = vrot.lane.b32.xlu1 %v1224_v37, %s3389_s25 }
 0xffc   :  { %v1125_v38 = vpop.permute.xlu0 %1124 }
 0xffd   :  { %v3935_v50 = vmul.f32 %v1125_v38, %v1108_v19 }
 0xfff   :  { %1129 = vrot.lane.b32.xlu2 %v3935_v50, %s3389_s25 }
0x1059   :  { %v3939_v39 = vpop.permute.xlu2 %1129  ;;  %v1226_v59 = vpop.permute.xlu1 %1225 }
0x105a   :  { %3016 = vmatmul.msk.f32.vlgmr.msra.gmra.mxu3 %vm189_vm8, %v3939_v39  ;;  %3017 = vmatmul.msk.f32.vlgmr.msra.gmra.mxu0 %vm189_vm8, %v1226_v59 }
0x105b   :  { %3019 = vmatmul.msk.f32.vlgmr.msra.gmra.mxu1 %vm189_vm8, %v1226_v59  ;;  %1622 = vmatpush.msra.mxu3 %v3818_v46 }
0x105c   :  { %1714 = vmatpush.msra.mxu1 %v3865_v21  ;;  %1688 = vmatpush.msra.mxu0 %v3871_v16 }
0x105d   :  { %1623 = vmatpush.msra.mxu3 %v3824_v47 }
0x105e   :  { %1715 = vmatpush.msra.mxu1 %v3877_v11  ;;  %1689 = vmatpush.msra.mxu0 %v3883_v12 }
0x105f   :  { %1624 = vmatpush.msra.mxu3 %v3830_v48 }
0x1060   :  { %1716 = vmatpush.msra.mxu1 %v3889_v13  ;;  %1690 = vmatpush.msra.mxu0 %v3895_v14 }
0x1061   :  { %1625 = vmatpush.msra.mxu3 %v3836_v49 }
0x1062   :  { %1717 = vmatpush.msra.mxu1 %v3901_v15  ;;  %1691 = vmatpush.msra.mxu0 %v3907_v17 }
0x10d7   :  { %v1246_v56 = vpop.f32.mrf.mxu0 }
0x10d8   :  { %v1313_v42 = vpop.f32.mrf.mxu1 }
0x10d9   :  { %v1317_v45 = vrot.slane %v1313_v42, 2 }
0x10db   :  { %v1319_v55 = vadd.f32 %v1317_v45, %v3778_v1 }
0x10dd   :  { %3207 = vtanh.f32 %v1319_v55  ;;  %v1220_v61 = vpop.f32.mrf.mxu3  ;;  %v3020_v24 = vmul.f32 -1.442695, %v1319_v55 }
0x10de   :  { %v1247_v44 = vadd.f32 %v1246_v56, %v1220_v61  ;;  %v1341_v61 = vrot.slane %v3925_v26, 6 }
0x10e0   :  { %v1249_v58 = vadd.f32 %v3961_v31, %v1247_v44 }
0x10e2   :  { %3209 = vtanh.f32 %v1249_v58  ;;  %v3018_v1 = vmul.f32 -1.442695, %v1249_v58 }
0x10e3   :  { %v3208_v62 = vpop.eup %3207  ;;  %3211 = vpow2.f32 %v3020_v24 }
0x10e4   :  { %1345 = vrot.lane.b32.xlu0 %v3208_v62, %s3388_s24  ;;  %3213 = vpow2.f32 %v3018_v1 }
0x10e8   :  { %v3210_v34 = vpop.eup %3209 }
0x10e9   :  { %1272 = vrot.lane.b32.xlu1 %v3210_v34, %s3388_s24  ;;  %v3212_v5 = vpop.eup %3211 }
0x10ea   :  { %v1323_v8 = vadd.f32 1.0, %v3212_v5  ;;  %v3214_v9 = vpop.eup %3213 }
0x10eb   :  { %v1253_v4 = vadd.f32 1.0, %v3214_v9 }
0x10ec   :  { %3215 = vrcp.f32 %v1323_v8  ;;  %v1335_v22 = vand.u32 2147483648, %v1323_v8  ;;  %vm1329_vm10 = vweird.f32 %v1323_v8  ;;  %v1333_v25 = vand.u32 2147483647, %v1323_v8 }
0x10ed   :  { %3217 = vrcp.f32 %v1253_v4  ;;  %v1265_v36 = vand.u32 2147483648, %v1253_v4  ;;  %vm1259_vm14 = vweird.f32 %v1253_v4  ;;  %v1263_v37 = vand.u32 2147483647, %v1253_v4 }
0x10ee   :  { %v1336_v32 = vor.u32 1.1754944e-38, %v1335_v22  ;;  %vm1334_vm13 = vcmp.eq.f32.partialorder %v1333_v25, 8.507059e+37 }
0x10ef   :  { %v1266_v42 = vor.u32 1.1754944e-38, %v1265_v36  ;;  %vm1264_vm4 = vcmp.eq.f32.partialorder %v1263_v37, 8.507059e+37 }
0x10f2   :  { %v3216_v51 = vpop.eup %3215 }
0x10f3   :  { %v1325_v60 = vmul.f32 %v3216_v51, %v1323_v8  ;;  %v3218_v52 = vpop.eup %3217  ;;  %vm1330_vm9 = vweird.f32 %v3216_v51 }
0x10f4   :  { %v1255_v6 = vmul.f32 %v3218_v52, %v1253_v4  ;;  %vm1331_vm11 = vmor %vm1329_vm10, %vm1330_vm9  ;;  %vm1260_vm12 = vweird.f32 %v3218_v52 }
0x10f5   :  { %v1326_v53 = vsub.f32 1.0, %v1325_v60  ;;  %vm1261_vm15 = vmor %vm1259_vm14, %vm1260_vm12 }
0x10f6   :  { %v1256_v19 = vsub.f32 1.0, %v1255_v6 }
0x10f7   :  { %v1327_v2 = vmul.f32 %v3216_v51, %v1326_v53  ;;  %v4004_v53 = vld [vmem:[%s4550_s5] ss:$0 sm:$0xff] }
0x10f8   :  { %v1257_v23 = vmul.f32 %v3218_v52, %v1256_v19  ;;  %v4008_v6 = vadd.f32 %v4004_v53, %v3694_v29 }
0x10f9   :  { %v1328_v20 = vadd.f32 %v3216_v51, %v1327_v2 }
0x10fa   :  { %v1258_v35 = vadd.f32 %v3218_v52, %v1257_v23 }
0x10fb   :  { %v1332_v27 = vsel %vm1331_vm11, %v3216_v51, %v1328_v20 }
0x10fc   :  { %v1337_v54 = vsel %vm1334_vm13, %v1336_v32, %v1332_v27  ;;  %v1262_v59 = vsel %vm1261_vm15, %v3218_v52, %v1258_v35 }
0x10fd   :  { %v1267_v55 = vsel %vm1264_vm4, %v1266_v42, %v1262_v59  ;;  %v1343_v44 = vmul.f32 %v1341_v61, %v1337_v54 }
0x10fe   :  { %v1270_v24 = vmul.f32 %v1267_v55, %v3929_v33 }
0x1156   :  { %v1346_v43 = vpop.permute.xlu0 %1345 }
0x1157   :  { %v1348_v38 = vmul.f32 %v1346_v43, %v1337_v54 }
0x1159   :  { %1350 = vrot.lane.b32.xlu2 %v1348_v38, %s3389_s25 }
0x115b   :  { %v1273_v45 = vpop.permute.xlu1 %1272 }
0x115c   :  { %v1275_v56 = vmul.f32 %v1273_v45, %v1267_v55 }
0x115e   :  { %1277 = vrot.lane.b32.xlu0 %v1275_v56, %s3389_s25 }
0x11b3   :  { %v1351_v58 = vpop.permute.xlu2 %1350 }
0x11b4   :  { %v3969_v62 = vadd.f32 %v1351_v58, %v1343_v44 }
0x11b6   :  { %3219 = vtanh.f32 %v3969_v62 }
0x11bc   :  { %v3220_v34 = vpop.eup %3219 }
0x11bd   :  { %1356 = vrot.lane.b32.xlu1 %v3220_v34, %s3388_s24 }
0x11d0   :  { %v1278_v1 = vpop.permute.xlu0 %1277 }
0x11d1   :  { %v3974_v5 = vadd.f32 %v1278_v1, %v1270_v24 }
0x11d3   :  { %3221 = vtanh.f32 %v3974_v5 }
0x11d9   :  { %v3222_v8 = vpop.eup %3221 }
0x11da   :  { %1283 = vrot.lane.b32.xlu2 %v3222_v8, %s3388_s24 }
0x122f   :  { %v1357_v26 = vpop.permute.xlu1 %1356 }
0x1230   :  { %v1359_v9 = vmul.f32 %v1357_v26, %v1337_v54 }
0x1232   :  { %v1383_v4 = vrot.slane %v1359_v9, 6 }
0x1234   :  { %1384 = vrot.lane.b32.xlu0 %v1383_v4, %s3389_s25  ;;  %v1284_v51 = vpop.permute.xlu2 %1283 }
0x1235   :  { %v3979_v60 = vmul.f32 %v1284_v51, %v1267_v55 }
0x1237   :  { %1288 = vrot.lane.b32.xlu1 %v3979_v60, %s3389_s25 }
0x12a6   :  { %v1385_v33 = vpop.permute.xlu0 %1384 }
0x12a7   :  { %3022 = vmatmul.msk.f32.vlgmr.msrb.gmra.mxu3 %vm189_vm8, %v1385_v33  ;;  %3024 = vmatmul.msk.f32.vlgmr.msrb.gmra.mxu0 %vm189_vm8, %v1385_v33 }
0x12a8   :  { %1847 = vmatpush.msrb.mxu3 %v3871_v16  ;;  %1873 = vmatpush.msrb.mxu0 %v3865_v21 }
0x12a9   :  { %v3987_v52 = vpop.permute.xlu1 %1288 }
0x12aa   :  { %3021 = vmatmul.msk.f32.vlgmr.msra.gmra.mxu2 %vm189_vm8, %v3987_v52  ;;  %1848 = vmatpush.msrb.mxu3 %v3883_v12 }
0x12ab   :  { %1781 = vmatpush.msra.mxu2 %v3818_v46  ;;  %1874 = vmatpush.msrb.mxu0 %v3877_v11 }
0x12ac   :  { %1849 = vmatpush.msrb.mxu3 %v3895_v14 }
0x12ad   :  { %1782 = vmatpush.msra.mxu2 %v3824_v47  ;;  %1875 = vmatpush.msrb.mxu0 %v3889_v13 }
0x12ae   :  { %1850 = vmatpush.msrb.mxu3 %v3907_v17 }
0x12af   :  { %1783 = vmatpush.msra.mxu2 %v3830_v48  ;;  %1876 = vmatpush.msrb.mxu0 %v3901_v15 }
0x12b1   :  { %1784 = vmatpush.msra.mxu2 %v3836_v49 }
0x1324   :  { %v1472_v2 = vpop.f32.mrf.mxu0 }
0x1325   :  { %v1475_v19 = vadd.f32 %v1472_v2, %v4008_v6 }
0x1327   :  { %3223 = vtanh.f32 %v1475_v19  ;;  %v3025_v35 = vmul.f32 -1.442695, %v1475_v19 }
0x132a   :  { %v1405_v22 = vpop.f32.mrf.mxu3 }
0x132d   :  { %v3224_v20 = vpop.eup %3223  ;;  %v1379_v23 = vpop.f32.mrf.mxu2 }
0x132e   :  { %1501 = vrot.lane.b32.xlu2 %v3224_v20, %s3388_s24  ;;  %v1406_v25 = vadd.f32 %v1405_v22, %v1379_v23 }
0x1330   :  { %v1408_v27 = vadd.f32 %v3961_v31, %v1406_v25 }
0x1332   :  { %3225 = vtanh.f32 %v1408_v27  ;;  %v3023_v59 = vmul.f32 -1.442695, %v1408_v27  ;;  %v1497_v27 = vrot.slane %v3969_v62, 6 }
0x1333   :  { %3227 = vpow2.f32 %v3025_v35 }
0x1338   :  { %v3226_v32 = vpop.eup %3225 }
0x1339   :  { %1431 = vrot.lane.b32.xlu0 %v3226_v32, %s3388_s24  ;;  %v3228_v29 = vpop.eup %3227 }
0x133a   :  { %v1479_v36 = vadd.f32 1.0, %v3228_v29 }
0x133c   :  { %3229 = vrcp.f32 %v1479_v36  ;;  %v1491_v45 = vand.u32 2147483648, %v1479_v36  ;;  %vm1485_vm5 = vweird.f32 %v1479_v36  ;;  %v1489_v55 = vand.u32 2147483647, %v1479_v36 }
0x133d   :  { %3231 = vpow2.f32 %v3023_v59 }
0x133e   :  { %v1492_v61 = vor.u32 1.1754944e-38, %v1491_v45  ;;  %vm1490_vm7 = vcmp.eq.f32.partialorder %v1489_v55, 8.507059e+37 }
0x1342   :  { %v3230_v43 = vpop.eup %3229 }
0x1343   :  { %v1481_v54 = vmul.f32 %v3230_v43, %v1479_v36  ;;  %vm1486_vm3 = vweird.f32 %v3230_v43  ;;  %v3232_v34 = vpop.eup %3231 }
0x1344   :  { %vm1487_vm6 = vmor %vm1485_vm5, %vm1486_vm3  ;;  %v1412_v1 = vadd.f32 1.0, %v3232_v34 }
0x1345   :  { %v1482_v37 = vsub.f32 1.0, %v1481_v54 }
0x1346   :  { %3233 = vrcp.f32 %v1412_v1  ;;  %v1424_v33 = vand.u32 2147483648, %v1412_v1  ;;  %vm1418_vm10 = vweird.f32 %v1412_v1  ;;  %v1422_v2 = vand.u32 2147483647, %v1412_v1 }
0x1347   :  { %v1483_v38 = vmul.f32 %v3230_v43, %v1482_v37 }
0x1348   :  { %v1425_v20 = vor.u32 1.1754944e-38, %v1424_v33  ;;  %vm1423_vm12 = vcmp.eq.f32.partialorder %v1422_v2, 8.507059e+37 }
0x1349   :  { %v1484_v42 = vadd.f32 %v3230_v43, %v1483_v38 }
0x134b   :  { %v1488_v56 = vsel %vm1487_vm6, %v3230_v43, %v1484_v42 }
0x134c   :  { %v1493_v44 = vsel %vm1490_vm7, %v1492_v61, %v1488_v56  ;;  %v3234_v8 = vpop.eup %3233 }
0x134d   :  { %v1414_v26 = vmul.f32 %v3234_v8, %v1412_v1  ;;  %vm1419_vm9 = vweird.f32 %v3234_v8  ;;  %v1499_v32 = vmul.f32 %v1497_v27, %v1493_v44 }
0x134e   :  { %vm1420_vm11 = vmor %vm1418_vm10, %vm1419_vm9 }
0x134f   :  { %v1415_v9 = vsub.f32 1.0, %v1414_v26 }
0x1351   :  { %v1416_v4 = vmul.f32 %v3234_v8, %v1415_v9 }
0x1353   :  { %v1417_v51 = vadd.f32 %v3234_v8, %v1416_v4 }
0x1355   :  { %v1421_v19 = vsel %vm1420_vm11, %v3234_v8, %v1417_v51 }
0x1356   :  { %v1426_v23 = vsel %vm1423_vm12, %v1425_v20, %v1421_v19 }
0x1357   :  { %v1429_v43 = vmul.f32 %v1426_v23, %v3974_v5 }
0x1388   :  { %v1502_v58 = vpop.permute.xlu2 %1501 }
0x1389   :  { %v1504_v24 = vmul.f32 %v1502_v58, %v1493_v44 }
0x138b   :  { %1506 = vrot.lane.b32.xlu1 %v1504_v24, %s3389_s25 }
0x13ab   :  { %v1432_v22 = vpop.permute.xlu0 %1431 }
0x13ac   :  { %v1434_v25 = vmul.f32 %v1432_v22, %v1426_v23 }
0x13ae   :  { %1436 = vrot.lane.b32.xlu2 %v1434_v25, %s3389_s25 }
0x13fd   :  { %v1507_v35 = vpop.permute.xlu1 %1506 }
0x13fe   :  { %v4017_v29 = vadd.f32 %v1507_v35, %v1499_v32 }
0x1400   :  { %3235 = vtanh.f32 %v4017_v29 }
0x1406   :  { %v3236_v36 = vpop.eup %3235 }
0x1407   :  { %1512 = vrot.lane.b32.xlu0 %v3236_v36, %s3388_s24 }
0x1408   :  { %v1437_v54 = vpop.permute.xlu2 %1436 }
0x1409   :  { %v4022_v37 = vadd.f32 %v1437_v54, %v1429_v43 }
0x140b   :  { %3237 = vtanh.f32 %v4022_v37 }
0x1411   :  { %v3238_v38 = vpop.eup %3237 }
0x1412   :  { %1442 = vrot.lane.b32.xlu1 %v3238_v38, %s3388_s24 }
0x1479   :  { %v1513_v62 = vpop.permute.xlu0 %1512 }
0x147a   :  { %v1515_v59 = vmul.f32 %v1513_v62, %v1493_v44 }
0x147c   :  { %1539 = vrot.lane.b32.xlu2 %v1515_v59, %s3389_s25 }
0x1484   :  { %v1443_v42 = vpop.permute.xlu1 %1442 }
0x1485   :  { %v4027_v45 = vmul.f32 %v1443_v42, %v1426_v23 }
0x1487   :  { %1447 = vrot.lane.b32.xlu0 %v4027_v45, %s3389_s25 }
0x14d6   :  { %v1540_v55 = vpop.permute.xlu2 %1539 }
0x14d7   :  { %3027 = vmatmul.msk.f32.vlgmr.msrb.gmra.mxu2 %vm189_vm8, %v1540_v55  ;;  %3029 = vmatmul.msk.f32.vlgmr.msra.gmra.mxu3 %vm189_vm8, %v1540_v55 }
0x14d8   :  { %2032 = vmatpush.msra.mxu3 %v3865_v21  ;;  %2006 = vmatpush.msrb.mxu2 %v3871_v16 }
0x14da   :  { %2033 = vmatpush.msra.mxu3 %v3877_v11  ;;  %2007 = vmatpush.msrb.mxu2 %v3883_v12 }
0x14dc   :  { %2034 = vmatpush.msra.mxu3 %v3889_v13  ;;  %2008 = vmatpush.msrb.mxu2 %v3895_v14 }
0x14de   :  { %2035 = vmatpush.msra.mxu3 %v3901_v15  ;;  %2009 = vmatpush.msrb.mxu2 %v3907_v17 }
0x14f9   :  { %v4041_v5 = vpop.permute.xlu0 %1447 }
0x14fa   :  { %3026 = vmatmul.msk.f32.vlgmr.msrb.gmra.mxu1 %vm189_vm8, %v4041_v5 }
0x14fb   :  { %1940 = vmatpush.msrb.mxu1 %v3818_v46 }
0x14fd   :  { %1941 = vmatpush.msrb.mxu1 %v3824_v47 }
0x14ff   :  { %1942 = vmatpush.msrb.mxu1 %v3830_v48 }
0x1501   :  { %1943 = vmatpush.msrb.mxu1 %v3836_v49 }
0x155a   :  { %v1627_v56 = vpop.f32.mrf.mxu3  ;;  %v1560_v34 = vpop.f32.mrf.mxu2 }
0x155b   :  { %v1631_v61 = vrot.slane %v1627_v56, 6 }
0x155d   :  { %v1633_v44 = vadd.f32 %v1631_v61, %v4008_v6 }
0x155f   :  { %3239 = vtanh.f32 %v1633_v44  ;;  %v3030_v9 = vmul.f32 -1.442695, %v1633_v44 }
0x1565   :  { %v3240_v58 = vpop.eup %3239 }
0x1566   :  { %1659 = vrot.lane.b32.xlu1 %v3240_v58, %s3388_s24 }
0x1577   :  { %v1535_v24 = vpop.f32.mrf.mxu1 }
0x1578   :  { %v1561_v1 = vadd.f32 %v1560_v34, %v1535_v24 }
0x157a   :  { %v1563_v8 = vadd.f32 %v3961_v31, %v1561_v1 }
0x157c   :  { %3241 = vtanh.f32 %v1563_v8  ;;  %v3028_v4 = vmul.f32 -1.442695, %v1563_v8 }
0x157d   :  { %3243 = vpow2.f32 %v3030_v9  ;;  %v1655_v9 = vrot.slane %v4017_v29, 6 }
0x157e   :  { %3245 = vpow2.f32 %v3028_v4 }
0x1582   :  { %v3242_v26 = vpop.eup %3241 }
0x1583   :  { %1586 = vrot.lane.b32.xlu2 %v3242_v26, %s3388_s24  ;;  %v3244_v51 = vpop.eup %3243 }
0x1584   :  { %v1637_v33 = vadd.f32 1.0, %v3244_v51  ;;  %v3246_v2 = vpop.eup %3245 }
0x1585   :  { %v1567_v19 = vadd.f32 1.0, %v3246_v2 }
0x1586   :  { %3247 = vrcp.f32 %v1637_v33  ;;  %v1649_v43 = vand.u32 2147483648, %v1637_v33  ;;  %vm1643_vm14 = vweird.f32 %v1637_v33  ;;  %v1647_v54 = vand.u32 2147483647, %v1637_v33 }
0x1587   :  { %3249 = vrcp.f32 %v1567_v19  ;;  %v1579_v61 = vand.u32 2147483648, %v1567_v19  ;;  %vm1573_vm5 = vweird.f32 %v1567_v19  ;;  %v1577_v58 = vand.u32 2147483647, %v1567_v19 }
0x1588   :  { %v1650_v59 = vor.u32 1.1754944e-38, %v1649_v43  ;;  %vm1648_vm4 = vcmp.eq.f32.partialorder %v1647_v54, 8.507059e+37 }
0x1589   :  { %v1580_v24 = vor.u32 1.1754944e-38, %v1579_v61  ;;  %vm1578_vm7 = vcmp.eq.f32.partialorder %v1577_v58, 8.507059e+37 }
0x158c   :  { %v3248_v20 = vpop.eup %3247 }
0x158d   :  { %v1639_v22 = vmul.f32 %v3248_v20, %v1637_v33  ;;  %v3250_v23 = vpop.eup %3249  ;;  %vm1644_vm13 = vweird.f32 %v3248_v20 }
0x158e   :  { %v1569_v27 = vmul.f32 %v3250_v23, %v1567_v19  ;;  %vm1645_vm15 = vmor %vm1643_vm14, %vm1644_vm13  ;;  %vm1574_vm3 = vweird.f32 %v3250_v23 }
0x158f   :  { %v1640_v25 = vsub.f32 1.0, %v1639_v22  ;;  %vm1575_vm6 = vmor %vm1573_vm5, %vm1574_vm3 }
0x1590   :  { %v1570_v35 = vsub.f32 1.0, %v1569_v27 }
0x1591   :  { %v1641_v32 = vmul.f32 %v3248_v20, %v1640_v25 }
0x1592   :  { %v1571_v38 = vmul.f32 %v3250_v23, %v1570_v35 }
0x1593   :  { %v1642_v36 = vadd.f32 %v3248_v20, %v1641_v32 }
0x1594   :  { %v1572_v42 = vadd.f32 %v3250_v23, %v1571_v38 }
0x1595   :  { %v1646_v62 = vsel %vm1645_vm15, %v3248_v20, %v1642_v36 }
0x1596   :  { %v1651_v56 = vsel %vm1648_vm4, %v1650_v59, %v1646_v62  ;;  %v1576_v34 = vsel %vm1575_vm6, %v3250_v23, %v1572_v42 }
0x1597   :  { %v1581_v8 = vsel %vm1578_vm7, %v1580_v24, %v1576_v34  ;;  %v1657_v4 = vmul.f32 %v1655_v9, %v1651_v56 }
0x1598   :  { %v1584_v2 = vmul.f32 %v1581_v8, %v4022_v37 }
0x15d8   :  { %v1660_v55 = vpop.permute.xlu1 %1659 }
0x15d9   :  { %v1662_v44 = vmul.f32 %v1660_v55, %v1651_v56 }
0x15db   :  { %1664 = vrot.lane.b32.xlu0 %v1662_v44, %s3389_s25 }
0x15dd   :  { %v1587_v1 = vpop.permute.xlu2 %1586 }
0x15de   :  { %v1589_v26 = vmul.f32 %v1587_v1, %v1581_v8 }
0x15e0   :  { %1591 = vrot.lane.b32.xlu1 %v1589_v26, %s3389_s25 }
0x164d   :  { %v1665_v51 = vpop.permute.xlu0 %1664 }
0x164e   :  { %v4056_v33 = vadd.f32 %v1665_v51, %v1657_v4 }
0x1650   :  { %3251 = vtanh.f32 %v4056_v33 }
0x1652   :  { %v1592_v19 = vpop.permute.xlu1 %1591 }
0x1653   :  { %v4060_v20 = vadd.f32 %v1592_v19, %v1584_v2 }
0x1655   :  { %3253 = vtanh.f32 %v4060_v20 }
0x1656   :  { %v3252_v22 = vpop.eup %3251 }
0x1657   :  { %1670 = vrot.lane.b32.xlu2 %v3252_v22, %s3388_s24 }
0x165b   :  { %v3254_v23 = vpop.eup %3253 }
0x165c   :  { %1597 = vrot.lane.b32.xlu0 %v3254_v23, %s3388_s24 }
0x16b1   :  { %v1671_v29 = vpop.permute.xlu2 %1670 }
0x16b2   :  { %v1673_v25 = vmul.f32 %v1671_v29, %v1651_v56 }
0x16b4   :  { %v1697_v27 = vrot.slane %v1673_v25, 2 }
0x16b6   :  { %1698 = vrot.lane.b32.xlu1 %v1697_v27, %s3389_s25 }
0x16ce   :  { %v1598_v32 = vpop.permute.xlu0 %1597 }
0x16cf   :  { %v4066_v35 = vmul.f32 %v1598_v32, %v1581_v8 }
0x16d1   :  { %1602 = vrot.lane.b32.xlu2 %v4066_v35, %s3389_s25 }
0x1728   :  { %v1699_v37 = vpop.permute.xlu1 %1698 }
0x1729   :  { %3032 = vmatmul.msk.f32.vlgmr.msra.gmra.mxu1 %vm189_vm8, %v1699_v37  ;;  %3034 = vmatmul.msk.f32.vlgmr.msra.gmra.mxu2 %vm189_vm8, %v1699_v37 }
0x172a   :  { %2187 = vmatpush.msra.mxu2 %v3865_v21  ;;  %2162 = vmatpush.msra.mxu1 %v3871_v16 }
0x172b   :  { %v4074_v36 = vpop.permute.xlu2 %1602 }
0x172c   :  { %2188 = vmatpush.msra.mxu2 %v3877_v11  ;;  %2163 = vmatpush.msra.mxu1 %v3883_v12 }
0x172d   :  { %3031 = vmatmul.msk.f32.vlgmr.msra.gmra.mxu0 %vm189_vm8, %v4074_v36 }
0x172e   :  { %2099 = vmatpush.msra.mxu0 %v3818_v46  ;;  %2189 = vmatpush.msra.mxu2 %v3889_v13 }
0x172f   :  { %2164 = vmatpush.msra.mxu1 %v3895_v14 }
0x1730   :  { %2100 = vmatpush.msra.mxu0 %v3824_v47  ;;  %2190 = vmatpush.msra.mxu2 %v3901_v15 }
0x1731   :  { %2165 = vmatpush.msra.mxu1 %v3907_v17 }
0x1732   :  { %2101 = vmatpush.msra.mxu0 %v3830_v48 }
0x1734   :  { %2102 = vmatpush.msra.mxu0 %v3836_v49 }
0x17a6   :  { %v1719_v43 = vpop.f32.mrf.mxu1 }
0x17aa   :  { %v1693_v54 = vpop.f32.mrf.mxu0 }
0x17ab   :  { %v1720_v38 = vadd.f32 %v1719_v43, %v1693_v54 }
0x17ac   :  { %v1786_v62 = vpop.f32.mrf.mxu2 }
0x17ad   :  { %v1722_v46 = vadd.f32 %v3961_v31, %v1720_v38  ;;  %v1790_v59 = vrot.slane %v1786_v62, 4 }
0x17af   :  { %3255 = vtanh.f32 %v1722_v46  ;;  %v1792_v42 = vadd.f32 %v1790_v59, %v4008_v6  ;;  %v3033_v48 = vmul.f32 -1.442695, %v1722_v46 }
0x17b1   :  { %3257 = vtanh.f32 %v1792_v42  ;;  %v3035_v56 = vmul.f32 -1.442695, %v1792_v42 }
0x17b2   :  { %3259 = vpow2.f32 %v3033_v48 }
0x17b3   :  { %3261 = vpow2.f32 %v3035_v56 }
0x17b5   :  { %v3256_v47 = vpop.eup %3255 }
0x17b6   :  { %1745 = vrot.lane.b32.xlu1 %v3256_v47, %s3388_s24  ;;  %v1814_v47 = vrot.slane %v4056_v33, 6 }
0x17b7   :  { %v3258_v55 = vpop.eup %3257 }
0x17b8   :  { %1818 = vrot.lane.b32.xlu0 %v3258_v55, %s3388_s24  ;;  %v3260_v49 = vpop.eup %3259 }
0x17b9   :  { %v3262_v61 = vpop.eup %3261  ;;  %v1726_v44 = vadd.f32 1.0, %v3260_v49 }
0x17ba   :  { %v1796_v58 = vadd.f32 1.0, %v3262_v61 }
0x17bb   :  { %3263 = vrcp.f32 %v1726_v44  ;;  %v1738_v19 = vand.u32 2147483648, %v1726_v44  ;;  %vm1732_vm10 = vweird.f32 %v1726_v44  ;;  %v1736_v22 = vand.u32 2147483647, %v1726_v44 }
0x17bc   :  { %3265 = vrcp.f32 %v1796_v58  ;;  %v1808_v25 = vand.u32 2147483648, %v1796_v58  ;;  %vm1802_vm13 = vweird.f32 %v1796_v58  ;;  %v1806_v32 = vand.u32 2147483647, %v1796_v58 }
0x17bd   :  { %v1739_v27 = vor.u32 1.1754944e-38, %v1738_v19  ;;  %vm1737_vm14 = vcmp.eq.f32.partialorder %v1736_v22, 8.507059e+37  ;;  %v4138_v19 = vld [vmem:[%s4552_s4] sm:$0xff] }
0x17be   :  { %v1809_v62 = vor.u32 1.1754944e-38, %v1808_v25  ;;  %vm1807_vm4 = vcmp.eq.f32.partialorder %v1806_v32, 8.507059e+37 }
0x17c1   :  { %v3264_v34 = vpop.eup %3263 }
0x17c2   :  { %v3266_v24 = vpop.eup %3265  ;;  %v1728_v1 = vmul.f32 %v3264_v34, %v1726_v44  ;;  %vm1733_vm9 = vweird.f32 %v3264_v34 }
0x17c3   :  { %v1798_v8 = vmul.f32 %v3266_v24, %v1796_v58  ;;  %vm1734_vm11 = vmor %vm1732_vm10, %vm1733_vm9  ;;  %vm1803_vm12 = vweird.f32 %v3266_v24 }
0x17c4   :  { %v1729_v26 = vsub.f32 1.0, %v1728_v1  ;;  %vm1804_vm15 = vmor %vm1802_vm13, %vm1803_vm12 }
0x17c5   :  { %v1799_v9 = vsub.f32 1.0, %v1798_v8 }
0x17c6   :  { %v1730_v4 = vmul.f32 %v3264_v34, %v1729_v26 }
0x17c7   :  { %v1800_v51 = vmul.f32 %v3266_v24, %v1799_v9  ;;  %v4116_v9 = vld [vmem:[%s4552_s4 + $0x18] sm:$0xff] }
0x17c8   :  { %v1731_v2 = vadd.f32 %v3264_v34, %v1730_v4  ;;  %v4122_v4 = vld [vmem:[%s4552_s4 + $0x10] sm:$0xff] }
0x17c9   :  { %v1801_v23 = vadd.f32 %v3266_v24, %v1800_v51 }
0x17ca   :  { %v1735_v29 = vsel %vm1734_vm11, %v3264_v34, %v1731_v2  ;;  %v4130_v2 = vld [vmem:[%s4552_s4 + $0x8] sm:$0xff] }
0x17cb   :  { %v1740_v43 = vsel %vm1737_vm14, %v1739_v27, %v1735_v29  ;;  %v1805_v54 = vsel %vm1804_vm15, %v3266_v24, %v1801_v23 }
0x17cc   :  { %v1810_v46 = vsel %vm1807_vm4, %v1809_v62, %v1805_v54  ;;  %v1743_v61 = vmul.f32 %v1740_v43, %v4060_v20 }
0x17cd   :  { %v1816_v55 = vmul.f32 %v1814_v47, %v1810_v46 }
0x1828   :  { %v1746_v37 = vpop.permute.xlu1 %1745 }
0x1829   :  { %v1748_v38 = vmul.f32 %v1746_v37, %v1740_v43 }
0x182a   :  { %v1819_v59 = vpop.permute.xlu0 %1818 }
0x182b   :  { %1750 = vrot.lane.b32.xlu0 %v1748_v38, %s3389_s25  ;;  %v1821_v42 = vmul.f32 %v1819_v59, %v1810_v46 }
0x182d   :  { %1823 = vrot.lane.b32.xlu2 %v1821_v42, %s3389_s25 }
0x1887   :  { %v1824_v48 = vpop.permute.xlu2 %1823 }
0x1888   :  { %v4095_v56 = vadd.f32 %v1824_v48, %v1816_v55 }
0x188a   :  { %3267 = vtanh.f32 %v4095_v56 }
0x1890   :  { %v3268_v49 = vpop.eup %3267 }
0x1891   :  { %1829 = vrot.lane.b32.xlu1 %v3268_v49, %s3388_s24 }
0x189d   :  { %v1751_v44 = vpop.permute.xlu0 %1750 }
0x189e   :  { %v4100_v58 = vadd.f32 %v1751_v44, %v1743_v61 }
0x18a0   :  { %3269 = vtanh.f32 %v4100_v58 }
0x18a6   :  { %v3270_v34 = vpop.eup %3269 }
0x18a7   :  { %1756 = vrot.lane.b32.xlu2 %v3270_v34, %s3388_s24 }
0x1901   :  { %v1757_v33 = vpop.permute.xlu2 %1756 }
0x1902   :  { %v4104_v24 = vmul.f32 %v1757_v33, %v1740_v43 }
0x1903   :  { %v1830_v1 = vpop.permute.xlu1 %1829 }
0x1904   :  { %1761 = vrot.lane.b32.xlu0 %v4104_v24, %s3389_s25  ;;  %v1832_v8 = vmul.f32 %v1830_v1, %v1810_v46 }
0x1906   :  { %v1856_v26 = vrot.slane %v1832_v8, 4 }
0x1908   :  { %1857 = vrot.lane.b32.xlu1 %v1856_v26, %s3389_s25 }
0x1976   :  { %v4109_v20 = vpop.permute.xlu0 %1761 }
0x1977   :  { %3036 = vmatmul.msk.f32.vlgmr.msrb.gmra.mxu3 %vm189_vm8, %v4109_v20 }
0x1978   :  { %2254 = vmatpush.msrb.mxu3 %v4116_v9 }
0x197a   :  { %2255 = vmatpush.msrb.mxu3 %v4122_v4  ;;  %v1858_v51 = vpop.permute.xlu1 %1857 }
0x197b   :  { %3037 = vmatmul.msk.f32.vlgmr.msrb.gmra.mxu0 %vm189_vm8, %v1858_v51  ;;  %3039 = vmatmul.msk.f32.vlgmr.msrb.gmra.mxu1 %vm189_vm8, %v1858_v51 }
0x197c   :  { %2256 = vmatpush.msrb.mxu3 %v4130_v2  ;;  %2320 = vmatpush.msrb.mxu0 %v3871_v16 }
0x197d   :  { %2346 = vmatpush.msrb.mxu1 %v3865_v21 }
0x197e   :  { %2257 = vmatpush.msrb.mxu3 %v4138_v19  ;;  %2321 = vmatpush.msrb.mxu0 %v3883_v12 }
0x197f   :  { %2347 = vmatpush.msrb.mxu1 %v3877_v11 }
0x1980   :  { %2322 = vmatpush.msrb.mxu0 %v3895_v14 }
0x1981   :  { %2348 = vmatpush.msrb.mxu1 %v3889_v13 }
0x1982   :  { %2323 = vmatpush.msrb.mxu0 %v3907_v17 }
0x1983   :  { %2349 = vmatpush.msrb.mxu1 %v3901_v15 }
0x19f8   :  { %v1945_v21 = vpop.f32.mrf.mxu1  ;;  %v1878_v16 = vpop.f32.mrf.mxu0 }
0x19f9   :  { %v1949_v22 = vrot.slane %v1945_v21, 2 }
0x19fa   :  { %v1852_v23 = vpop.f32.mrf.mxu3 }
0x19fb   :  { %v1879_v29 = vadd.f32 %v1878_v16, %v1852_v23  ;;  %v1951_v25 = vadd.f32 %v1949_v22, %v4008_v6 }
0x19fd   :  { %v1881_v27 = vadd.f32 %v3961_v31, %v1879_v29  ;;  %3271 = vtanh.f32 %v1951_v25  ;;  %v3040_v13 = vmul.f32 -1.442695, %v1951_v25  ;;  %v1973_v29 = vrot.slane %v4095_v56, 6 }
0x19ff   :  { %3273 = vtanh.f32 %v1881_v27  ;;  %v3038_v32 = vmul.f32 -1.442695, %v1881_v27 }
0x1a00   :  { %3275 = vpow2.f32 %v3040_v13 }
0x1a03   :  { %v3272_v11 = vpop.eup %3271 }
0x1a04   :  { %1977 = vrot.lane.b32.xlu2 %v3272_v11, %s3388_s24 }
0x1a05   :  { %v3274_v12 = vpop.eup %3273 }
0x1a06   :  { %1904 = vrot.lane.b32.xlu0 %v3274_v12, %s3388_s24  ;;  %v3276_v14 = vpop.eup %3275 }
0x1a07   :  { %v1955_v15 = vadd.f32 1.0, %v3276_v14 }
0x1a09   :  { %3277 = vrcp.f32 %v1955_v15  ;;  %v1967_v46 = vand.u32 2147483648, %v1955_v15  ;;  %vm1961_vm5 = vweird.f32 %v1955_v15  ;;  %v1965_v59 = vand.u32 2147483647, %v1955_v15 }
0x1a0a   :  { %3279 = vpow2.f32 %v3038_v32 }
0x1a0b   :  { %v1968_v47 = vor.u32 1.1754944e-38, %v1967_v46  ;;  %vm1966_vm7 = vcmp.eq.f32.partialorder %v1965_v59, 8.507059e+37  ;;  %v4191_v46 = vld [vmem:[%s4556_s6 + $0x10] sm:$0xff]  ;;  %v4197_v59 = vld [vmem:[%s4555_s7 + $0x8] sm:$0xff] }
0x1a0f   :  { %v3278_v17 = vpop.eup %3277 }
0x1a10   :  { %v1957_v37 = vmul.f32 %v3278_v17, %v1955_v15  ;;  %v3280_v54 = vpop.eup %3279  ;;  %vm1962_vm3 = vweird.f32 %v3278_v17 }
0x1a11   :  { %v1885_v38 = vadd.f32 1.0, %v3280_v54  ;;  %vm1963_vm6 = vmor %vm1961_vm5, %vm1962_vm3  ;;  %v4173_v54 = vld [vmem:[%s4555_s7 + $0x18] sm:$0xff] }
0x1a12   :  { %v1958_v6 = vsub.f32 1.0, %v1957_v37 }
0x1a13   :  { %3281 = vrcp.f32 %v1885_v38  ;;  %v1897_v8 = vand.u32 2147483648, %v1885_v38  ;;  %vm1891_vm10 = vweird.f32 %v1885_v38  ;;  %v1895_v26 = vand.u32 2147483647, %v1885_v38 }
0x1a14   :  { %v1959_v43 = vmul.f32 %v3278_v17, %v1958_v6 }
0x1a15   :  { %v1898_v21 = vor.u32 1.1754944e-38, %v1897_v8  ;;  %vm1896_vm12 = vcmp.eq.f32.partialorder %v1895_v26, 8.507059e+37 }
0x1a16   :  { %v1960_v62 = vadd.f32 %v3278_v17, %v1959_v43 }
0x1a18   :  { %v1964_v42 = vsel %vm1963_vm6, %v3278_v17, %v1960_v62  ;;  %v4185_v62 = vld [vmem:[%s4555_s7 + $0x10] sm:$0xff] }
0x1a19   :  { %v1969_v55 = vsel %vm1966_vm7, %v1968_v47, %v1964_v42  ;;  %v3282_v61 = vpop.eup %3281  ;;  %v4203_v42 = vld [vmem:[%s4556_s6 + $0x8] sm:$0xff]  ;;  %v4209_v47 = vld [vmem:[%s4555_s7] sm:$0xff] }
0x1a1a   :  { %v1887_v44 = vmul.f32 %v3282_v61, %v1885_v38  ;;  %vm1892_vm9 = vweird.f32 %v3282_v61  ;;  %v1975_v25 = vmul.f32 %v1973_v29, %v1969_v55  ;;  %v4179_v38 = vld [vmem:[%s4556_s6 + $0x18] sm:$0xff] }
0x1a1b   :  { %vm1893_vm11 = vmor %vm1891_vm10, %vm1892_vm9 }
0x1a1c   :  { %v1888_v34 = vsub.f32 1.0, %v1887_v44 }
0x1a1e   :  { %v1889_v33 = vmul.f32 %v3282_v61, %v1888_v34 }
0x1a20   :  { %v1890_v1 = vadd.f32 %v3282_v61, %v1889_v33 }
0x1a22   :  { %v1894_v51 = vsel %vm1893_vm11, %v3282_v61, %v1890_v1 }
0x1a23   :  { %v1899_v22 = vsel %vm1896_vm12, %v1898_v21, %v1894_v51 }
0x1a24   :  { %v1902_v11 = vmul.f32 %v1899_v22, %v4100_v58 }
0x1a5e   :  { %v1978_v48 = vpop.permute.xlu2 %1977 }
0x1a5f   :  { %v1980_v49 = vmul.f32 %v1978_v48, %v1969_v55 }
0x1a61   :  { %1982 = vrot.lane.b32.xlu1 %v1980_v49, %s3389_s25  ;;  %v4228_v49 = vadd.f32 %v4004_v53, %v3696_v30 }
0x1a78   :  { %v1905_v16 = vpop.permute.xlu0 %1904 }
0x1a79   :  { %v1907_v23 = vmul.f32 %v1905_v16, %v1899_v22 }
0x1a7b   :  { %1909 = vrot.lane.b32.xlu2 %v1907_v23, %s3389_s25 }
0x1ad3   :  { %v1983_v27 = vpop.permute.xlu1 %1982 }
0x1ad4   :  { %v4155_v12 = vadd.f32 %v1983_v27, %v1975_v25 }
0x1ad5   :  { %v1910_v13 = vpop.permute.xlu2 %1909 }
0x1ad6   :  { %v4157_v14 = vadd.f32 %v1910_v13, %v1902_v11  ;;  %3283 = vtanh.f32 %v4155_v12 }
0x1ad8   :  { %3285 = vtanh.f32 %v4157_v14 }
0x1adc   :  { %v3284_v15 = vpop.eup %3283 }
0x1add   :  { %1988 = vrot.lane.b32.xlu0 %v3284_v15, %s3388_s24 }
0x1ade   :  { %v3286_v17 = vpop.eup %3285 }
0x1adf   :  { %1915 = vrot.lane.b32.xlu1 %v3286_v17, %s3388_s24 }
0x1b4f   :  { %v1989_v56 = vpop.permute.xlu0 %1988 }
0x1b50   :  { %v1991_v32 = vmul.f32 %v1989_v56, %v1969_v55  ;;  %v4215_v55 = vld [vmem:[%s4556_s6] sm:$0xff] }
0x1b51   :  { %v1916_v37 = vpop.permute.xlu1 %1915 }
0x1b52   :  { %v4163_v6 = vmul.f32 %v1916_v37, %v1899_v22  ;;  %v2015_v58 = vrot.slane %v1991_v32, 6 }
0x1b54   :  { %1920 = vrot.lane.b32.xlu0 %v4163_v6, %s3389_s25  ;;  %2016 = vrot.lane.b32.xlu2 %v2015_v58, %s3389_s25 }
0x1bae   :  { %v2017_v43 = vpop.permute.xlu2 %2016 }
0x1baf   :  { %3042 = vmatmul.msk.f32.vlgmr.msra.gmra.mxu3 %vm189_vm8, %v2017_v43  ;;  %3044 = vmatmul.msk.f32.vlgmr.msra.gmra.mxu0 %vm189_vm8, %v2017_v43 }
0x1bb0   :  { %2479 = vmatpush.msra.mxu3 %v4173_v54  ;;  %2505 = vmatpush.msra.mxu0 %v4179_v38 }
0x1bb2   :  { %2480 = vmatpush.msra.mxu3 %v4185_v62  ;;  %2506 = vmatpush.msra.mxu0 %v4191_v46 }
0x1bb4   :  { %2481 = vmatpush.msra.mxu3 %v4197_v59  ;;  %2507 = vmatpush.msra.mxu0 %v4203_v42 }
0x1bb6   :  { %2482 = vmatpush.msra.mxu3 %v4209_v47  ;;  %2508 = vmatpush.msra.mxu0 %v4215_v55 }
0x1bc6   :  { %v4218_v48 = vpop.permute.xlu0 %1920 }
0x1bc7   :  { %3041 = vmatmul.msk.f32.vlgmr.msrb.gmra.mxu2 %vm189_vm8, %v4218_v48 }
0x1bc8   :  { %2413 = vmatpush.msrb.mxu2 %v4116_v9 }
0x1bca   :  { %2414 = vmatpush.msrb.mxu2 %v4122_v4 }
0x1bcc   :  { %2415 = vmatpush.msrb.mxu2 %v4130_v2 }
0x1bce   :  { %2416 = vmatpush.msrb.mxu2 %v4138_v19 }
0x1c2c   :  { %v2104_v61 = vpop.f32.mrf.mxu0 }
0x1c2d   :  { %v2107_v44 = vadd.f32 %v2104_v61, %v4228_v49 }
0x1c2f   :  { %3287 = vtanh.f32 %v2107_v44  ;;  %v3045_v21 = vmul.f32 -1.442695, %v2107_v44 }
0x1c32   :  { %v2037_v33 = vpop.f32.mrf.mxu3 }
0x1c35   :  { %v3288_v34 = vpop.eup %3287 }
0x1c36   :  { %2133 = vrot.lane.b32.xlu1 %v3288_v34, %s3388_s24 }
0x1c4a   :  { %v2011_v1 = vpop.f32.mrf.mxu2 }
0x1c4b   :  { %v2038_v8 = vadd.f32 %v2037_v33, %v2011_v1 }
0x1c4d   :  { %v2040_v26 = vadd.f32 %v3961_v31, %v2038_v8 }
0x1c4f   :  { %3289 = vtanh.f32 %v2040_v26  ;;  %v3043_v30 = vmul.f32 -1.442695, %v2040_v26 }
0x1c50   :  { %3291 = vpow2.f32 %v3045_v21 }
0x1c51   :  { %3293 = vpow2.f32 %v3043_v30 }
0x1c55   :  { %v3290_v51 = vpop.eup %3289 }
0x1c56   :  { %2063 = vrot.lane.b32.xlu2 %v3290_v51, %s3388_s24  ;;  %v3292_v53 = vpop.eup %3291 }
0x1c57   :  { %v2111_v16 = vadd.f32 1.0, %v3292_v53  ;;  %v3294_v22 = vpop.eup %3293 }
0x1c58   :  { %v2044_v23 = vadd.f32 1.0, %v3294_v22 }
0x1c59   :  { %3295 = vrcp.f32 %v2111_v16  ;;  %v2123_v56 = vand.u32 2147483648, %v2111_v16  ;;  %vm2117_vm14 = vweird.f32 %v2111_v16  ;;  %v2121_v32 = vand.u32 2147483647, %v2111_v16 }
0x1c5a   :  { %3297 = vrcp.f32 %v2044_v23  ;;  %v2056_v1 = vand.u32 2147483648, %v2044_v23  ;;  %vm2050_vm5 = vweird.f32 %v2044_v23  ;;  %v2054_v8 = vand.u32 2147483647, %v2044_v23 }
0x1c5b   :  { %v2124_v43 = vor.u32 1.1754944e-38, %v2123_v56  ;;  %vm2122_vm4 = vcmp.eq.f32.partialorder %v2121_v32, 8.507059e+37 }
0x1c5c   :  { %v2057_v51 = vor.u32 1.1754944e-38, %v2056_v1  ;;  %vm2055_vm7 = vcmp.eq.f32.partialorder %v2054_v8, 8.507059e+37 }
0x1c5f   :  { %v3296_v29 = vpop.eup %3295 }
0x1c60   :  { %v2113_v25 = vmul.f32 %v3296_v29, %v2111_v16  ;;  %v3298_v27 = vpop.eup %3297  ;;  %vm2118_vm13 = vweird.f32 %v3296_v29  ;;  %v2129_v16 = vrot.slane %v4155_v12, 6 }
0x1c61   :  { %v2046_v13 = vmul.f32 %v3298_v27, %v2044_v23  ;;  %vm2119_vm15 = vmor %vm2117_vm14, %vm2118_vm13  ;;  %vm2051_vm3 = vweird.f32 %v3298_v27 }
0x1c62   :  { %v2114_v11 = vsub.f32 1.0, %v2113_v25  ;;  %vm2052_vm6 = vmor %vm2050_vm5, %vm2051_vm3 }
0x1c63   :  { %v2047_v15 = vsub.f32 1.0, %v2046_v13 }
0x1c64   :  { %v2115_v31 = vmul.f32 %v3296_v29, %v2114_v11 }
0x1c65   :  { %v2048_v37 = vmul.f32 %v3298_v27, %v2047_v15 }
0x1c66   :  { %v2116_v17 = vadd.f32 %v3296_v29, %v2115_v31 }
0x1c67   :  { %v2049_v34 = vadd.f32 %v3298_v27, %v2048_v37 }
0x1c68   :  { %v2120_v58 = vsel %vm2119_vm15, %v3296_v29, %v2116_v17 }
0x1c69   :  { %v2125_v44 = vsel %vm2122_vm4, %v2124_v43, %v2120_v58  ;;  %v2053_v26 = vsel %vm2052_vm6, %v3298_v27, %v2049_v34 }
0x1c6a   :  { %v2058_v30 = vsel %vm2055_vm7, %v2057_v51, %v2053_v26  ;;  %v2131_v22 = vmul.f32 %v2129_v16, %v2125_v44 }
0x1c6b   :  { %v2061_v23 = vmul.f32 %v2058_v30, %v4157_v14 }
0x1ca8   :  { %v2134_v61 = vpop.permute.xlu1 %2133 }
0x1ca9   :  { %v2136_v33 = vmul.f32 %v2134_v61, %v2125_v44 }
0x1cab   :  { %2138 = vrot.lane.b32.xlu0 %v2136_v33, %s3389_s25 }
0x1cb0   :  { %v2064_v21 = vpop.permute.xlu2 %2063 }
0x1cb1   :  { %v2066_v53 = vmul.f32 %v2064_v21, %v2058_v30 }
0x1cb3   :  { %2068 = vrot.lane.b32.xlu1 %v2066_v53, %s3389_s25 }
0x1d1d   :  { %v2139_v29 = vpop.permute.xlu0 %2138 }
0x1d1e   :  { %v4237_v25 = vadd.f32 %v2139_v29, %v2131_v22 }
0x1d20   :  { %3299 = vtanh.f32 %v4237_v25 }
0x1d25   :  { %v2069_v11 = vpop.permute.xlu1 %2068 }
0x1d26   :  { %v4241_v13 = vadd.f32 %v2069_v11, %v2061_v23  ;;  %v3300_v27 = vpop.eup %3299 }
0x1d27   :  { %2144 = vrot.lane.b32.xlu2 %v3300_v27, %s3388_s24 }
0x1d28   :  { %3301 = vtanh.f32 %v4241_v13 }
0x1d2e   :  { %v3302_v31 = vpop.eup %3301 }
0x1d2f   :  { %2074 = vrot.lane.b32.xlu0 %v3302_v31, %s3388_s24 }
0x1d81   :  { %v2145_v12 = vpop.permute.xlu2 %2144 }
0x1d82   :  { %v2147_v15 = vmul.f32 %v2145_v12, %v2125_v44 }
0x1d84   :  { %2171 = vrot.lane.b32.xlu1 %v2147_v15, %s3389_s25 }
0x1da1   :  { %v2075_v17 = vpop.permute.xlu0 %2074 }
0x1da2   :  { %v4247_v56 = vmul.f32 %v2075_v17, %v2058_v30 }
0x1da4   :  { %2079 = vrot.lane.b32.xlu2 %v4247_v56, %s3389_s25 }
0x1df6   :  { %v2172_v14 = vpop.permute.xlu1 %2171 }
0x1df7   :  { %3047 = vmatmul.msk.f32.vlgmr.msra.gmra.mxu2 %vm189_vm8, %v2172_v14  ;;  %3049 = vmatmul.msk.f32.vlgmr.msrb.gmra.mxu3 %vm189_vm8, %v2172_v14 }
0x1df8   :  { %2664 = vmatpush.msrb.mxu3 %v4179_v38  ;;  %2638 = vmatpush.msra.mxu2 %v4173_v54 }
0x1dfa   :  { %2665 = vmatpush.msrb.mxu3 %v4191_v46  ;;  %2639 = vmatpush.msra.mxu2 %v4185_v62 }
0x1dfc   :  { %2666 = vmatpush.msrb.mxu3 %v4203_v42  ;;  %2640 = vmatpush.msra.mxu2 %v4197_v59 }
0x1dfe   :  { %v4259_v32 = vpop.permute.xlu2 %2079  ;;  %2667 = vmatpush.msrb.mxu3 %v4215_v55  ;;  %2641 = vmatpush.msra.mxu2 %v4209_v47  ;;  %v4273_v55 = vld [vmem:[%s4557_s8] ss:$0 sm:$0xff]  ;;  %s3390_s8 = smov 1  }
0x1dff   :  { %3046 = vmatmul.msk.f32.vlgmr.msra.gmra.mxu1 %vm189_vm8, %v4259_v32 }
0x1e00   :  { %2572 = vmatpush.msra.mxu1 %v4116_v9 }
0x1e02   :  { %2573 = vmatpush.msra.mxu1 %v4122_v4 }
0x1e04   :  { %2574 = vmatpush.msra.mxu1 %v4130_v2 }
0x1e06   :  { %2575 = vmatpush.msra.mxu1 %v4138_v19 }
0x1e7a   :  { %v2259_v54 = vpop.f32.mrf.mxu3  ;;  %v2192_v38 = vpop.f32.mrf.mxu2 }
0x1e7b   :  { %v2263_v62 = vrot.slane %v2259_v54, 6 }
0x1e7c   :  { %v2167_v46 = vpop.f32.mrf.mxu1 }
0x1e7d   :  { %v2193_v59 = vadd.f32 %v2192_v38, %v2167_v46  ;;  %v2265_v42 = vadd.f32 %v2263_v62, %v4228_v49  ;;  %v2287_v46 = vrot.slane %v4237_v25, 6 }
0x1e7f   :  { %v2195_v9 = vadd.f32 %v4273_v55, %v2193_v59  ;;  %3303 = vtanh.f32 %v2265_v42  ;;  %v3050_v19 = vmul.f32 -1.442695, %v2265_v42 }
0x1e81   :  { %3305 = vtanh.f32 %v2195_v9  ;;  %v3048_v47 = vmul.f32 -1.442695, %v2195_v9 }
0x1e82   :  { %3307 = vpow2.f32 %v3050_v19 }
0x1e83   :  { %3309 = vpow2.f32 %v3048_v47 }
0x1e85   :  { %v3304_v4 = vpop.eup %3303 }
0x1e86   :  { %2291 = vrot.lane.b32.xlu0 %v3304_v4, %s3388_s24 }
0x1e87   :  { %v3306_v2 = vpop.eup %3305 }
0x1e88   :  { %2218 = vrot.lane.b32.xlu1 %v3306_v2, %s3388_s24  ;;  %v3308_v37 = vpop.eup %3307 }
0x1e89   :  { %v3310_v58 = vpop.eup %3309  ;;  %v2269_v43 = vadd.f32 1.0, %v3308_v37 }
0x1e8a   :  { %v2199_v61 = vadd.f32 1.0, %v3310_v58 }
0x1e8b   :  { %3311 = vrcp.f32 %v2269_v43  ;;  %v2281_v53 = vand.u32 2147483648, %v2269_v43  ;;  %vm2275_vm11 = vweird.f32 %v2269_v43  ;;  %v2279_v22 = vand.u32 2147483647, %v2269_v43 }
0x1e8c   :  { %3313 = vrcp.f32 %v2199_v61  ;;  %v2211_v29 = vand.u32 2147483648, %v2199_v61  ;;  %vm2205_vm13 = vweird.f32 %v2199_v61  ;;  %v2209_v23 = vand.u32 2147483647, %v2199_v61 }
0x1e8d   :  { %v2282_v27 = vor.u32 1.1754944e-38, %v2281_v53  ;;  %vm2280_vm15 = vcmp.eq.f32.partialorder %v2279_v22, 8.507059e+37 }
0x1e8e   :  { %v2212_v12 = vor.u32 1.1754944e-38, %v2211_v29  ;;  %vm2210_vm4 = vcmp.eq.f32.partialorder %v2209_v23, 8.507059e+37 }
0x1e91   :  { %v3312_v44 = vpop.eup %3311 }
0x1e92   :  { %v3314_v34 = vpop.eup %3313  ;;  %v2271_v33 = vmul.f32 %v3312_v44, %v2269_v43  ;;  %vm2276_vm9 = vweird.f32 %v3312_v44 }
0x1e93   :  { %v2201_v1 = vmul.f32 %v3314_v34, %v2199_v61  ;;  %vm2206_vm10 = vweird.f32 %v3314_v34  ;;  %vm2277_vm12 = vmor %vm2275_vm11, %vm2276_vm9 }
0x1e94   :  { %v2272_v8 = vsub.f32 1.0, %v2271_v33  ;;  %vm2207_vm14 = vmor %vm2205_vm13, %vm2206_vm10 }
0x1e95   :  { %v2202_v26 = vsub.f32 1.0, %v2201_v1 }
0x1e96   :  { %v2273_v51 = vmul.f32 %v3312_v44, %v2272_v8 }
0x1e97   :  { %v2203_v21 = vmul.f32 %v3314_v34, %v2202_v26 }
0x1e98   :  { %v2274_v30 = vadd.f32 %v3312_v44, %v2273_v51 }
0x1e99   :  { %v2204_v16 = vadd.f32 %v3314_v34, %v2203_v21 }
0x1e9a   :  { %v2278_v11 = vsel %vm2277_vm12, %v3312_v44, %v2274_v30 }
0x1e9b   :  { %v2208_v31 = vsel %vm2207_vm14, %v3314_v34, %v2204_v16  ;;  %v2283_v15 = vsel %vm2280_vm15, %v2282_v27, %v2278_v11 }
0x1e9c   :  { %v2213_v38 = vsel %vm2210_vm4, %v2212_v12, %v2208_v31  ;;  %v2289_v59 = vmul.f32 %v2287_v46, %v2283_v15 }
0x1e9d   :  { %v2216_v2 = vmul.f32 %v2213_v38, %v4241_v13 }
0x1ef8   :  { %v2292_v17 = vpop.permute.xlu0 %2291 }
0x1ef9   :  { %v2294_v14 = vmul.f32 %v2292_v17, %v2283_v15 }
0x1efa   :  { %v2219_v54 = vpop.permute.xlu1 %2218 }
0x1efb   :  { %v2221_v62 = vmul.f32 %v2219_v54, %v2213_v38  ;;  %2296 = vrot.lane.b32.xlu2 %v2294_v14, %s3389_s25 }
0x1efd   :  { %2223 = vrot.lane.b32.xlu0 %v2221_v62, %s3389_s25 }
0x1f55   :  { %v2297_v42 = vpop.permute.xlu2 %2296 }
0x1f56   :  { %v4281_v9 = vadd.f32 %v2297_v42, %v2289_v59 }
0x1f58   :  { %3315 = vtanh.f32 %v4281_v9 }
0x1f5e   :  { %v3316_v4 = vpop.eup %3315 }
0x1f5f   :  { %2302 = vrot.lane.b32.xlu1 %v3316_v4, %s3388_s24 }
0x1f6f   :  { %v2224_v19 = vpop.permute.xlu0 %2223 }
0x1f70   :  { %v4286_v47 = vadd.f32 %v2224_v19, %v2216_v2 }
0x1f72   :  { %3317 = vtanh.f32 %v4286_v47 }
0x1f78   :  { %v3318_v37 = vpop.eup %3317 }
0x1f79   :  { %2229 = vrot.lane.b32.xlu2 %v3318_v37, %s3388_s24 }
0x1fd1   :  { %v2303_v25 = vpop.permute.xlu1 %2302 }
0x1fd2   :  { %v2305_v58 = vmul.f32 %v2303_v25, %v2283_v15 }
0x1fd3   :  { %v2230_v43 = vpop.permute.xlu2 %2229 }
0x1fd4   :  { %v4290_v61 = vmul.f32 %v2230_v43, %v2213_v38  ;;  %v2329_v44 = vrot.slane %v2305_v58, 2 }
0x1fd6   :  { %2234 = vrot.lane.b32.xlu1 %v4290_v61, %s3389_s25  ;;  %2330 = vrot.lane.b32.xlu0 %v2329_v44, %s3389_s25 }
0x2048   :  { %v4295_v13 = vpop.permute.xlu1 %2234  ;;  %v2331_v34 = vpop.permute.xlu0 %2330 }
0x2049   :  { %3051 = vmatmul.msk.f32.vlgmr.msrb.gmra.mxu0 %vm189_vm8, %v4295_v13  ;;  %3052 = vmatmul.msk.f32.vlgmr.msrb.gmra.mxu1 %vm189_vm8, %v2331_v34 }
0x204a   :  { %3054 = vmatmul.msk.f32.vlgmr.msrb.gmra.mxu2 %vm189_vm8, %v2331_v34 }
0x20c6   :  { %v2325_v33 = vpop.f32.mrf.mxu0  ;;  %v2351_v1 = vpop.f32.mrf.mxu1 }
0x20c7   :  { %v2352_v8 = vadd.f32 %v2351_v1, %v2325_v33 }
0x20c9   :  { %v2354_v26 = vadd.f32 %v4273_v55, %v2352_v8 }
0x20cb   :  { %3319 = vtanh.f32 %v2354_v26  ;;  %v3053_v22 = vmul.f32 -1.442695, %v2354_v26 }
0x20cd   :  { %v2418_v51 = vpop.f32.mrf.mxu2 }
0x20ce   :  { %v2422_v21 = vrot.slane %v2418_v51, 4 }
0x20d0   :  { %v2424_v30 = vadd.f32 %v2422_v21, %v4228_v49 }
0x20d1   :  { %v3320_v53 = vpop.eup %3319 }
0x20d2   :  { %3321 = vtanh.f32 %v2424_v30  ;;  %2377 = vrot.lane.b32.xlu2 %v3320_v53, %s3388_s24  ;;  %v3055_v31 = vmul.f32 -1.442695, %v2424_v30 }
0x20d3   :  { %3323 = vpow2.f32 %v3053_v22 }
0x20d8   :  { %v3322_v16 = vpop.eup %3321 }
0x20d9   :  { %2450 = vrot.lane.b32.xlu0 %v3322_v16, %s3388_s24  ;;  %v3324_v29 = vpop.eup %3323  ;;  %v2446_v16 = vrot.slane %v4281_v9, 6 }
0x20da   :  { %v2358_v23 = vadd.f32 1.0, %v3324_v29 }
0x20dc   :  { %3325 = vrcp.f32 %v2358_v23  ;;  %v2370_v14 = vand.u32 2147483648, %v2358_v23  ;;  %vm2364_vm5 = vweird.f32 %v2358_v23  ;;  %v2368_v38 = vand.u32 2147483647, %v2358_v23 }
0x20dd   :  { %3327 = vpow2.f32 %v3055_v31 }
0x20de   :  { %v2371_v59 = vor.u32 1.1754944e-38, %v2370_v14  ;;  %vm2369_vm7 = vcmp.eq.f32.partialorder %v2368_v38, 8.507059e+37 }
0x20e2   :  { %v3326_v11 = vpop.eup %3325 }
0x20e3   :  { %v2360_v27 = vmul.f32 %v3326_v11, %v2358_v23  ;;  %vm2365_vm3 = vweird.f32 %v3326_v11  ;;  %v3328_v54 = vpop.eup %3327 }
0x20e4   :  { %vm2366_vm6 = vmor %vm2364_vm5, %vm2365_vm3  ;;  %v2428_v46 = vadd.f32 1.0, %v3328_v54 }
0x20e5   :  { %v2361_v12 = vsub.f32 1.0, %v2360_v27 }
0x20e6   :  { %3329 = vrcp.f32 %v2428_v46  ;;  %v2440_v44 = vand.u32 2147483648, %v2428_v46  ;;  %vm2434_vm10 = vweird.f32 %v2428_v46  ;;  %v2438_v34 = vand.u32 2147483647, %v2428_v46 }
0x20e7   :  { %v2362_v15 = vmul.f32 %v3326_v11, %v2361_v12 }
0x20e8   :  { %v2441_v1 = vor.u32 1.1754944e-38, %v2440_v44  ;;  %vm2439_vm12 = vcmp.eq.f32.partialorder %v2438_v34, 8.507059e+37 }
0x20e9   :  { %v2363_v17 = vadd.f32 %v3326_v11, %v2362_v15 }
0x20eb   :  { %v2367_v62 = vsel %vm2366_vm6, %v3326_v11, %v2363_v17 }
0x20ec   :  { %v2372_v4 = vsel %vm2369_vm7, %v2371_v59, %v2367_v62  ;;  %v3330_v19 = vpop.eup %3329 }
0x20ed   :  { %v2430_v37 = vmul.f32 %v3330_v19, %v2428_v46  ;;  %vm2435_vm9 = vweird.f32 %v3330_v19  ;;  %v2375_v21 = vmul.f32 %v2372_v4, %v4286_v47 }
0x20ee   :  { %vm2436_vm11 = vmor %vm2434_vm10, %vm2435_vm9 }
0x20ef   :  { %v2431_v25 = vsub.f32 1.0, %v2430_v37 }
0x20f1   :  { %v2432_v58 = vmul.f32 %v3330_v19, %v2431_v25 }
0x20f3   :  { %v2433_v43 = vadd.f32 %v3330_v19, %v2432_v58 }
0x20f5   :  { %v2437_v33 = vsel %vm2436_vm11, %v3330_v19, %v2433_v43 }
0x20f6   :  { %v2442_v26 = vsel %vm2439_vm12, %v2441_v1, %v2437_v33 }
0x20f7   :  { %v2448_v22 = vmul.f32 %v2446_v16, %v2442_v26 }
0x212c   :  { %v2378_v42 = vpop.permute.xlu2 %2377 }
0x212d   :  { %v2380_v2 = vmul.f32 %v2378_v42, %v2372_v4 }
0x212f   :  { %2382 = vrot.lane.b32.xlu1 %v2380_v2, %s3389_s25 }
0x214b   :  { %v2451_v8 = vpop.permute.xlu0 %2450 }
0x214c   :  { %v2453_v51 = vmul.f32 %v2451_v8, %v2442_v26 }
0x214e   :  { %2455 = vrot.lane.b32.xlu2 %v2453_v51, %s3389_s25 }
0x21a1   :  { %v2383_v30 = vpop.permute.xlu1 %2382 }
0x21a2   :  { %v4308_v53 = vadd.f32 %v2383_v30, %v2375_v21 }
0x21a4   :  { %3331 = vtanh.f32 %v4308_v53 }
0x21a8   :  { %v2456_v29 = vpop.permute.xlu2 %2455 }
0x21a9   :  { %v4312_v23 = vadd.f32 %v2456_v29, %v2448_v22 }
0x21aa   :  { %v3332_v11 = vpop.eup %3331 }
0x21ab   :  { %3333 = vtanh.f32 %v4312_v23  ;;  %2388 = vrot.lane.b32.xlu0 %v3332_v11, %s3388_s24 }
0x21b1   :  { %v3334_v27 = vpop.eup %3333 }
0x21b2   :  { %2461 = vrot.lane.b32.xlu1 %v3334_v27, %s3388_s24 }
0x221d   :  { %v2389_v47 = vpop.permute.xlu0 %2388 }
0x221e   :  { %v4317_v31 = vmul.f32 %v2389_v47, %v2372_v4 }
0x2220   :  { %2393 = vrot.lane.b32.xlu2 %v4317_v31, %s3389_s25 }
0x2224   :  { %v2462_v9 = vpop.permute.xlu1 %2461 }
0x2225   :  { %v2464_v12 = vmul.f32 %v2462_v9, %v2442_v26 }
0x2227   :  { %v2488_v15 = vrot.slane %v2464_v12, 4 }
0x2229   :  { %2489 = vrot.lane.b32.xlu0 %v2488_v15, %s3389_s25 }
0x227a   :  { %v4322_v17 = vpop.permute.xlu2 %2393 }
0x227b   :  { %3056 = vmatmul.msk.f32.vlgmr.msra.gmra.mxu3 %vm189_vm8, %v4322_v17 }
0x229b   :  { %v2490_v14 = vpop.permute.xlu0 %2489 }
0x229c   :  { %3057 = vmatmul.msk.f32.vlgmr.msra.gmra.mxu0 %vm189_vm8, %v2490_v14  ;;  %3059 = vmatmul.msk.f32.vlgmr.msra.gmra.mxu1 %vm189_vm8, %v2490_v14 }
0x22fe   :  { %v2484_v54 = vpop.f32.mrf.mxu3 }
0x2319   :  { %v2510_v38 = vpop.f32.mrf.mxu0  ;;  %v2577_v62 = vpop.f32.mrf.mxu1 }
0x231a   :  { %v2511_v46 = vadd.f32 %v2510_v38, %v2484_v54  ;;  %v2581_v59 = vrot.slane %v2577_v62, 2 }
0x231c   :  { %v2513_v42 = vadd.f32 %v4273_v55, %v2511_v46  ;;  %v2583_v4 = vadd.f32 %v2581_v59, %v4228_v49 }
0x231e   :  { %3335 = vtanh.f32 %v2513_v42  ;;  %v3058_v37 = vmul.f32 -1.442695, %v2513_v42  ;;  %v3060_v44 = vmul.f32 -1.442695, %v2583_v4 }
0x231f   :  { %3337 = vtanh.f32 %v2583_v4 }
0x2320   :  { %3339 = vpow2.f32 %v3058_v37 }
0x2324   :  { %v3336_v2 = vpop.eup %3335 }
0x2325   :  { %v3338_v19 = vpop.eup %3337  ;;  %2536 = vrot.lane.b32.xlu2 %v3336_v2, %s3388_s24 }
0x2326   :  { %2609 = vrot.lane.b32.xlu1 %v3338_v19, %s3388_s24  ;;  %v3340_v25 = vpop.eup %3339 }
0x2327   :  { %v2517_v58 = vadd.f32 1.0, %v3340_v25  ;;  %v2605_v25 = vrot.slane %v4312_v23, 6 }
0x2329   :  { %3341 = vrcp.f32 %v2517_v58  ;;  %v2529_v51 = vand.u32 2147483648, %v2517_v58  ;;  %vm2523_vm14 = vweird.f32 %v2517_v58  ;;  %v2527_v21 = vand.u32 2147483647, %v2517_v58 }
0x232a   :  { %3343 = vpow2.f32 %v3060_v44 }
0x232b   :  { %v2530_v16 = vor.u32 1.1754944e-38, %v2529_v51  ;;  %vm2528_vm4 = vcmp.eq.f32.partialorder %v2527_v21, 8.507059e+37 }
0x232f   :  { %v3342_v43 = vpop.eup %3341 }
0x2330   :  { %v2519_v34 = vmul.f32 %v3342_v43, %v2517_v58  ;;  %v3344_v49 = vpop.eup %3343  ;;  %vm2524_vm13 = vweird.f32 %v3342_v43 }
0x2331   :  { %v2587_v8 = vadd.f32 1.0, %v3344_v49  ;;  %vm2525_vm15 = vmor %vm2523_vm14, %vm2524_vm13  ;;  %vm2761_vm13 = vcmask 1040384   ;;  %vm2764_vm14 = vcmask 1042432  }
0x2332   :  { %v2520_v33 = vsub.f32 1.0, %v2519_v34 }
0x2333   :  { %3345 = vrcp.f32 %v2587_v8  ;;  %v2599_v14 = vand.u32 2147483648, %v2587_v8  ;;  %vm2593_vm5 = vweird.f32 %v2587_v8  ;;  %v2597_v54 = vand.u32 2147483647, %v2587_v8 }
0x2334   :  { %v2521_v1 = vmul.f32 %v3342_v43, %v2520_v33 }
0x2335   :  { %v2600_v62 = vor.u32 1.1754944e-38, %v2599_v14  ;;  %vm2598_vm7 = vcmp.eq.f32.partialorder %v2597_v54, 8.507059e+37 }
0x2336   :  { %v2522_v26 = vadd.f32 %v3342_v43, %v2521_v1 }
0x2338   :  { %v2526_v30 = vsel %vm2525_vm15, %v3342_v43, %v2522_v26  ;;  %vm2767_vm15 = vcmask 1044480  }
0x2339   :  { %v2531_v29 = vsel %vm2528_vm4, %v2530_v16, %v2526_v30  ;;  %v3346_v27 = vpop.eup %3345  ;;  %vm2770_vm4 = vcmask 1046528  }
0x233a   :  { %v2589_v47 = vmul.f32 %v3346_v27, %v2587_v8  ;;  %vm2594_vm3 = vweird.f32 %v3346_v27  ;;  %v2534_v4 = vmul.f32 %v2531_v29, %v4308_v53 }
0x233b   :  { %vm2595_vm6 = vmor %vm2593_vm5, %vm2594_vm3  ;;  %vm2806_vm3 = vcmask 515072  }
0x233c   :  { %v2590_v9 = vsub.f32 1.0, %v2589_v47  ;;  %v2396_v47 = vrot.slane %v4317_v31, 1 }
0x233e   :  { %v2591_v12 = vmul.f32 %v3346_v27, %v2590_v9 }
0x2340   :  { %v2592_v15 = vadd.f32 %v3346_v27, %v2591_v12 }
0x2342   :  { %v2596_v38 = vsel %vm2595_vm6, %v3346_v27, %v2592_v15  ;;  %v2237_v27 = vrot.slane %v4290_v61, 1 }
0x2343   :  { %v2601_v59 = vsel %vm2598_vm7, %v2600_v62, %v2596_v38 }
0x2344   :  { %v2607_v58 = vmul.f32 %v2605_v25, %v2601_v59  ;;  %v973_v25 = vrot.slane %v3856_v7, 1  ;;  %v818_v7 = vrot.slane %v3797_v3, 1 }
0x237f   :  { %v2537_v22 = vpop.permute.xlu2 %2536 }
0x2380   :  { %v2539_v11 = vmul.f32 %v2537_v22, %v2531_v29 }
0x2382   :  { %2541 = vrot.lane.b32.xlu1 %v2539_v11, %s3389_s25  ;;  %v1605_v11 = vrot.slane %v4066_v35, 1 }
0x2398   :  { %v2610_v46 = vpop.permute.xlu1 %2609 }
0x2399   :  { %v2612_v42 = vmul.f32 %v2610_v46, %v2601_v59 }
0x239b   :  { %2614 = vrot.lane.b32.xlu0 %v2612_v42, %s3389_s25 }
0x23f4   :  { %v2542_v2 = vpop.permute.xlu1 %2541 }
0x23f5   :  { %v4335_v19 = vadd.f32 %v2542_v2, %v2534_v4  ;;  %v1923_v4 = vrot.slane %v4163_v6, 1  ;;  %v2082_v2 = vrot.slane %v4247_v56, 1  ;;  %v500_v56 = vrot.slane %v3715_v40, 1 }
0x23f6   :  { %v1450_v40 = vrot.slane %v4027_v45, 1 }
0x23f7   :  { %3347 = vtanh.f32 %v4335_v19 }
0x23fd   :  { %v3348_v37 = vpop.eup %3347 }
0x23fe   :  { %2547 = vrot.lane.b32.xlu0 %v3348_v37, %s3388_s24  ;;  %v341_v37 = vrot.slane %v3665_v10, 1  ;;  %v659_v10 = vrot.slane %v3754_v63, 1 }
0x240d   :  { %v2615_v43 = vpop.permute.xlu0 %2614 }
0x240e   :  { %v2617_v44 = vadd.f32 %v2615_v43, %v2607_v58 }
0x2410   :  { %3349 = vtanh.f32 %v2617_v44 }
0x2416   :  { %v3350_v34 = vpop.eup %3349 }
0x2417   :  { %2620 = vrot.lane.b32.xlu2 %v3350_v34, %s3388_s24 }
0x2470   :  { %v2548_v33 = vpop.permute.xlu0 %2547 }
0x2471   :  { %v2621_v1 = vpop.permute.xlu2 %2620  ;;  %v4341_v53 = vmul.f32 %v2548_v33, %v2531_v29  ;;  %v1764_v29 = vrot.slane %v4104_v24, 1  ;;  %v1291_v24 = vrot.slane %v3979_v60, 1 }
0x2472   :  { %v2623_v49 = vmul.f32 %v2621_v1, %v2601_v59 }
0x2473   :  { %2552 = vrot.lane.b32.xlu1 %v4341_v53, %s3389_s25 }
0x2474   :  { %v2647_v8 = vrot.slane %v2623_v49, 6 }
0x2476   :  { %2648 = vrot.lane.b32.xlu2 %v2647_v8, %s3389_s25 }
0x24d0   :  { %v2649_v26 = vpop.permute.xlu2 %2648 }
0x24d1   :  { %3062 = vmatmul.msk.f32.vlgmr.msrb.gmra.mxu3 %vm189_vm8, %v2649_v26 }
0x24e5   :  { %v4347_v23 = vpop.permute.xlu1 %2552 }
0x24e6   :  { %3061 = vmatmul.msk.f32.vlgmr.msra.gmra.mxu2 %vm189_vm8, %v4347_v23 }
0x2554   :  { %v2669_v51 = vpop.f32.mrf.mxu3 }
0x2569   :  { %v2643_v21 = vpop.f32.mrf.mxu2 }
0x256a   :  { %v2670_v30 = vadd.f32 %v2669_v51, %v2643_v21 }
0x256c   :  { %v2672_v16 = vadd.f32 %v4273_v55, %v2670_v30  ;;  %v1132_v55 = vrot.slane %v3935_v50, 1 }
0x256e   :  { %3351 = vtanh.f32 %v2672_v16  ;;  %v3063_v9 = vmul.f32 -1.442695, %v2672_v16 }
0x2570   :  { %3353 = vpow2.f32 %v3063_v9 }
0x2574   :  { %v3352_v22 = vpop.eup %3351 }
0x2575   :  { %2695 = vrot.lane.b32.xlu0 %v3352_v22, %s3388_s24 }
0x2576   :  { %v3354_v35 = vpop.eup %3353 }
0x2577   :  { %v2676_v12 = vadd.f32 1.0, %v3354_v35 }
0x2579   :  { %3355 = vrcp.f32 %v2676_v12  ;;  %v2688_v38 = vand.u32 2147483648, %v2676_v12  ;;  %vm2682_vm10 = vweird.f32 %v2676_v12  ;;  %v2686_v50 = vand.u32 2147483647, %v2676_v12 }
0x257b   :  { %v2689_v46 = vor.u32 1.1754944e-38, %v2688_v38  ;;  %vm2687_vm12 = vcmp.eq.f32.partialorder %v2686_v50, 8.507059e+37 }
0x257d   :  { %1765 = vrot.lane.b32.xlu0 %v1764_v29, %s3388_s24 }
0x257f   :  { %v3356_v61 = vpop.eup %3355 }
0x2580   :  { %v2678_v15 = vmul.f32 %v3356_v61, %v2676_v12  ;;  %vm2683_vm9 = vweird.f32 %v3356_v61 }
0x2581   :  { %vm2684_vm11 = vmor %vm2682_vm10, %vm2683_vm9 }
0x2582   :  { %v2679_v14 = vsub.f32 1.0, %v2678_v15 }
0x2584   :  { %v2680_v54 = vmul.f32 %v3356_v61, %v2679_v14 }
0x2585   :  { %1606 = vrot.lane.b32.xlu0 %v1605_v11, %s3388_s24 }
0x2586   :  { %v2681_v31 = vadd.f32 %v3356_v61, %v2680_v54 }
0x2588   :  { %v2685_v62 = vsel %vm2684_vm11, %v3356_v61, %v2681_v31  ;;  %vm2797_vm11 = vcmask 7168  }
0x2589   :  { %v2690_v59 = vsel %vm2687_vm12, %v2689_v46, %v2685_v62  ;;  %vm2822_vm12 = vcmask 392192  }
0x258a   :  { %v2693_v58 = vmul.f32 %v2690_v59, %v4335_v19  ;;  %v2555_v19 = vrot.slane %v4341_v53, 1 }
0x258d   :  { %2238 = vrot.lane.b32.xlu0 %v2237_v27, %s3388_s24 }
0x2595   :  { %2397 = vrot.lane.b32.xlu0 %v2396_v47, %s3388_s24 }
0x259d   :  { %1133 = vrot.lane.b32.xlu0 %v1132_v55, %s3388_s24 }
0x25a5   :  { %1292 = vrot.lane.b32.xlu0 %v1291_v24, %s3388_s24 }
0x25e7   :  { %v2696_v60 = vpop.permute.xlu0 %2695 }
0x25e8   :  { %v2698_v42 = vmul.f32 %v2696_v60, %v2690_v59 }
0x25ea   :  { %2700 = vrot.lane.b32.xlu1 %v2698_v42, %s3389_s25 }
0x25ef   :  { %v1766_v63 = vpop.permute.xlu0 %1765 }
0x25f0   :  { %v1768_v29 = vsel %vm189_vm8, %v4109_v20, %v1766_v63 }
0x25f1   :  { %v2741_v47 = vrot.slane %v1768_v29, 7 }
0x25f2   :  { %1924 = vrot.lane.b32.xlu1 %v1923_v4, %s3388_s24 }
0x25f7   :  { %v1607_v8 = vpop.permute.xlu0 %1606 }
0x25f8   :  { %v1609_v11 = vsel %vm189_vm8, %v4074_v36, %v1607_v8 }
0x25f9   :  { %v2772_v12 = vsel %vm2761_vm13, %v1609_v11, %v2741_v47 }
0x25fa   :  { %2083 = vrot.lane.b32.xlu1 %v2082_v2, %s3388_s24 }
0x25ff   :  { %v2239_v53 = vpop.permute.xlu0 %2238 }
0x2600   :  { %v2241_v20 = vsel %vm189_vm8, %v4295_v13, %v2239_v53 }
0x2602   :  { %342 = vrot.lane.b32.xlu1 %v341_v37, %s3388_s24 }
0x2607   :  { %v2398_v16 = vpop.permute.xlu0 %2397 }
0x2608   :  { %v2400_v31 = vsel %vm189_vm8, %v4322_v17, %v2398_v16 }
0x260a   :  { %974 = vrot.lane.b32.xlu1 %v973_v25, %s3388_s24 }
0x260f   :  { %v1134_v35 = vpop.permute.xlu0 %1133 }
0x2610   :  { %v1136_v37 = vsel %vm189_vm8, %v3939_v39, %v1134_v35 }
0x2617   :  { %v1293_v25 = vpop.permute.xlu0 %1292 }
0x265c   :  { %v2701_v43 = vpop.permute.xlu1 %2700 }
0x265d   :  { %v2703_v44 = vadd.f32 %v2701_v43, %v2693_v58 }
0x265f   :  { %3357 = vtanh.f32 %v2703_v44 }
0x2664   :  { %v1925_v49 = vpop.permute.xlu1 %1924 }
0x2665   :  { %v3358_v6 = vpop.eup %3357  ;;  %v1927_v22 = vsel %vm189_vm8, %v4218_v48, %v1925_v49 }
0x2666   :  { %2706 = vrot.lane.b32.xlu2 %v3358_v6, %s3388_s24  ;;  %v2744_v27 = vrot.slane %v1927_v22, 6  ;;  %v2732_v6 = vrot.slane %v1136_v37, 3  ;;  %v2779_v22 = vld [vmem:[%s4560_s9] sm:$0xff]  ;;  %v2942_v37 = vld [vmem:[%s4564_s14 + $0x30] sm:$0xff] }
0x2668   :  { %v2773_v36 = vsel %vm63_vm0, %v2772_v12, %v2744_v27  ;;  %v2847_v12 = vld [vmem:[%s4562_s11] sm:$0xf] }
0x266c   :  { %v2084_v26 = vpop.permute.xlu1 %2083 }
0x266d   :  { %v2086_v45 = vsel %vm189_vm8, %v4259_v32, %v2084_v26 }
0x266e   :  { %501 = vrot.lane.b32.xlu2 %v500_v56, %s3388_s24  ;;  %v2747_v55 = vrot.slane %v2086_v45, 5  ;;  %v1295_v56 = vsel %vm189_vm8, %v3987_v52, %v1293_v25  ;;  %v2780_v52 = vld [vmem:[%s4558_s10] sm:$0xff]  ;;  %v21_v45 = vstv %s4561_s13  ;;  %v2941_v25 = vld [vmem:[%s4564_s14 + $0x28] sm:$0xff] }
0x266f   :  { %22 = vst [vmem:[#allocation2] sm:$0x1] %v21_v45 }
0x2670   :  { %v2774_v15 = vsel %vm2764_vm14, %v2773_v36, %v2747_v55 }
0x2674   :  { %v343_v21 = vpop.permute.xlu1 %342 }
0x2676   :  { %660 = vrot.lane.b32.xlu2 %v659_v10, %s3388_s24 }
0x267c   :  { %v975_v24 = vpop.permute.xlu1 %974 }
0x267d   :  { %v977_v46 = vsel %vm189_vm8, %v3910_v18, %v975_v24  ;;  %v3101_v24 = vld [vmem:[#allocation2] ss:$0 sm:$0xff] }
0x267e   :  { %819 = vrot.lane.b32.xlu2 %v818_v7, %s3388_s24  ;;  %v2729_v58 = vrot.slane %v977_v46, 4  ;;  %v2735_v7 = vrot.slane %v1295_v56, 2  ;;  %v2951_v46 = vld [vmem:[%s4564_s14 + $0x78] sm:$0xff] }
0x267f   :  { %2956 = vmatpush.msrb.mxu2 %v2951_v46 }
0x2686   :  { %2556 = vrot.lane.b32.xlu2 %v2555_v19, %s3388_s24 }
0x26c0   :  { %v2707_v34 = vpop.permute.xlu2 %2706 }
0x26c1   :  { %v2709_v33 = vmul.f32 %v2707_v34, %v2690_v59 }
0x26c3   :  { %v2714_v1 = vrot.slane %v2709_v33, 1  ;;  %2711 = vrot.lane.b32.xlu1 %v2709_v33, %s3389_s25 }
0x26c5   :  { %2715 = vrot.lane.b32.xlu2 %v2714_v1, %s3388_s24 }
0x26c8   :  { %v502_v3 = vpop.permute.xlu2 %501 }
0x26c9   :  { %v504_v48 = vsel %vm189_vm8, %v3729_v41, %v502_v3  ;;  %v2750_v41 = vrot.slane %v2241_v20, 4 }
0x26ca   :  { %v2720_v14 = vrot.slane %v504_v48, 7 }
0x26cb   :  { %1451 = vrot.lane.b32.xlu1 %v1450_v40, %s3388_s24  ;;  %v2775_v50 = vsel %vm65_vm1, %v2774_v15, %v2750_v41  ;;  %v2848_v40 = vld [vmem:[%s4559_s12] sm:$0xf] }
0x26d0   :  { %v661_v51 = vpop.permute.xlu2 %660 }
0x26d1   :  { %v663_v32 = vsel %vm189_vm8, %v3766_v0, %v661_v51  ;;  %v345_v0 = vsel %vm189_vm8, %v3678_v28, %v343_v21 }
0x26d2   :  { %v2723_v38 = vrot.slane %v663_v32, 6  ;;  %v2762_v60 = vsel %vm2761_vm13, %v345_v0, %v2720_v14 }
0x26d4   :  { %v2763_v42 = vsel %vm63_vm0, %v2762_v60, %v2723_v38  ;;  %v2950_v60 = vld [vmem:[%s4564_s14 + $0x70] sm:$0xff] }
0x26d5   :  { %2957 = vmatpush.msrb.mxu2 %v2950_v60 }
0x26d8   :  { %v820_v30 = vpop.permute.xlu2 %819 }
0x26d9   :  { %v822_v61 = vsel %vm189_vm8, %v3811_v57, %v820_v30  ;;  %v2753_v57 = vrot.slane %v2400_v31, 3 }
0x26da   :  { %v2726_v13 = vrot.slane %v822_v61, 5 }
0x26db   :  { %v2776_v28 = vsel %vm2767_vm15, %v2775_v50, %v2753_v57 }
0x26dc   :  { %v2765_v4 = vsel %vm2764_vm14, %v2763_v42, %v2726_v13  ;;  %vm2865_vm14 = vcmask 195584   ;;  %v2947_v42 = vld [vmem:[%s4564_s14 + $0x58] sm:$0xff] }
0x26dd   :  { %v2766_v44 = vsel %vm65_vm1, %v2765_v4, %v2729_v58  ;;  %v2945_v4 = vld [vmem:[%s4564_s14 + $0x48] sm:$0xff]  ;;  %v2940_v58 = vld [vmem:[%s4564_s14 + $0x20] sm:$0xff] }
0x26de   :  { %v2768_v39 = vsel %vm2767_vm15, %v2766_v44, %v2732_v6  ;;  %v2937_v44 = vld [vmem:[%s4564_s14 + $0x8] sm:$0xff]  ;;  %v2936_v6 = vld [vmem:[%s4564_s14] sm:$0xff]  ;;  %vm2915_vm15 = vcmask 523264  }
0x26df   :  { %v2769_v33 = vsel %vm67_vm2, %v2768_v39, %v2735_v7 }
0x26e0   :  { %v2557_v9 = vpop.permute.xlu2 %2556 }
0x26e1   :  { %v2559_v54 = vsel %vm189_vm8, %v4347_v23, %v2557_v9 }
0x26e2   :  { %v2756_v62 = vrot.slane %v2559_v54, 2 }
0x26e4   :  { %v2777_v18 = vsel %vm67_vm2, %v2776_v28, %v2756_v62  ;;  %v2943_v28 = vld [vmem:[%s4564_s14 + $0x38] sm:$0xff] }
0x271f   :  { %v2716_v23 = vpop.permute.xlu2 %2715 }
0x2735   :  { %v2712_v59 = vpop.permute.xlu1 %2711 }
0x2736   :  { %v2718_v17 = vsel %vm189_vm8, %v2712_v59, %v2716_v23  ;;  %v2949_v23 = vld [vmem:[%s4564_s14 + $0x68] sm:$0xff]  ;;  %v2948_v59 = vld [vmem:[%s4564_s14 + $0x60] sm:$0xff] }
0x2737   :  { %v2759_v2 = vrot.slane %v2718_v17, 1  ;;  %2958 = vmatpush.msrb.mxu2 %v2949_v23  ;;  %v2946_v17 = vld [vmem:[%s4564_s14 + $0x50] sm:$0xff] }
0x2739   :  { %v2778_v43 = vsel %vm2770_vm4, %v2777_v18, %v2759_v2  ;;  %2959 = vmatpush.msrb.mxu2 %v2948_v59  ;;  %v2944_v2 = vld [vmem:[%s4564_s14 + $0x40] sm:$0xff]  ;;  %v2939_v18 = vld [vmem:[%s4564_s14 + $0x18] sm:$0xff] }
0x273a   :  { %2793 = vrot.lane.b32.xlu1 %v2778_v43, %s3390_s8  ;;  %2802 = vrot.lane.b32.xlu2 %v2778_v43, %s3391_s23 }
0x273b   :  { %2960 = vmatpush.msrb.mxu2 %v2947_v42 }
0x273d   :  { %v1452_v10 = vpop.permute.xlu1 %1451  ;;  %2961 = vmatpush.msrb.mxu2 %v2946_v17 }
0x273e   :  { %v1454_v19 = vsel %vm189_vm8, %v4041_v5, %v1452_v10  ;;  %v2781_v5 = vlaneseq }
0x273f   :  { %v2738_v34 = vrot.slane %v1454_v19, 1  ;;  %2962 = vmatpush.msrb.mxu2 %v2945_v4 }
0x2740   :  { %v2782_v63 = vand.u32 127, %v2781_v5 }
0x2741   :  { %v2771_v1 = vsel %vm2770_vm4, %v2769_v33, %v2738_v34  ;;  %2963 = vmatpush.msrb.mxu2 %v2944_v2  ;;  %vm2917_vm4 = vcmask 785408  }
0x2742   :  { %2800 = vrot.lane.b32.xlu0 %v2771_v1, %s3391_s23  ;;  %2791 = vrot.lane.b32.xlu2 %v2771_v1, %s3390_s8  ;;  %vm2786_vm0 = vcmp.eq.s32.totalorder %v2782_v63, 31  ;;  %vm2787_vm1 = vcmp.eq.s32.totalorder %v2782_v63, 63  ;;  %vm2783_vm6 = vcmp.eq.s32.totalorder %v2782_v63, 0  ;;  %vm2784_vm7 = vcmp.eq.s32.totalorder %v2782_v63, 32 }
0x2743   :  { %vm4443_vm2 = vmor %vm2786_vm0, %vm2787_vm1  ;;  %2964 = vmatpush.msrb.mxu2 %v2943_v28  ;;  %vm2976_vm0 = vcmask 254976  }
0x2744   :  { %vm3064_vm5 = vmneg %vm4443_vm2 }
0x2745   :  { %vm4457_vm9 = vmor %vm2783_vm6, %vm2784_vm7  ;;  %2965 = vmatpush.msrb.mxu2 %v2942_v37 }
0x2746   :  { %vm3068_vm10 = vmneg %vm4457_vm9 }
0x2747   :  { %2966 = vmatpush.msrb.mxu2 %v2941_v25 }
0x2749   :  { %2967 = vmatpush.msrb.mxu2 %v2940_v58 }
0x274a   :  { %2819 = vperm.xlu0 %3086, %v2780_v52  }
0x274b   :  { %2968 = vmatpush.msrb.mxu2 %v2939_v18 }
0x2752   :  { %2862 = vperm.xlu0 %3086, %v2848_v40  }
0x2794   :  { %v2803_v3 = vpop.permute.xlu2 %2802 }
0x2795   :  { %v2808_v8 = vsel %vm2806_vm3, %v2803_v3, 0.0 }
0x2796   :  { %3065 = vmatpush.msk.msrb.mxu0 %vm3064_vm5, %v2808_v8 }
0x279c   :  { %v2792_v30 = vpop.permute.xlu2 %2791 }
0x279d   :  { %v2798_v29 = vsel %vm2797_vm11, 0.0, %v2792_v30 }
0x27ac   :  { %v2794_v21 = vpop.permute.xlu1 %2793 }
0x27ad   :  { %v2799_v16 = vsel %vm2797_vm11, 0.0, %v2794_v21 }
0x27b4   :  { %v2801_v26 = vpop.permute.xlu0 %2800 }
0x27b5   :  { %v2807_v51 = vsel %vm2806_vm3, %v2801_v26, 0.0 }
0x27b6   :  { %3067 = vmatpush.msk.msrb.mxu0 %vm3064_vm5, %v2807_v51  ;;  %v3102_v51 = vld [vmem:[%s4563_s15] ss:$0 sm:$0xff] }
0x27b8   :  { %2838 = vmatpush.msrb.mxu0 %v2778_v43  ;;  %v2938_v43 = vld [vmem:[%s4564_s14 + $0x10] sm:$0xff] }
0x27b9   :  { %2969 = vmatpush.msrb.mxu2 %v2938_v43 }
0x27ba   :  { %2839 = vmatpush.msrb.mxu0 %v2771_v1 }
0x27bb   :  { %2970 = vmatpush.msrb.mxu2 %v2937_v44 }
0x27bc   :  { %3069 = vmatpush.msk.msrb.mxu0 %vm3068_vm10, %v2799_v16  ;;  %v2820_v11 = vpop.permute.xlu0 %2819 }
0x27bd   :  { %2971 = vmatpush.msrb.mxu2 %v2936_v6 }
0x27be   :  { %3071 = vmatpush.msk.msrb.mxu0 %vm3068_vm10, %v2798_v29 }
0x27bf   :  { %3072 = vmatmul.msk.f32.vlgmr.msrb.gmra.mxu0 %vm2822_vm12, %v2779_v22 }
0x27c4   :  { %v2863_v32 = vpop.permute.xlu0 %2862 }
0x283c   :  { %v2843_v27 = vpop.f32.mrf.mxu0 }
0x283d   :  { %v2844_v47 = vadd.f32 %v2843_v27, %v2820_v11 }
0x283f   :  { %v2846_v55 = vmax.f32 %v2844_v47, 0.0 }
0x2841   :  { %2850 = vrot.lane.b32.xlu2 %v2846_v55, %s3390_s8  ;;  %2854 = vrot.lane.b32.xlu1 %v2846_v55, %s3391_s23 }
0x2849   :  { %2896 = vperm.xlu1 %3087, %v3101_v24  }
0x289b   :  { %v2851_v48 = vpop.permute.xlu2 %2850 }
0x289c   :  { %v2853_v20 = vsel %vm2797_vm11, 0.0, %v2851_v48 }
0x28b3   :  { %v2855_v9 = vpop.permute.xlu1 %2854 }
0x28b4   :  { %v2857_v35 = vsel %vm2806_vm3, %v2855_v9, 0.0 }
0x28b5   :  { %3074 = vmatpush.msk.msrb.mxu1 %vm3064_vm5, %v2857_v35 }
0x28b7   :  { %2883 = vmatpush.msrb.mxu1 %v2846_v55 }
0x28b9   :  { %3076 = vmatpush.msk.msrb.mxu1 %vm3068_vm10, %v2853_v20 }
0x28ba   :  { %3077 = vmatmul.msk.f32.vlgmr.msrb.gmra.mxu1 %vm2865_vm14, %v2847_v12 }
0x28bb   :  { %v2897_v54 = vpop.permute.xlu1 %2896 }
0x2937   :  { %v2886_v36 = vpop.f32.mrf.mxu1 }
0x2938   :  { %v2887_v61 = vadd.f32 %v2886_v36, %v2863_v32 }
0x293a   :  { %v2889_v15 = vmax.f32 %v2887_v61, 0.0  ;;  %v3078_v14 = vclamps-f32 %v2887_v61, 0.0 }
0x293c   :  { %v2891_v41 = vmax.f32 %v2889_v15, 0.0  ;;  %v2899_v31 = vmul.f32 %v3078_v14, %v2897_v54 }
0x293e   :  { %v2900_v38 = vadd.f32 %v2899_v31, %v2891_v41 }
0x2940   :  { %2919 = vrot.lane.b32.xlu2 %v2900_v38, %s3392_s18  ;;  %v2906_v13 = vrot.slane %v2900_v38, 2  ;;  %v2910_v50 = vrot.slane %v2900_v38, 3  ;;  %v2902_v0 = vrot.slane %v2900_v38, 1 }
0x2942   :  { %v3094_v62 = vpack.i.bf16 %v2906_v13, %v2910_v50  ;;  %v3089_v57 = vpack.i.bf16 %v2902_v0, %v2906_v13 }
0x2944   :  { %3095 = vrot.lane.b32.xlu1 %v3094_v62, %s3388_s24  ;;  %3090 = vrot.lane.b32.xlu0 %v3089_v57, %s3389_s25 }
0x2948   :  { %2911 = vrot.lane.b32.xlu2 %v2910_v50, %s3392_s18 }
0x299a   :  { %v2920_v56 = vpop.permute.xlu2 %2919 }
0x299b   :  { %v2929_v1 = vsel %vm189_vm8, %v2920_v56, %v2902_v0 }
0x29a2   :  { %v2912_v5 = vpop.permute.xlu2 %2911 }
0x29b6   :  { %v3096_v10 = vpop.permute.xlu1 %3095  ;;  %v3091_v39 = vpop.permute.xlu0 %3090 }
0x29b7   :  { %v3098_v7 = vunpack.i.h.bf16 %v3096_v10  ;;  %v3097_v19 = vunpack.i.l.bf16 %v3096_v10  ;;  %v3093_v34 = vunpack.i.h.bf16 %v3091_v39  ;;  %v3092_v33 = vunpack.i.l.bf16 %v3091_v39 }
0x29b9   :  { %v2914_v52 = vsel %vm189_vm8, %v2900_v38, %v3093_v34  ;;  %v2930_v40 = vsel %vm2915_vm15, %v2929_v1, %v3092_v33 }
0x29ba   :  { %v2916_v63 = vsel %vm2915_vm15, %v2914_v52, %v3098_v7  ;;  %v2931_v49 = vsel %vm2917_vm4, %v2930_v40, %v3097_v19 }
0x29bb   :  { %v2933_v3 = vrot.slane %v2931_v49, 7  ;;  %v2918_v8 = vsel %vm2917_vm4, %v2916_v63, %v2912_v5 }
0x29bd   :  { %v2935_v26 = vsel %vm2761_vm13, %v2918_v8, %v2933_v3 }
0x29be   :  { %2972 = vmatmul.f32.vlgmr.msrb.gmra.mxu2 %v2935_v26 }
0x2a41   :  { %v2973_v53 = vpop.f32.mrf.mxu2 }
0x2a42   :  { %v2974_v21 = vadd.f32 %v3102_v51, %v2973_v53 }
0x2a44   :  { %2977 = vst.msk [vmem:[%s4565_s16] sm:$0x3] %vm2976_vm0, %v2974_v21 }

</bundles_post_ra>
